<compile_context>
chip_gen: v7x
topology: tpu7x:2x2x1
jax: 0.10.0
libtpu: 0.0.40
codegen_flags: <defaults>
</compile_context>

<pallas_src>
import jax
import jax.numpy as jnp
import numpy as np
from jax.experimental import pallas as pl
from jax.experimental.pallas import tpu as pltpu


# ------------- fused embed-gather + LSTM(2) + fc1 + softmax kernel ------------
def make_fused_kernel(L, T, B, H):
    """Builds the fused kernel for static (num_layers, seq, batch, hidden)."""
    TB = T * B

    def kernel(mi_ref, pi_ref, ri_ref, em_ref, ep_ref, er_ref, *refs):
        layer_refs = refs[:3 * L]                            # (wih_t, whh_t, b) per layer
        fcw_ref, fcb_ref, h0_ref, c0_ref = refs[3 * L:3 * L + 4]
        (dense_ref, logits_ref, sm_ref, lsm_ref,
         hn_ref, cn_ref) = refs[3 * L + 4:3 * L + 10]
        x_sc, y_sc, gx_sc = refs[3 * L + 10:]                # VMEM scratch

        # ---- in-kernel embedding lookup: exact one-hot matmul gather ---------
        def gather(idx_ref, tab_ref):
            vocab = tab_ref.shape[0]
            iota = jax.lax.broadcasted_iota(jnp.int32, (TB, vocab), 1)
            onehot = (idx_ref[...] == iota).astype(jnp.float32)   # [TB, vocab]
            return jnp.dot(onehot, tab_ref[...],
                           preferred_element_type=jnp.float32)    # [TB, emb]

        Em, Ep, Er = em_ref.shape[1], ep_ref.shape[1], er_ref.shape[1]
        x_sc[:, 0:Em] = gather(mi_ref, em_ref)
        x_sc[:, Em:Em + Ep] = gather(pi_ref, ep_ref)
        x_sc[:, Em + Ep:Em + Ep + Er] = gather(ri_ref, er_ref)

        src = x_sc                                           # [T*B, In] (time-major)
        for layer in range(L):
            wih_ref, whh_ref, b_ref = layer_refs[3 * layer:3 * layer + 3]

            # Hoisted input projection: one batched matmul over all T*B rows,
            # bias (b_ih + b_hh) fused in. Removed from the serial chain.
            gx_sc[...] = (
                jnp.dot(src[...], wih_ref[...], preferred_element_type=jnp.float32)
                + b_ref[...])

            h = h0_ref[layer].astype(jnp.float32)            # [B, H]
            c = c0_ref[layer].astype(jnp.float32)            # [B, H]
            last_layer = (layer == L - 1)

            # Fully-unrolled in-kernel time loop (T is small & static).
            for t in range(T):
                gates = gx_sc[t * B:(t + 1) * B, :] + jnp.dot(
                    h, whh_ref[...], preferred_element_type=jnp.float32)  # [B, 4H]
                i = jax.nn.sigmoid(gates[:, 0 * H:1 * H])
                f = jax.nn.sigmoid(gates[:, 1 * H:2 * H])
                g = jnp.tanh(gates[:, 2 * H:3 * H])
                o = jax.nn.sigmoid(gates[:, 3 * H:4 * H])
                c = f * c + i * g
                h = o * jnp.tanh(c)
                if last_layer:
                    # Scatter into batch-major order (row b*T + t) so the flat
                    # activations match PyTorch's lstmOut.view(-1, H).
                    for b in range(B):
                        row = b * T + t
                        dense_ref[row:row + 1, :] = h[b:b + 1, :].astype(dense_ref.dtype)
                else:
                    y_sc[t * B:(t + 1) * B, :] = h           # time-major, aligned store

            hn_ref[layer] = h.astype(hn_ref.dtype)
            cn_ref[layer] = c.astype(cn_ref.dtype)
            src = y_sc                                       # next layer reads layer output

        # ---- fc1 + softmax + logSoftmax on the batch-major dense activations --
        dense = dense_ref[...]                                               # [B*T, H]
        logits = jnp.dot(dense, fcw_ref[...],
                         preferred_element_type=jnp.float32) + fcb_ref[...]  # [B*T, V]
        m = jnp.max(logits, axis=-1, keepdims=True)
        e = jnp.exp(logits - m)
        s = jnp.sum(e, axis=-1, keepdims=True)
        logits_ref[...] = logits.astype(logits_ref.dtype)
        sm_ref[...] = (e * pl.reciprocal(s, approx=True)).astype(sm_ref.dtype)
        lsm_ref[...] = ((logits - m) - jnp.log(s)).astype(lsm_ref.dtype)

    return kernel


def fused_lstm_fc(mi, pi, ri, emb_midi, emb_pc, emb_rhy,
                  lstm_layers, fc_wt, fc_b, h0, c0):
    """mi/pi/ri: [T*B, 1] int32 time-major indices.
    Returns (dense, logits, softmax, logSoftmax, h_n, c_n)."""
    TB = mi.shape[0]
    L, B, H = h0.shape
    T = TB // B
    V = fc_wt.shape[1]

    def spec2(shape):
        return pl.BlockSpec(shape, lambda i: (0, 0))

    def spec3(shape):
        return pl.BlockSpec(shape, lambda i: (0, 0, 0))

    in_arrays = [mi, pi, ri, emb_midi, emb_pc, emb_rhy]
    in_specs = [spec2(a.shape) for a in in_arrays]
    for lp in lstm_layers:
        in_arrays += [lp["wih_t"], lp["whh_t"], lp["b"]]
        in_specs += [spec2(lp["wih_t"].shape), spec2(lp["whh_t"].shape),
                     spec2(lp["b"].shape)]
    in_arrays += [fc_wt, fc_b, h0, c0]
    in_specs += [spec2(fc_wt.shape), spec2(fc_b.shape), spec3(h0.shape), spec3(c0.shape)]

    In = emb_midi.shape[1] + emb_pc.shape[1] + emb_rhy.shape[1]

    out_shapes = (jax.ShapeDtypeStruct((TB, H), jnp.float32),   # dense (midiBeforeFc)
                  jax.ShapeDtypeStruct((TB, V), jnp.float32),   # logits
                  jax.ShapeDtypeStruct((TB, V), jnp.float32),   # softmax
                  jax.ShapeDtypeStruct((TB, V), jnp.float32),   # logSoftmax
                  jax.ShapeDtypeStruct((L, B, H), jnp.float32), # h_n
                  jax.ShapeDtypeStruct((L, B, H), jnp.float32)) # c_n
    out_specs = [spec2((TB, H)), spec2((TB, V)), spec2((TB, V)), spec2((TB, V)),
                 spec3((L, B, H)), spec3((L, B, H))]

    grid_spec = pltpu.PrefetchScalarGridSpec(
        num_scalar_prefetch=0,
        grid=(1,),
        in_specs=in_specs,
        out_specs=out_specs,
        scratch_shapes=[pltpu.VMEM((TB, In), jnp.float32),      # gathered LSTM input
                        pltpu.VMEM((TB, H), jnp.float32),       # layer output (time-major)
                        pltpu.VMEM((TB, 4 * H), jnp.float32)],  # hoisted input gates
    )
    return pl.pallas_call(
        make_fused_kernel(L=L, T=T, B=B, H=H),
        grid_spec=grid_spec,
        out_shape=out_shapes,
        compiler_params=pltpu.CompilerParams(dimension_semantics=("arbitrary",)),
    )(*in_arrays)


# ------------------------------- parameters ----------------------------------
def xavier_normal(key, shape):
    fan_out, fan_in = shape[0], shape[1]
    std = np.sqrt(2.0 / (fan_in + fan_out))
    return jax.random.normal(key, shape, dtype=jnp.float32) * std


def init_params(key, *, vocabMidi, vocabPC, vocabRhy, embMidi, embPC, embRhy,
                hidden, num_layers, input_size):
    keys = jax.random.split(key, 40)
    ki = iter(keys)
    bound = 1.0 / np.sqrt(hidden)
    # Weights stored pre-transposed / bias-fused (layout-ready for the kernel).
    p = {
        "embMidi": xavier_normal(next(ki), (vocabMidi, embMidi)),
        "embPitchClass": xavier_normal(next(ki), (vocabPC, embPC)),
        "embRhythm": xavier_normal(next(ki), (vocabRhy, embRhy)),
        "fc1_wt": jnp.transpose(xavier_normal(next(ki), (vocabMidi, hidden))),   # [H, V]
        "fc1_b": jax.random.uniform(next(ki), (1, vocabMidi), jnp.float32,
                                    -bound, bound),
        "lstm": [],
    }
    for layer in range(num_layers):
        in_sz = input_size if layer == 0 else hidden
        w_ih = xavier_normal(next(ki), (4 * hidden, in_sz))
        w_hh = xavier_normal(next(ki), (4 * hidden, hidden))
        b_ih = jax.random.uniform(next(ki), (4 * hidden,), jnp.float32, -bound, bound)
        b_hh = jax.random.uniform(next(ki), (4 * hidden,), jnp.float32, -bound, bound)
        p["lstm"].append({
            "wih_t": jnp.transpose(w_ih),                 # [In, 4H]
            "whh_t": jnp.transpose(w_hh),                 # [H, 4H]
            "b": (b_ih + b_hh).reshape(1, 4 * hidden),    # [1, 4H]
        })
    return p


# ------------------------------- full forward --------------------------------
@jax.jit
def forward(params, midi, pitchClass, rhythm, h0, c0):
    # voices == 1 path: drop the voices axis.
    midi2 = midi[:, 0, :]                 # [B, T]
    pc2 = pitchClass[:, 0, :]             # [B, T]
    rhy2 = rhythm[:, 0, :]                # [B, T]
    B, T = midi2.shape

    # Tiny int32 time-major index vectors; the gathers themselves run in-kernel.
    mi = jnp.transpose(midi2).reshape(T * B, 1).astype(jnp.int32)
    pi = jnp.transpose(pc2).reshape(T * B, 1).astype(jnp.int32)
    ri = jnp.transpose(rhy2).reshape(T * B, 1).astype(jnp.int32)
    # dropoutEmb == identity (eval mode)

    dense, logits, sm, lsm, hN, cN = fused_lstm_fc(
        mi, pi, ri,
        params["embMidi"], params["embPitchClass"], params["embRhythm"],
        params["lstm"], params["fc1_wt"], params["fc1_b"], h0, c0)
    # dropoutLstm == identity (eval mode)

    return {
        "midi": {
            "midiBeforeFc": dense,
            "logits": logits,
            "softmax": sm,
            "logSoftmax": lsm,
        },
        "misc": 1,
        "hiddenOut": {
            "midi": (hN, cN),
            "rhythm": None,
        },
    }


# ----------------------------- numpy reference --------------------------------
def _np_sigmoid(x):
    return 1.0 / (1.0 + np.exp(-x))


def reference_forward(params, midi, pitchClass, rhythm, h0, c0):
    p = jax.tree_util.tree_map(lambda a: np.asarray(a, dtype=np.float32)
                               if np.asarray(a).dtype != np.int32 else np.asarray(a),
                               params)
    midi2 = np.asarray(midi)[:, 0, :]
    pc2 = np.asarray(pitchClass)[:, 0, :]
    rhy2 = np.asarray(rhythm)[:, 0, :]
    x = np.concatenate([p["embMidi"][midi2], p["embPitchClass"][pc2],
                        p["embRhythm"][rhy2]], axis=2).astype(np.float32)   # [B,T,In]
    B, T, _ = x.shape
    h0 = np.asarray(h0, np.float32)
    c0 = np.asarray(c0, np.float32)
    H = h0.shape[-1]

    inp = x
    hs, cs = [], []
    for layer, lp in enumerate(p["lstm"]):
        h, c = h0[layer], c0[layer]
        outs = []
        for t in range(T):
            g = inp[:, t, :] @ lp["wih_t"] + h @ lp["whh_t"] + lp["b"]
            i = _np_sigmoid(g[:, :H]); f = _np_sigmoid(g[:, H:2 * H])
            gg = np.tanh(g[:, 2 * H:3 * H]); o = _np_sigmoid(g[:, 3 * H:])
            c = f * c + i * gg
            h = o * np.tanh(c)
            outs.append(h)
        inp = np.stack(outs, axis=1)                 # [B, T, H]
        hs.append(h); cs.append(c)

    dense = inp.reshape(B * T, H)                    # batch-major flatten (== .view(-1,H))
    logits = dense @ p["fc1_wt"] + p["fc1_b"]
    m = logits.max(axis=1, keepdims=True)
    e = np.exp(logits - m)
    s = e.sum(axis=1, keepdims=True)
    return dense, logits, e / s, (logits - m) - np.log(s), np.stack(hs), np.stack(cs)


# ----------------------------------- main -------------------------------------
if __name__ == "__main__":
    # Small, module-consistent sizes (inputSizeLSTM = embMidi + embPC + embRhy = 128).
    # B=8 fills all 8 sublanes per vreg; H=128 keeps recurrent state lane dense.
    B, T = 8, 8
    VOICES = 1
    EMB_MIDI = 48
    EMB_PC = 48
    EMB_RHY = 32
    VOCAB_MIDI = 48
    VOCAB_PC = 13
    VOCAB_RHY = 10
    HIDDEN = 128
    NUM_LAYERS = 2
    INPUT_SIZE = VOICES * (EMB_MIDI + EMB_PC) + EMB_RHY   # 128

    key = jax.random.PRNGKey(0)
    kp, kmid, kpc, krhy, kh, kc = jax.random.split(key, 6)

    params = init_params(kp, vocabMidi=VOCAB_MIDI, vocabPC=VOCAB_PC, vocabRhy=VOCAB_RHY,
                         embMidi=EMB_MIDI, embPC=EMB_PC, embRhy=EMB_RHY,
                         hidden=HIDDEN, num_layers=NUM_LAYERS, input_size=INPUT_SIZE)

    midi = jax.random.randint(kmid, (B, VOICES, T), 0, VOCAB_MIDI, dtype=jnp.int32)
    pitchClass = jax.random.randint(kpc, (B, VOICES, T), 0, VOCAB_PC, dtype=jnp.int32)
    rhythm = jax.random.randint(krhy, (B, 1, T), 0, VOCAB_RHY, dtype=jnp.int32)

    # init_hiddenMidi with initHiddenZeros=0 -> standard-normal initial (h, c)
    h0 = jax.random.normal(kh, (NUM_LAYERS, B, HIDDEN), dtype=jnp.float32)
    c0 = jax.random.normal(kc, (NUM_LAYERS, B, HIDDEN), dtype=jnp.float32)

    out = forward(params, midi, pitchClass, rhythm, h0, c0)
    out = jax.block_until_ready(out)

    dense = np.asarray(out["midi"]["midiBeforeFc"])
    logits = np.asarray(out["midi"]["logits"])
    sm = np.asarray(out["midi"]["softmax"])
    lsm = np.asarray(out["midi"]["logSoftmax"])
    hN = np.asarray(out["hiddenOut"]["midi"][0])
    cN = np.asarray(out["hiddenOut"]["midi"][1])

    # Shape / sanity checks
    assert dense.shape == (B * T, HIDDEN)
    assert logits.shape == (B * T, VOCAB_MIDI)
    assert hN.shape == (NUM_LAYERS, B, HIDDEN) and cN.shape == (NUM_LAYERS, B, HIDDEN)
    for arr in (dense, logits, sm, lsm, hN, cN):
        assert np.all(np.isfinite(arr))
    assert np.allclose(sm.sum(axis=1), 1.0, atol=1e-2)   # approx reciprocal tolerance

    # Reference comparison (numpy f32)
    r_dense, r_logits, r_sm, r_lsm, r_hN, r_cN = reference_forward(
        params, midi, pitchClass, rhythm, h0, c0)
    assert np.allclose(dense, r_dense, rtol=2e-2, atol=2e-2)
    assert np.allclose(logits, r_logits, rtol=2e-2, atol=2e-2)
    assert np.allclose(sm, r_sm, atol=2e-2)
    assert np.allclose(lsm, r_lsm, rtol=2e-2, atol=2e-2)
    assert np.allclose(hN, r_hN, rtol=2e-2, atol=2e-2)
    assert np.allclose(cN, r_cN, rtol=2e-2, atol=2e-2)

    print("KERNEL_OK")
</pallas_src>

<mosaic_0001>
module attributes {stable_mosaic.version = 11 : i64} {
  func.func @kernel(%arg0: i32, %arg1: memref<64x1xi32, #tpu.memory_space<vmem>>, %arg2: memref<64x1xi32, #tpu.memory_space<vmem>>, %arg3: memref<64x1xi32, #tpu.memory_space<vmem>>, %arg4: memref<48x48xf32, #tpu.memory_space<vmem>>, %arg5: memref<13x48xf32, #tpu.memory_space<vmem>>, %arg6: memref<10x32xf32, #tpu.memory_space<vmem>>, %arg7: memref<128x512xf32, #tpu.memory_space<vmem>>, %arg8: memref<128x512xf32, #tpu.memory_space<vmem>>, %arg9: memref<1x512xf32, #tpu.memory_space<vmem>>, %arg10: memref<128x512xf32, #tpu.memory_space<vmem>>, %arg11: memref<128x512xf32, #tpu.memory_space<vmem>>, %arg12: memref<1x512xf32, #tpu.memory_space<vmem>>, %arg13: memref<128x48xf32, #tpu.memory_space<vmem>>, %arg14: memref<1x48xf32, #tpu.memory_space<vmem>>, %arg15: memref<2x8x128xf32, #tpu.memory_space<vmem>>, %arg16: memref<2x8x128xf32, #tpu.memory_space<vmem>>, %arg17: memref<64x128xf32, #tpu.memory_space<vmem>>, %arg18: memref<64x48xf32, #tpu.memory_space<vmem>>, %arg19: memref<64x48xf32, #tpu.memory_space<vmem>>, %arg20: memref<64x48xf32, #tpu.memory_space<vmem>>, %arg21: memref<2x8x128xf32, #tpu.memory_space<vmem>>, %arg22: memref<2x8x128xf32, #tpu.memory_space<vmem>>, %arg23: memref<64x128xf32, #tpu.memory_space<vmem>>, %arg24: memref<64x128xf32, #tpu.memory_space<vmem>>, %arg25: memref<64x512xf32, #tpu.memory_space<vmem>>) attributes {dimension_semantics = [#tpu.dimension_semantics<arbitrary>], iteration_bounds = array<i64: 1>, scalar_prefetch = 0 : i64, scratch_operands = 3 : i64, tpu.core_type = #tpu.core_type<tc>, window_params = [{pipeline_mode = #tpu.pipeline_mode<synchronous>, transform_indices = @transform_0, window_bounds = array<i64: 64, 1>}, {pipeline_mode = #tpu.pipeline_mode<synchronous>, transform_indices = @transform_1, window_bounds = array<i64: 64, 1>}, {pipeline_mode = #tpu.pipeline_mode<synchronous>, transform_indices = @transform_2, window_bounds = array<i64: 64, 1>}, {pipeline_mode = #tpu.pipeline_mode<synchronous>, transform_indices = @transform_3, window_bounds = array<i64: 48, 48>}, {pipeline_mode = #tpu.pipeline_mode<synchronous>, transform_indices = @transform_4, window_bounds = array<i64: 13, 48>}, {pipeline_mode = #tpu.pipeline_mode<synchronous>, transform_indices = @transform_5, window_bounds = array<i64: 10, 32>}, {pipeline_mode = #tpu.pipeline_mode<synchronous>, transform_indices = @transform_6, window_bounds = array<i64: 128, 512>}, {pipeline_mode = #tpu.pipeline_mode<synchronous>, transform_indices = @transform_7, window_bounds = array<i64: 128, 512>}, {pipeline_mode = #tpu.pipeline_mode<synchronous>, transform_indices = @transform_8, window_bounds = array<i64: 1, 512>}, {pipeline_mode = #tpu.pipeline_mode<synchronous>, transform_indices = @transform_9, window_bounds = array<i64: 128, 512>}, {pipeline_mode = #tpu.pipeline_mode<synchronous>, transform_indices = @transform_10, window_bounds = array<i64: 128, 512>}, {pipeline_mode = #tpu.pipeline_mode<synchronous>, transform_indices = @transform_11, window_bounds = array<i64: 1, 512>}, {pipeline_mode = #tpu.pipeline_mode<synchronous>, transform_indices = @transform_12, window_bounds = array<i64: 128, 48>}, {pipeline_mode = #tpu.pipeline_mode<synchronous>, transform_indices = @transform_13, window_bounds = array<i64: 1, 48>}, {pipeline_mode = #tpu.pipeline_mode<synchronous>, transform_indices = @transform_14, window_bounds = array<i64: 2, 8, 128>}, {pipeline_mode = #tpu.pipeline_mode<synchronous>, transform_indices = @transform_15, window_bounds = array<i64: 2, 8, 128>}, {pipeline_mode = #tpu.pipeline_mode<synchronous>, transform_indices = @transform_16, window_bounds = array<i64: 64, 128>}, {pipeline_mode = #tpu.pipeline_mode<synchronous>, transform_indices = @transform_17, window_bounds = array<i64: 64, 48>}, {pipeline_mode = #tpu.pipeline_mode<synchronous>, transform_indices = @transform_18, window_bounds = array<i64: 64, 48>}, {pipeline_mode = #tpu.pipeline_mode<synchronous>, transform_indices = @transform_19, window_bounds = array<i64: 64, 48>}, {pipeline_mode = #tpu.pipeline_mode<synchronous>, transform_indices = @transform_20, window_bounds = array<i64: 2, 8, 128>}, {pipeline_mode = #tpu.pipeline_mode<synchronous>, transform_indices = @transform_21, window_bounds = array<i64: 2, 8, 128>}]} {
    %0 = tpu.iota {dimensions = array<i32: 1>} : vector<64x48xi32>
    %c0 = arith.constant 0 : index
    %c0_0 = arith.constant 0 : index
    %1 = vector.load %arg1[%c0, %c0_0] : memref<64x1xi32, #tpu.memory_space<vmem>>, vector<64x1xi32>
    %2 = vector.broadcast %1 : vector<64x1xi32> to vector<64x48xi32>
    %3 = arith.cmpi eq, %2, %0 : vector<64x48xi32>
    %4 = arith.extui %3 : vector<64x48xi1> to vector<64x48xi32>
    %5 = arith.sitofp %4 : vector<64x48xi32> to vector<64x48xf32>
    %c0_1 = arith.constant 0 : index
    %c0_2 = arith.constant 0 : index
    %6 = vector.load %arg4[%c0_1, %c0_2] : memref<48x48xf32, #tpu.memory_space<vmem>>, vector<48x48xf32>
    %cst = arith.constant dense<0.000000e+00> : vector<64x48xf32>
    %7 = tpu.matmul %5, %6, %cst {dimension_numbers = #tpu.dot_dimension_numbers<[1], [0], [0], [1], [0, 0, 1, 1], [], []>} : vector<64x48xf32>, vector<48x48xf32>, vector<64x48xf32> -> vector<64x48xf32>
    %c0_3 = arith.constant 0 : index
    %c0_4 = arith.constant 0 : index
    %8 = vector.load %arg23[%c0_3, %c0_4] : memref<64x128xf32, #tpu.memory_space<vmem>>, vector<64x48xf32>
    tpu.vector_store %arg23[%c0_3, %c0_4], %7 {strides = array<i32>} : memref<64x128xf32, #tpu.memory_space<vmem>>, vector<64x48xf32>,
    %9 = tpu.iota {dimensions = array<i32: 1>} : vector<64x13xi32>
    %c0_5 = arith.constant 0 : index
    %c0_6 = arith.constant 0 : index
    %10 = vector.load %arg2[%c0_5, %c0_6] : memref<64x1xi32, #tpu.memory_space<vmem>>, vector<64x1xi32>
    %11 = vector.broadcast %10 : vector<64x1xi32> to vector<64x13xi32>
    %12 = arith.cmpi eq, %11, %9 : vector<64x13xi32>
    %13 = arith.extui %12 : vector<64x13xi1> to vector<64x13xi32>
    %14 = arith.sitofp %13 : vector<64x13xi32> to vector<64x13xf32>
    %c0_7 = arith.constant 0 : index
    %c0_8 = arith.constant 0 : index
    %15 = vector.load %arg5[%c0_7, %c0_8] : memref<13x48xf32, #tpu.memory_space<vmem>>, vector<13x48xf32>
    %cst_9 = arith.constant dense<0.000000e+00> : vector<64x48xf32>
    %16 = tpu.matmul %14, %15, %cst_9 {dimension_numbers = #tpu.dot_dimension_numbers<[1], [0], [0], [1], [0, 0, 1, 1], [], []>} : vector<64x13xf32>, vector<13x48xf32>, vector<64x48xf32> -> vector<64x48xf32>
    %c0_10 = arith.constant 0 : index
    %c48 = arith.constant 48 : index
    %17 = vector.load %arg23[%c0_10, %c48] : memref<64x128xf32, #tpu.memory_space<vmem>>, vector<64x48xf32>
    tpu.vector_store %arg23[%c0_10, %c48], %16 {strides = array<i32>} : memref<64x128xf32, #tpu.memory_space<vmem>>, vector<64x48xf32>,
    %18 = tpu.iota {dimensions = array<i32: 1>} : vector<64x10xi32>
    %c0_11 = arith.constant 0 : index
    %c0_12 = arith.constant 0 : index
    %19 = vector.load %arg3[%c0_11, %c0_12] : memref<64x1xi32, #tpu.memory_space<vmem>>, vector<64x1xi32>
    %20 = vector.broadcast %19 : vector<64x1xi32> to vector<64x10xi32>
    %21 = arith.cmpi eq, %20, %18 : vector<64x10xi32>
    %22 = arith.extui %21 : vector<64x10xi1> to vector<64x10xi32>
    %23 = arith.sitofp %22 : vector<64x10xi32> to vector<64x10xf32>
    %c0_13 = arith.constant 0 : index
    %c0_14 = arith.constant 0 : index
    %24 = vector.load %arg6[%c0_13, %c0_14] : memref<10x32xf32, #tpu.memory_space<vmem>>, vector<10x32xf32>
    %cst_15 = arith.constant dense<0.000000e+00> : vector<64x32xf32>
    %25 = tpu.matmul %23, %24, %cst_15 {dimension_numbers = #tpu.dot_dimension_numbers<[1], [0], [0], [1], [0, 0, 1, 1], [], []>} : vector<64x10xf32>, vector<10x32xf32>, vector<64x32xf32> -> vector<64x32xf32>
    %c0_16 = arith.constant 0 : index
    %c96 = arith.constant 96 : index
    %26 = vector.load %arg23[%c0_16, %c96] : memref<64x128xf32, #tpu.memory_space<vmem>>, vector<64x32xf32>
    tpu.vector_store %arg23[%c0_16, %c96], %25 {strides = array<i32>} : memref<64x128xf32, #tpu.memory_space<vmem>>, vector<64x32xf32>,
    %c0_17 = arith.constant 0 : index
    %c0_18 = arith.constant 0 : index
    %27 = vector.load %arg23[%c0_17, %c0_18] : memref<64x128xf32, #tpu.memory_space<vmem>>, vector<64x128xf32>
    %c0_19 = arith.constant 0 : index
    %c0_20 = arith.constant 0 : index
    %28 = vector.load %arg7[%c0_19, %c0_20] : memref<128x512xf32, #tpu.memory_space<vmem>>, vector<128x512xf32>
    %cst_21 = arith.constant dense<0.000000e+00> : vector<64x512xf32>
    %29 = tpu.matmul %27, %28, %cst_21 {dimension_numbers = #tpu.dot_dimension_numbers<[1], [0], [0], [1], [0, 0, 1, 1], [], []>} : vector<64x128xf32>, vector<128x512xf32>, vector<64x512xf32> -> vector<64x512xf32>
    %c0_22 = arith.constant 0 : index
    %c0_23 = arith.constant 0 : index
    %30 = vector.load %arg9[%c0_22, %c0_23] : memref<1x512xf32, #tpu.memory_space<vmem>>, vector<1x512xf32>
    %31 = vector.broadcast %30 : vector<1x512xf32> to vector<64x512xf32>
    %32 = arith.addf %29, %31 : vector<64x512xf32>
    %c0_24 = arith.constant 0 : index
    %c0_25 = arith.constant 0 : index
    %33 = vector.load %arg25[%c0_24, %c0_25] : memref<64x512xf32, #tpu.memory_space<vmem>>, vector<64x512xf32>
    tpu.vector_store %arg25[%c0_24, %c0_25], %32 {strides = array<i32>} : memref<64x512xf32, #tpu.memory_space<vmem>>, vector<64x512xf32>,
    %c0_26 = arith.constant 0 : index
    %c0_27 = arith.constant 0 : index
    %c0_28 = arith.constant 0 : index
    %34 = vector.load %arg15[%c0_26, %c0_27, %c0_28] : memref<2x8x128xf32, #tpu.memory_space<vmem>>, vector<1x8x128xf32>
    %35 = vector.shape_cast %34 : vector<1x8x128xf32> to vector<8x128xf32>
    %c0_29 = arith.constant 0 : index
    %c0_30 = arith.constant 0 : index
    %c0_31 = arith.constant 0 : index
    %36 = vector.load %arg16[%c0_29, %c0_30, %c0_31] : memref<2x8x128xf32, #tpu.memory_space<vmem>>, vector<1x8x128xf32>
    %37 = vector.shape_cast %36 : vector<1x8x128xf32> to vector<8x128xf32>
    %c0_32 = arith.constant 0 : index
    %c0_33 = arith.constant 0 : index
    %38 = vector.load %arg25[%c0_32, %c0_33] : memref<64x512xf32, #tpu.memory_space<vmem>>, vector<8x512xf32>
    %c0_34 = arith.constant 0 : index
    %c0_35 = arith.constant 0 : index
    %39 = vector.load %arg8[%c0_34, %c0_35] : memref<128x512xf32, #tpu.memory_space<vmem>>, vector<128x512xf32>
    %cst_36 = arith.constant dense<0.000000e+00> : vector<8x512xf32>
    %40 = tpu.matmul %35, %39, %cst_36 {dimension_numbers = #tpu.dot_dimension_numbers<[1], [0], [0], [1], [0, 0, 1, 1], [], []>} : vector<8x128xf32>, vector<128x512xf32>, vector<8x512xf32> -> vector<8x512xf32>
    %41 = arith.addf %38, %40 : vector<8x512xf32>
    %42 = vector.extract_strided_slice %41 {offsets = [0, 0], sizes = [8, 128], strides = [1, 1]} : vector<8x512xf32> to vector<8x128xf32>
    %43 = arith.negf %42 : vector<8x128xf32>
    %44 = math.exp %43 : vector<8x128xf32>
    %cst_37 = arith.constant 1.000000e+00 : f32
    %45 = vector.broadcast %cst_37 : f32 to vector<8x128xf32>
    %46 = arith.addf %45, %44 : vector<8x128xf32>
    %47 = arith.divf %45, %46 : vector<8x128xf32>
    %48 = vector.extract_strided_slice %41 {offsets = [0, 128], sizes = [8, 128], strides = [1, 1]} : vector<8x512xf32> to vector<8x128xf32>
    %49 = arith.negf %48 : vector<8x128xf32>
    %50 = math.exp %49 : vector<8x128xf32>
    %cst_38 = arith.constant 1.000000e+00 : f32
    %51 = vector.broadcast %cst_38 : f32 to vector<8x128xf32>
    %52 = arith.addf %51, %50 : vector<8x128xf32>
    %53 = arith.divf %51, %52 : vector<8x128xf32>
    %54 = vector.extract_strided_slice %41 {offsets = [0, 256], sizes = [8, 128], strides = [1, 1]} : vector<8x512xf32> to vector<8x128xf32>
    %55 = math.tanh %54 : vector<8x128xf32>
    %56 = vector.extract_strided_slice %41 {offsets = [0, 384], sizes = [8, 128], strides = [1, 1]} : vector<8x512xf32> to vector<8x128xf32>
    %57 = arith.negf %56 : vector<8x128xf32>
    %58 = math.exp %57 : vector<8x128xf32>
    %cst_39 = arith.constant 1.000000e+00 : f32
    %59 = vector.broadcast %cst_39 : f32 to vector<8x128xf32>
    %60 = arith.addf %59, %58 : vector<8x128xf32>
    %61 = arith.divf %59, %60 : vector<8x128xf32>
    %62 = arith.mulf %53, %37 : vector<8x128xf32>
    %63 = arith.mulf %47, %55 : vector<8x128xf32>
    %64 = arith.addf %62, %63 : vector<8x128xf32>
    %65 = math.tanh %64 : vector<8x128xf32>
    %66 = arith.mulf %61, %65 : vector<8x128xf32>
    %c0_40 = arith.constant 0 : index
    %c0_41 = arith.constant 0 : index
    %67 = vector.load %arg24[%c0_40, %c0_41] : memref<64x128xf32, #tpu.memory_space<vmem>>, vector<8x128xf32>
    tpu.vector_store %arg24[%c0_40, %c0_41], %66 {strides = array<i32>} : memref<64x128xf32, #tpu.memory_space<vmem>>, vector<8x128xf32>,
    %c8 = arith.constant 8 : index
    %c0_42 = arith.constant 0 : index
    %68 = vector.load %arg25[%c8, %c0_42] : memref<64x512xf32, #tpu.memory_space<vmem>>, vector<8x512xf32>
    %c0_43 = arith.constant 0 : index
    %c0_44 = arith.constant 0 : index
    %69 = vector.load %arg8[%c0_43, %c0_44] : memref<128x512xf32, #tpu.memory_space<vmem>>, vector<128x512xf32>
    %cst_45 = arith.constant dense<0.000000e+00> : vector<8x512xf32>
    %70 = tpu.matmul %66, %69, %cst_45 {dimension_numbers = #tpu.dot_dimension_numbers<[1], [0], [0], [1], [0, 0, 1, 1], [], []>} : vector<8x128xf32>, vector<128x512xf32>, vector<8x512xf32> -> vector<8x512xf32>
    %71 = arith.addf %68, %70 : vector<8x512xf32>
    %72 = vector.extract_strided_slice %71 {offsets = [0, 0], sizes = [8, 128], strides = [1, 1]} : vector<8x512xf32> to vector<8x128xf32>
    %73 = arith.negf %72 : vector<8x128xf32>
    %74 = math.exp %73 : vector<8x128xf32>
    %cst_46 = arith.constant 1.000000e+00 : f32
    %75 = vector.broadcast %cst_46 : f32 to vector<8x128xf32>
    %76 = arith.addf %75, %74 : vector<8x128xf32>
    %77 = arith.divf %75, %76 : vector<8x128xf32>
    %78 = vector.extract_strided_slice %71 {offsets = [0, 128], sizes = [8, 128], strides = [1, 1]} : vector<8x512xf32> to vector<8x128xf32>
    %79 = arith.negf %78 : vector<8x128xf32>
    %80 = math.exp %79 : vector<8x128xf32>
    %cst_47 = arith.constant 1.000000e+00 : f32
    %81 = vector.broadcast %cst_47 : f32 to vector<8x128xf32>
    %82 = arith.addf %81, %80 : vector<8x128xf32>
    %83 = arith.divf %81, %82 : vector<8x128xf32>
    %84 = vector.extract_strided_slice %71 {offsets = [0, 256], sizes = [8, 128], strides = [1, 1]} : vector<8x512xf32> to vector<8x128xf32>
    %85 = math.tanh %84 : vector<8x128xf32>
    %86 = vector.extract_strided_slice %71 {offsets = [0, 384], sizes = [8, 128], strides = [1, 1]} : vector<8x512xf32> to vector<8x128xf32>
    %87 = arith.negf %86 : vector<8x128xf32>
    %88 = math.exp %87 : vector<8x128xf32>
    %cst_48 = arith.constant 1.000000e+00 : f32
    %89 = vector.broadcast %cst_48 : f32 to vector<8x128xf32>
    %90 = arith.addf %89, %88 : vector<8x128xf32>
    %91 = arith.divf %89, %90 : vector<8x128xf32>
    %92 = arith.mulf %83, %64 : vector<8x128xf32>
    %93 = arith.mulf %77, %85 : vector<8x128xf32>
    %94 = arith.addf %92, %93 : vector<8x128xf32>
    %95 = math.tanh %94 : vector<8x128xf32>
    %96 = arith.mulf %91, %95 : vector<8x128xf32>
    %c8_49 = arith.constant 8 : index
    %c0_50 = arith.constant 0 : index
    %97 = vector.load %arg24[%c8_49, %c0_50] : memref<64x128xf32, #tpu.memory_space<vmem>>, vector<8x128xf32>
    tpu.vector_store %arg24[%c8_49, %c0_50], %96 {strides = array<i32>} : memref<64x128xf32, #tpu.memory_space<vmem>>, vector<8x128xf32>,
    %c16 = arith.constant 16 : index
    %c0_51 = arith.constant 0 : index
    %98 = vector.load %arg25[%c16, %c0_51] : memref<64x512xf32, #tpu.memory_space<vmem>>, vector<8x512xf32>
    %c0_52 = arith.constant 0 : index
    %c0_53 = arith.constant 0 : index
    %99 = vector.load %arg8[%c0_52, %c0_53] : memref<128x512xf32, #tpu.memory_space<vmem>>, vector<128x512xf32>
    %cst_54 = arith.constant dense<0.000000e+00> : vector<8x512xf32>
    %100 = tpu.matmul %96, %99, %cst_54 {dimension_numbers = #tpu.dot_dimension_numbers<[1], [0], [0], [1], [0, 0, 1, 1], [], []>} : vector<8x128xf32>, vector<128x512xf32>, vector<8x512xf32> -> vector<8x512xf32>
    %101 = arith.addf %98, %100 : vector<8x512xf32>
    %102 = vector.extract_strided_slice %101 {offsets = [0, 0], sizes = [8, 128], strides = [1, 1]} : vector<8x512xf32> to vector<8x128xf32>
    %103 = arith.negf %102 : vector<8x128xf32>
    %104 = math.exp %103 : vector<8x128xf32>
    %cst_55 = arith.constant 1.000000e+00 : f32
    %105 = vector.broadcast %cst_55 : f32 to vector<8x128xf32>
    %106 = arith.addf %105, %104 : vector<8x128xf32>
    %107 = arith.divf %105, %106 : vector<8x128xf32>
    %108 = vector.extract_strided_slice %101 {offsets = [0, 128], sizes = [8, 128], strides = [1, 1]} : vector<8x512xf32> to vector<8x128xf32>
    %109 = arith.negf %108 : vector<8x128xf32>
    %110 = math.exp %109 : vector<8x128xf32>
    %cst_56 = arith.constant 1.000000e+00 : f32
    %111 = vector.broadcast %cst_56 : f32 to vector<8x128xf32>
    %112 = arith.addf %111, %110 : vector<8x128xf32>
    %113 = arith.divf %111, %112 : vector<8x128xf32>
    %114 = vector.extract_strided_slice %101 {offsets = [0, 256], sizes = [8, 128], strides = [1, 1]} : vector<8x512xf32> to vector<8x128xf32>
    %115 = math.tanh %114 : vector<8x128xf32>
    %116 = vector.extract_strided_slice %101 {offsets = [0, 384], sizes = [8, 128], strides = [1, 1]} : vector<8x512xf32> to vector<8x128xf32>
    %117 = arith.negf %116 : vector<8x128xf32>
    %118 = math.exp %117 : vector<8x128xf32>
    %cst_57 = arith.constant 1.000000e+00 : f32
    %119 = vector.broadcast %cst_57 : f32 to vector<8x128xf32>
    %120 = arith.addf %119, %118 : vector<8x128xf32>
    %121 = arith.divf %119, %120 : vector<8x128xf32>
    %122 = arith.mulf %113, %94 : vector<8x128xf32>
    %123 = arith.mulf %107, %115 : vector<8x128xf32>
    %124 = arith.addf %122, %123 : vector<8x128xf32>
    %125 = math.tanh %124 : vector<8x128xf32>
    %126 = arith.mulf %121, %125 : vector<8x128xf32>
    %c16_58 = arith.constant 16 : index
    %c0_59 = arith.constant 0 : index
    %127 = vector.load %arg24[%c16_58, %c0_59] : memref<64x128xf32, #tpu.memory_space<vmem>>, vector<8x128xf32>
    tpu.vector_store %arg24[%c16_58, %c0_59], %126 {strides = array<i32>} : memref<64x128xf32, #tpu.memory_space<vmem>>, vector<8x128xf32>,
    %c24 = arith.constant 24 : index
    %c0_60 = arith.constant 0 : index
    %128 = vector.load %arg25[%c24, %c0_60] : memref<64x512xf32, #tpu.memory_space<vmem>>, vector<8x512xf32>
    %c0_61 = arith.constant 0 : index
    %c0_62 = arith.constant 0 : index
    %129 = vector.load %arg8[%c0_61, %c0_62] : memref<128x512xf32, #tpu.memory_space<vmem>>, vector<128x512xf32>
    %cst_63 = arith.constant dense<0.000000e+00> : vector<8x512xf32>
    %130 = tpu.matmul %126, %129, %cst_63 {dimension_numbers = #tpu.dot_dimension_numbers<[1], [0], [0], [1], [0, 0, 1, 1], [], []>} : vector<8x128xf32>, vector<128x512xf32>, vector<8x512xf32> -> vector<8x512xf32>
    %131 = arith.addf %128, %130 : vector<8x512xf32>
    %132 = vector.extract_strided_slice %131 {offsets = [0, 0], sizes = [8, 128], strides = [1, 1]} : vector<8x512xf32> to vector<8x128xf32>
    %133 = arith.negf %132 : vector<8x128xf32>
    %134 = math.exp %133 : vector<8x128xf32>
    %cst_64 = arith.constant 1.000000e+00 : f32
    %135 = vector.broadcast %cst_64 : f32 to vector<8x128xf32>
    %136 = arith.addf %135, %134 : vector<8x128xf32>
    %137 = arith.divf %135, %136 : vector<8x128xf32>
    %138 = vector.extract_strided_slice %131 {offsets = [0, 128], sizes = [8, 128], strides = [1, 1]} : vector<8x512xf32> to vector<8x128xf32>
    %139 = arith.negf %138 : vector<8x128xf32>
    %140 = math.exp %139 : vector<8x128xf32>
    %cst_65 = arith.constant 1.000000e+00 : f32
    %141 = vector.broadcast %cst_65 : f32 to vector<8x128xf32>
    %142 = arith.addf %141, %140 : vector<8x128xf32>
    %143 = arith.divf %141, %142 : vector<8x128xf32>
    %144 = vector.extract_strided_slice %131 {offsets = [0, 256], sizes = [8, 128], strides = [1, 1]} : vector<8x512xf32> to vector<8x128xf32>
    %145 = math.tanh %144 : vector<8x128xf32>
    %146 = vector.extract_strided_slice %131 {offsets = [0, 384], sizes = [8, 128], strides = [1, 1]} : vector<8x512xf32> to vector<8x128xf32>
    %147 = arith.negf %146 : vector<8x128xf32>
    %148 = math.exp %147 : vector<8x128xf32>
    %cst_66 = arith.constant 1.000000e+00 : f32
    %149 = vector.broadcast %cst_66 : f32 to vector<8x128xf32>
    %150 = arith.addf %149, %148 : vector<8x128xf32>
    %151 = arith.divf %149, %150 : vector<8x128xf32>
    %152 = arith.mulf %143, %124 : vector<8x128xf32>
    %153 = arith.mulf %137, %145 : vector<8x128xf32>
    %154 = arith.addf %152, %153 : vector<8x128xf32>
    %155 = math.tanh %154 : vector<8x128xf32>
    %156 = arith.mulf %151, %155 : vector<8x128xf32>
    %c24_67 = arith.constant 24 : index
    %c0_68 = arith.constant 0 : index
    %157 = vector.load %arg24[%c24_67, %c0_68] : memref<64x128xf32, #tpu.memory_space<vmem>>, vector<8x128xf32>
    tpu.vector_store %arg24[%c24_67, %c0_68], %156 {strides = array<i32>} : memref<64x128xf32, #tpu.memory_space<vmem>>, vector<8x128xf32>,
    %c32 = arith.constant 32 : index
    %c0_69 = arith.constant 0 : index
    %158 = vector.load %arg25[%c32, %c0_69] : memref<64x512xf32, #tpu.memory_space<vmem>>, vector<8x512xf32>
    %c0_70 = arith.constant 0 : index
    %c0_71 = arith.constant 0 : index
    %159 = vector.load %arg8[%c0_70, %c0_71] : memref<128x512xf32, #tpu.memory_space<vmem>>, vector<128x512xf32>
    %cst_72 = arith.constant dense<0.000000e+00> : vector<8x512xf32>
    %160 = tpu.matmul %156, %159, %cst_72 {dimension_numbers = #tpu.dot_dimension_numbers<[1], [0], [0], [1], [0, 0, 1, 1], [], []>} : vector<8x128xf32>, vector<128x512xf32>, vector<8x512xf32> -> vector<8x512xf32>
    %161 = arith.addf %158, %160 : vector<8x512xf32>
    %162 = vector.extract_strided_slice %161 {offsets = [0, 0], sizes = [8, 128], strides = [1, 1]} : vector<8x512xf32> to vector<8x128xf32>
    %163 = arith.negf %162 : vector<8x128xf32>
    %164 = math.exp %163 : vector<8x128xf32>
    %cst_73 = arith.constant 1.000000e+00 : f32
    %165 = vector.broadcast %cst_73 : f32 to vector<8x128xf32>
    %166 = arith.addf %165, %164 : vector<8x128xf32>
    %167 = arith.divf %165, %166 : vector<8x128xf32>
    %168 = vector.extract_strided_slice %161 {offsets = [0, 128], sizes = [8, 128], strides = [1, 1]} : vector<8x512xf32> to vector<8x128xf32>
    %169 = arith.negf %168 : vector<8x128xf32>
    %170 = math.exp %169 : vector<8x128xf32>
    %cst_74 = arith.constant 1.000000e+00 : f32
    %171 = vector.broadcast %cst_74 : f32 to vector<8x128xf32>
    %172 = arith.addf %171, %170 : vector<8x128xf32>
    %173 = arith.divf %171, %172 : vector<8x128xf32>
    %174 = vector.extract_strided_slice %161 {offsets = [0, 256], sizes = [8, 128], strides = [1, 1]} : vector<8x512xf32> to vector<8x128xf32>
    %175 = math.tanh %174 : vector<8x128xf32>
    %176 = vector.extract_strided_slice %161 {offsets = [0, 384], sizes = [8, 128], strides = [1, 1]} : vector<8x512xf32> to vector<8x128xf32>
    %177 = arith.negf %176 : vector<8x128xf32>
    %178 = math.exp %177 : vector<8x128xf32>
    %cst_75 = arith.constant 1.000000e+00 : f32
    %179 = vector.broadcast %cst_75 : f32 to vector<8x128xf32>
    %180 = arith.addf %179, %178 : vector<8x128xf32>
    %181 = arith.divf %179, %180 : vector<8x128xf32>
    %182 = arith.mulf %173, %154 : vector<8x128xf32>
    %183 = arith.mulf %167, %175 : vector<8x128xf32>
    %184 = arith.addf %182, %183 : vector<8x128xf32>
    %185 = math.tanh %184 : vector<8x128xf32>
    %186 = arith.mulf %181, %185 : vector<8x128xf32>
    %c32_76 = arith.constant 32 : index
    %c0_77 = arith.constant 0 : index
    %187 = vector.load %arg24[%c32_76, %c0_77] : memref<64x128xf32, #tpu.memory_space<vmem>>, vector<8x128xf32>
    tpu.vector_store %arg24[%c32_76, %c0_77], %186 {strides = array<i32>} : memref<64x128xf32, #tpu.memory_space<vmem>>, vector<8x128xf32>,
    %c40 = arith.constant 40 : index
    %c0_78 = arith.constant 0 : index
    %188 = vector.load %arg25[%c40, %c0_78] : memref<64x512xf32, #tpu.memory_space<vmem>>, vector<8x512xf32>
    %c0_79 = arith.constant 0 : index
    %c0_80 = arith.constant 0 : index
    %189 = vector.load %arg8[%c0_79, %c0_80] : memref<128x512xf32, #tpu.memory_space<vmem>>, vector<128x512xf32>
    %cst_81 = arith.constant dense<0.000000e+00> : vector<8x512xf32>
    %190 = tpu.matmul %186, %189, %cst_81 {dimension_numbers = #tpu.dot_dimension_numbers<[1], [0], [0], [1], [0, 0, 1, 1], [], []>} : vector<8x128xf32>, vector<128x512xf32>, vector<8x512xf32> -> vector<8x512xf32>
    %191 = arith.addf %188, %190 : vector<8x512xf32>
    %192 = vector.extract_strided_slice %191 {offsets = [0, 0], sizes = [8, 128], strides = [1, 1]} : vector<8x512xf32> to vector<8x128xf32>
    %193 = arith.negf %192 : vector<8x128xf32>
    %194 = math.exp %193 : vector<8x128xf32>
    %cst_82 = arith.constant 1.000000e+00 : f32
    %195 = vector.broadcast %cst_82 : f32 to vector<8x128xf32>
    %196 = arith.addf %195, %194 : vector<8x128xf32>
    %197 = arith.divf %195, %196 : vector<8x128xf32>
    %198 = vector.extract_strided_slice %191 {offsets = [0, 128], sizes = [8, 128], strides = [1, 1]} : vector<8x512xf32> to vector<8x128xf32>
    %199 = arith.negf %198 : vector<8x128xf32>
    %200 = math.exp %199 : vector<8x128xf32>
    %cst_83 = arith.constant 1.000000e+00 : f32
    %201 = vector.broadcast %cst_83 : f32 to vector<8x128xf32>
    %202 = arith.addf %201, %200 : vector<8x128xf32>
    %203 = arith.divf %201, %202 : vector<8x128xf32>
    %204 = vector.extract_strided_slice %191 {offsets = [0, 256], sizes = [8, 128], strides = [1, 1]} : vector<8x512xf32> to vector<8x128xf32>
    %205 = math.tanh %204 : vector<8x128xf32>
    %206 = vector.extract_strided_slice %191 {offsets = [0, 384], sizes = [8, 128], strides = [1, 1]} : vector<8x512xf32> to vector<8x128xf32>
    %207 = arith.negf %206 : vector<8x128xf32>
    %208 = math.exp %207 : vector<8x128xf32>
    %cst_84 = arith.constant 1.000000e+00 : f32
    %209 = vector.broadcast %cst_84 : f32 to vector<8x128xf32>
    %210 = arith.addf %209, %208 : vector<8x128xf32>
    %211 = arith.divf %209, %210 : vector<8x128xf32>
    %212 = arith.mulf %203, %184 : vector<8x128xf32>
    %213 = arith.mulf %197, %205 : vector<8x128xf32>
    %214 = arith.addf %212, %213 : vector<8x128xf32>
    %215 = math.tanh %214 : vector<8x128xf32>
    %216 = arith.mulf %211, %215 : vector<8x128xf32>
    %c40_85 = arith.constant 40 : index
    %c0_86 = arith.constant 0 : index
    %217 = vector.load %arg24[%c40_85, %c0_86] : memref<64x128xf32, #tpu.memory_space<vmem>>, vector<8x128xf32>
    tpu.vector_store %arg24[%c40_85, %c0_86], %216 {strides = array<i32>} : memref<64x128xf32, #tpu.memory_space<vmem>>, vector<8x128xf32>,
    %c48_87 = arith.constant 48 : index
    %c0_88 = arith.constant 0 : index
    %218 = vector.load %arg25[%c48_87, %c0_88] : memref<64x512xf32, #tpu.memory_space<vmem>>, vector<8x512xf32>
    %c0_89 = arith.constant 0 : index
    %c0_90 = arith.constant 0 : index
    %219 = vector.load %arg8[%c0_89, %c0_90] : memref<128x512xf32, #tpu.memory_space<vmem>>, vector<128x512xf32>
    %cst_91 = arith.constant dense<0.000000e+00> : vector<8x512xf32>
    %220 = tpu.matmul %216, %219, %cst_91 {dimension_numbers = #tpu.dot_dimension_numbers<[1], [0], [0], [1], [0, 0, 1, 1], [], []>} : vector<8x128xf32>, vector<128x512xf32>, vector<8x512xf32> -> vector<8x512xf32>
    %221 = arith.addf %218, %220 : vector<8x512xf32>
    %222 = vector.extract_strided_slice %221 {offsets = [0, 0], sizes = [8, 128], strides = [1, 1]} : vector<8x512xf32> to vector<8x128xf32>
    %223 = arith.negf %222 : vector<8x128xf32>
    %224 = math.exp %223 : vector<8x128xf32>
    %cst_92 = arith.constant 1.000000e+00 : f32
    %225 = vector.broadcast %cst_92 : f32 to vector<8x128xf32>
    %226 = arith.addf %225, %224 : vector<8x128xf32>
    %227 = arith.divf %225, %226 : vector<8x128xf32>
    %228 = vector.extract_strided_slice %221 {offsets = [0, 128], sizes = [8, 128], strides = [1, 1]} : vector<8x512xf32> to vector<8x128xf32>
    %229 = arith.negf %228 : vector<8x128xf32>
    %230 = math.exp %229 : vector<8x128xf32>
    %cst_93 = arith.constant 1.000000e+00 : f32
    %231 = vector.broadcast %cst_93 : f32 to vector<8x128xf32>
    %232 = arith.addf %231, %230 : vector<8x128xf32>
    %233 = arith.divf %231, %232 : vector<8x128xf32>
    %234 = vector.extract_strided_slice %221 {offsets = [0, 256], sizes = [8, 128], strides = [1, 1]} : vector<8x512xf32> to vector<8x128xf32>
    %235 = math.tanh %234 : vector<8x128xf32>
    %236 = vector.extract_strided_slice %221 {offsets = [0, 384], sizes = [8, 128], strides = [1, 1]} : vector<8x512xf32> to vector<8x128xf32>
    %237 = arith.negf %236 : vector<8x128xf32>
    %238 = math.exp %237 : vector<8x128xf32>
    %cst_94 = arith.constant 1.000000e+00 : f32
    %239 = vector.broadcast %cst_94 : f32 to vector<8x128xf32>
    %240 = arith.addf %239, %238 : vector<8x128xf32>
    %241 = arith.divf %239, %240 : vector<8x128xf32>
    %242 = arith.mulf %233, %214 : vector<8x128xf32>
    %243 = arith.mulf %227, %235 : vector<8x128xf32>
    %244 = arith.addf %242, %243 : vector<8x128xf32>
    %245 = math.tanh %244 : vector<8x128xf32>
    %246 = arith.mulf %241, %245 : vector<8x128xf32>
    %c48_95 = arith.constant 48 : index
    %c0_96 = arith.constant 0 : index
    %247 = vector.load %arg24[%c48_95, %c0_96] : memref<64x128xf32, #tpu.memory_space<vmem>>, vector<8x128xf32>
    tpu.vector_store %arg24[%c48_95, %c0_96], %246 {strides = array<i32>} : memref<64x128xf32, #tpu.memory_space<vmem>>, vector<8x128xf32>,
    %c56 = arith.constant 56 : index
    %c0_97 = arith.constant 0 : index
    %248 = vector.load %arg25[%c56, %c0_97] : memref<64x512xf32, #tpu.memory_space<vmem>>, vector<8x512xf32>
    %c0_98 = arith.constant 0 : index
    %c0_99 = arith.constant 0 : index
    %249 = vector.load %arg8[%c0_98, %c0_99] : memref<128x512xf32, #tpu.memory_space<vmem>>, vector<128x512xf32>
    %cst_100 = arith.constant dense<0.000000e+00> : vector<8x512xf32>
    %250 = tpu.matmul %246, %249, %cst_100 {dimension_numbers = #tpu.dot_dimension_numbers<[1], [0], [0], [1], [0, 0, 1, 1], [], []>} : vector<8x128xf32>, vector<128x512xf32>, vector<8x512xf32> -> vector<8x512xf32>
    %251 = arith.addf %248, %250 : vector<8x512xf32>
    %252 = vector.extract_strided_slice %251 {offsets = [0, 0], sizes = [8, 128], strides = [1, 1]} : vector<8x512xf32> to vector<8x128xf32>
    %253 = arith.negf %252 : vector<8x128xf32>
    %254 = math.exp %253 : vector<8x128xf32>
    %cst_101 = arith.constant 1.000000e+00 : f32
    %255 = vector.broadcast %cst_101 : f32 to vector<8x128xf32>
    %256 = arith.addf %255, %254 : vector<8x128xf32>
    %257 = arith.divf %255, %256 : vector<8x128xf32>
    %258 = vector.extract_strided_slice %251 {offsets = [0, 128], sizes = [8, 128], strides = [1, 1]} : vector<8x512xf32> to vector<8x128xf32>
    %259 = arith.negf %258 : vector<8x128xf32>
    %260 = math.exp %259 : vector<8x128xf32>
    %cst_102 = arith.constant 1.000000e+00 : f32
    %261 = vector.broadcast %cst_102 : f32 to vector<8x128xf32>
    %262 = arith.addf %261, %260 : vector<8x128xf32>
    %263 = arith.divf %261, %262 : vector<8x128xf32>
    %264 = vector.extract_strided_slice %251 {offsets = [0, 256], sizes = [8, 128], strides = [1, 1]} : vector<8x512xf32> to vector<8x128xf32>
    %265 = math.tanh %264 : vector<8x128xf32>
    %266 = vector.extract_strided_slice %251 {offsets = [0, 384], sizes = [8, 128], strides = [1, 1]} : vector<8x512xf32> to vector<8x128xf32>
    %267 = arith.negf %266 : vector<8x128xf32>
    %268 = math.exp %267 : vector<8x128xf32>
    %cst_103 = arith.constant 1.000000e+00 : f32
    %269 = vector.broadcast %cst_103 : f32 to vector<8x128xf32>
    %270 = arith.addf %269, %268 : vector<8x128xf32>
    %271 = arith.divf %269, %270 : vector<8x128xf32>
    %272 = arith.mulf %263, %244 : vector<8x128xf32>
    %273 = arith.mulf %257, %265 : vector<8x128xf32>
    %274 = arith.addf %272, %273 : vector<8x128xf32>
    %275 = math.tanh %274 : vector<8x128xf32>
    %276 = arith.mulf %271, %275 : vector<8x128xf32>
    %c56_104 = arith.constant 56 : index
    %c0_105 = arith.constant 0 : index
    %277 = vector.load %arg24[%c56_104, %c0_105] : memref<64x128xf32, #tpu.memory_space<vmem>>, vector<8x128xf32>
    tpu.vector_store %arg24[%c56_104, %c0_105], %276 {strides = array<i32>} : memref<64x128xf32, #tpu.memory_space<vmem>>, vector<8x128xf32>,
    %c0_106 = arith.constant 0 : index
    %c0_107 = arith.constant 0 : index
    %c0_108 = arith.constant 0 : index
    %278 = vector.load %arg21[%c0_106, %c0_107, %c0_108] : memref<2x8x128xf32, #tpu.memory_space<vmem>>, vector<1x8x128xf32>
    %279 = vector.shape_cast %278 : vector<1x8x128xf32> to vector<8x128xf32>
    %280 = vector.shape_cast %276 : vector<8x128xf32> to vector<1x8x128xf32>
    tpu.vector_store %arg21[%c0_106, %c0_107, %c0_108], %280 {strides = array<i32>} : memref<2x8x128xf32, #tpu.memory_space<vmem>>, vector<1x8x128xf32>,
    %c0_109 = arith.constant 0 : index
    %c0_110 = arith.constant 0 : index
    %c0_111 = arith.constant 0 : index
    %281 = vector.load %arg22[%c0_109, %c0_110, %c0_111] : memref<2x8x128xf32, #tpu.memory_space<vmem>>, vector<1x8x128xf32>
    %282 = vector.shape_cast %281 : vector<1x8x128xf32> to vector<8x128xf32>
    %283 = vector.shape_cast %274 : vector<8x128xf32> to vector<1x8x128xf32>
    tpu.vector_store %arg22[%c0_109, %c0_110, %c0_111], %283 {strides = array<i32>} : memref<2x8x128xf32, #tpu.memory_space<vmem>>, vector<1x8x128xf32>,
    %c0_112 = arith.constant 0 : index
    %c0_113 = arith.constant 0 : index
    %284 = vector.load %arg24[%c0_112, %c0_113] : memref<64x128xf32, #tpu.memory_space<vmem>>, vector<64x128xf32>
    %c0_114 = arith.constant 0 : index
    %c0_115 = arith.constant 0 : index
    %285 = vector.load %arg10[%c0_114, %c0_115] : memref<128x512xf32, #tpu.memory_space<vmem>>, vector<128x512xf32>
    %cst_116 = arith.constant dense<0.000000e+00> : vector<64x512xf32>
    %286 = tpu.matmul %284, %285, %cst_116 {dimension_numbers = #tpu.dot_dimension_numbers<[1], [0], [0], [1], [0, 0, 1, 1], [], []>} : vector<64x128xf32>, vector<128x512xf32>, vector<64x512xf32> -> vector<64x512xf32>
    %c0_117 = arith.constant 0 : index
    %c0_118 = arith.constant 0 : index
    %287 = vector.load %arg12[%c0_117, %c0_118] : memref<1x512xf32, #tpu.memory_space<vmem>>, vector<1x512xf32>
    %288 = vector.broadcast %287 : vector<1x512xf32> to vector<64x512xf32>
    %289 = arith.addf %286, %288 : vector<64x512xf32>
    %c0_119 = arith.constant 0 : index
    %c0_120 = arith.constant 0 : index
    %290 = vector.load %arg25[%c0_119, %c0_120] : memref<64x512xf32, #tpu.memory_space<vmem>>, vector<64x512xf32>
    tpu.vector_store %arg25[%c0_119, %c0_120], %289 {strides = array<i32>} : memref<64x512xf32, #tpu.memory_space<vmem>>, vector<64x512xf32>,
    %c1 = arith.constant 1 : index
    %c0_121 = arith.constant 0 : index
    %c0_122 = arith.constant 0 : index
    %291 = vector.load %arg15[%c1, %c0_121, %c0_122] : memref<2x8x128xf32, #tpu.memory_space<vmem>>, vector<1x8x128xf32>
    %292 = vector.shape_cast %291 : vector<1x8x128xf32> to vector<8x128xf32>
    %c1_123 = arith.constant 1 : index
    %c0_124 = arith.constant 0 : index
    %c0_125 = arith.constant 0 : index
    %293 = vector.load %arg16[%c1_123, %c0_124, %c0_125] : memref<2x8x128xf32, #tpu.memory_space<vmem>>, vector<1x8x128xf32>
    %294 = vector.shape_cast %293 : vector<1x8x128xf32> to vector<8x128xf32>
    %c0_126 = arith.constant 0 : index
    %c0_127 = arith.constant 0 : index
    %295 = vector.load %arg25[%c0_126, %c0_127] : memref<64x512xf32, #tpu.memory_space<vmem>>, vector<8x512xf32>
    %c0_128 = arith.constant 0 : index
    %c0_129 = arith.constant 0 : index
    %296 = vector.load %arg11[%c0_128, %c0_129] : memref<128x512xf32, #tpu.memory_space<vmem>>, vector<128x512xf32>
    %cst_130 = arith.constant dense<0.000000e+00> : vector<8x512xf32>
    %297 = tpu.matmul %292, %296, %cst_130 {dimension_numbers = #tpu.dot_dimension_numbers<[1], [0], [0], [1], [0, 0, 1, 1], [], []>} : vector<8x128xf32>, vector<128x512xf32>, vector<8x512xf32> -> vector<8x512xf32>
    %298 = arith.addf %295, %297 : vector<8x512xf32>
    %299 = vector.extract_strided_slice %298 {offsets = [0, 0], sizes = [8, 128], strides = [1, 1]} : vector<8x512xf32> to vector<8x128xf32>
    %300 = arith.negf %299 : vector<8x128xf32>
    %301 = math.exp %300 : vector<8x128xf32>
    %cst_131 = arith.constant 1.000000e+00 : f32
    %302 = vector.broadcast %cst_131 : f32 to vector<8x128xf32>
    %303 = arith.addf %302, %301 : vector<8x128xf32>
    %304 = arith.divf %302, %303 : vector<8x128xf32>
    %305 = vector.extract_strided_slice %298 {offsets = [0, 128], sizes = [8, 128], strides = [1, 1]} : vector<8x512xf32> to vector<8x128xf32>
    %306 = arith.negf %305 : vector<8x128xf32>
    %307 = math.exp %306 : vector<8x128xf32>
    %cst_132 = arith.constant 1.000000e+00 : f32
    %308 = vector.broadcast %cst_132 : f32 to vector<8x128xf32>
    %309 = arith.addf %308, %307 : vector<8x128xf32>
    %310 = arith.divf %308, %309 : vector<8x128xf32>
    %311 = vector.extract_strided_slice %298 {offsets = [0, 256], sizes = [8, 128], strides = [1, 1]} : vector<8x512xf32> to vector<8x128xf32>
    %312 = math.tanh %311 : vector<8x128xf32>
    %313 = vector.extract_strided_slice %298 {offsets = [0, 384], sizes = [8, 128], strides = [1, 1]} : vector<8x512xf32> to vector<8x128xf32>
    %314 = arith.negf %313 : vector<8x128xf32>
    %315 = math.exp %314 : vector<8x128xf32>
    %cst_133 = arith.constant 1.000000e+00 : f32
    %316 = vector.broadcast %cst_133 : f32 to vector<8x128xf32>
    %317 = arith.addf %316, %315 : vector<8x128xf32>
    %318 = arith.divf %316, %317 : vector<8x128xf32>
    %319 = arith.mulf %310, %294 : vector<8x128xf32>
    %320 = arith.mulf %304, %312 : vector<8x128xf32>
    %321 = arith.addf %319, %320 : vector<8x128xf32>
    %322 = math.tanh %321 : vector<8x128xf32>
    %323 = arith.mulf %318, %322 : vector<8x128xf32>
    %324 = vector.extract_strided_slice %323 {offsets = [0, 0], sizes = [1, 128], strides = [1, 1]} : vector<8x128xf32> to vector<1x128xf32>
    %c0_134 = arith.constant 0 : index
    %c0_135 = arith.constant 0 : index
    %325 = vector.load %arg17[%c0_134, %c0_135] : memref<64x128xf32, #tpu.memory_space<vmem>>, vector<1x128xf32>
    tpu.vector_store %arg17[%c0_134, %c0_135], %324 {strides = array<i32>} : memref<64x128xf32, #tpu.memory_space<vmem>>, vector<1x128xf32>,
    %326 = vector.extract_strided_slice %323 {offsets = [1, 0], sizes = [1, 128], strides = [1, 1]} : vector<8x128xf32> to vector<1x128xf32>
    %c8_136 = arith.constant 8 : index
    %c0_137 = arith.constant 0 : index
    %327 = vector.load %arg17[%c8_136, %c0_137] : memref<64x128xf32, #tpu.memory_space<vmem>>, vector<1x128xf32>
    tpu.vector_store %arg17[%c8_136, %c0_137], %326 {strides = array<i32>} : memref<64x128xf32, #tpu.memory_space<vmem>>, vector<1x128xf32>,
    %328 = vector.extract_strided_slice %323 {offsets = [2, 0], sizes = [1, 128], strides = [1, 1]} : vector<8x128xf32> to vector<1x128xf32>
    %c16_138 = arith.constant 16 : index
    %c0_139 = arith.constant 0 : index
    %329 = vector.load %arg17[%c16_138, %c0_139] : memref<64x128xf32, #tpu.memory_space<vmem>>, vector<1x128xf32>
    tpu.vector_store %arg17[%c16_138, %c0_139], %328 {strides = array<i32>} : memref<64x128xf32, #tpu.memory_space<vmem>>, vector<1x128xf32>,
    %330 = vector.extract_strided_slice %323 {offsets = [3, 0], sizes = [1, 128], strides = [1, 1]} : vector<8x128xf32> to vector<1x128xf32>
    %c24_140 = arith.constant 24 : index
    %c0_141 = arith.constant 0 : index
    %331 = vector.load %arg17[%c24_140, %c0_141] : memref<64x128xf32, #tpu.memory_space<vmem>>, vector<1x128xf32>
    tpu.vector_store %arg17[%c24_140, %c0_141], %330 {strides = array<i32>} : memref<64x128xf32, #tpu.memory_space<vmem>>, vector<1x128xf32>,
    %332 = vector.extract_strided_slice %323 {offsets = [4, 0], sizes = [1, 128], strides = [1, 1]} : vector<8x128xf32> to vector<1x128xf32>
    %c32_142 = arith.constant 32 : index
    %c0_143 = arith.constant 0 : index
    %333 = vector.load %arg17[%c32_142, %c0_143] : memref<64x128xf32, #tpu.memory_space<vmem>>, vector<1x128xf32>
    tpu.vector_store %arg17[%c32_142, %c0_143], %332 {strides = array<i32>} : memref<64x128xf32, #tpu.memory_space<vmem>>, vector<1x128xf32>,
    %334 = vector.extract_strided_slice %323 {offsets = [5, 0], sizes = [1, 128], strides = [1, 1]} : vector<8x128xf32> to vector<1x128xf32>
    %c40_144 = arith.constant 40 : index
    %c0_145 = arith.constant 0 : index
    %335 = vector.load %arg17[%c40_144, %c0_145] : memref<64x128xf32, #tpu.memory_space<vmem>>, vector<1x128xf32>
    tpu.vector_store %arg17[%c40_144, %c0_145], %334 {strides = array<i32>} : memref<64x128xf32, #tpu.memory_space<vmem>>, vector<1x128xf32>,
    %336 = vector.extract_strided_slice %323 {offsets = [6, 0], sizes = [1, 128], strides = [1, 1]} : vector<8x128xf32> to vector<1x128xf32>
    %c48_146 = arith.constant 48 : index
    %c0_147 = arith.constant 0 : index
    %337 = vector.load %arg17[%c48_146, %c0_147] : memref<64x128xf32, #tpu.memory_space<vmem>>, vector<1x128xf32>
    tpu.vector_store %arg17[%c48_146, %c0_147], %336 {strides = array<i32>} : memref<64x128xf32, #tpu.memory_space<vmem>>, vector<1x128xf32>,
    %338 = vector.extract_strided_slice %323 {offsets = [7, 0], sizes = [1, 128], strides = [1, 1]} : vector<8x128xf32> to vector<1x128xf32>
    %c56_148 = arith.constant 56 : index
    %c0_149 = arith.constant 0 : index
    %339 = vector.load %arg17[%c56_148, %c0_149] : memref<64x128xf32, #tpu.memory_space<vmem>>, vector<1x128xf32>
    tpu.vector_store %arg17[%c56_148, %c0_149], %338 {strides = array<i32>} : memref<64x128xf32, #tpu.memory_space<vmem>>, vector<1x128xf32>,
    %c8_150 = arith.constant 8 : index
    %c0_151 = arith.constant 0 : index
    %340 = vector.load %arg25[%c8_150, %c0_151] : memref<64x512xf32, #tpu.memory_space<vmem>>, vector<8x512xf32>
    %c0_152 = arith.constant 0 : index
    %c0_153 = arith.constant 0 : index
    %341 = vector.load %arg11[%c0_152, %c0_153] : memref<128x512xf32, #tpu.memory_space<vmem>>, vector<128x512xf32>
    %cst_154 = arith.constant dense<0.000000e+00> : vector<8x512xf32>
    %342 = tpu.matmul %323, %341, %cst_154 {dimension_numbers = #tpu.dot_dimension_numbers<[1], [0], [0], [1], [0, 0, 1, 1], [], []>} : vector<8x128xf32>, vector<128x512xf32>, vector<8x512xf32> -> vector<8x512xf32>
    %343 = arith.addf %340, %342 : vector<8x512xf32>
    %344 = vector.extract_strided_slice %343 {offsets = [0, 0], sizes = [8, 128], strides = [1, 1]} : vector<8x512xf32> to vector<8x128xf32>
    %345 = arith.negf %344 : vector<8x128xf32>
    %346 = math.exp %345 : vector<8x128xf32>
    %cst_155 = arith.constant 1.000000e+00 : f32
    %347 = vector.broadcast %cst_155 : f32 to vector<8x128xf32>
    %348 = arith.addf %347, %346 : vector<8x128xf32>
    %349 = arith.divf %347, %348 : vector<8x128xf32>
    %350 = vector.extract_strided_slice %343 {offsets = [0, 128], sizes = [8, 128], strides = [1, 1]} : vector<8x512xf32> to vector<8x128xf32>
    %351 = arith.negf %350 : vector<8x128xf32>
    %352 = math.exp %351 : vector<8x128xf32>
    %cst_156 = arith.constant 1.000000e+00 : f32
    %353 = vector.broadcast %cst_156 : f32 to vector<8x128xf32>
    %354 = arith.addf %353, %352 : vector<8x128xf32>
    %355 = arith.divf %353, %354 : vector<8x128xf32>
    %356 = vector.extract_strided_slice %343 {offsets = [0, 256], sizes = [8, 128], strides = [1, 1]} : vector<8x512xf32> to vector<8x128xf32>
    %357 = math.tanh %356 : vector<8x128xf32>
    %358 = vector.extract_strided_slice %343 {offsets = [0, 384], sizes = [8, 128], strides = [1, 1]} : vector<8x512xf32> to vector<8x128xf32>
    %359 = arith.negf %358 : vector<8x128xf32>
    %360 = math.exp %359 : vector<8x128xf32>
    %cst_157 = arith.constant 1.000000e+00 : f32
    %361 = vector.broadcast %cst_157 : f32 to vector<8x128xf32>
    %362 = arith.addf %361, %360 : vector<8x128xf32>
    %363 = arith.divf %361, %362 : vector<8x128xf32>
    %364 = arith.mulf %355, %321 : vector<8x128xf32>
    %365 = arith.mulf %349, %357 : vector<8x128xf32>
    %366 = arith.addf %364, %365 : vector<8x128xf32>
    %367 = math.tanh %366 : vector<8x128xf32>
    %368 = arith.mulf %363, %367 : vector<8x128xf32>
    %369 = vector.extract_strided_slice %368 {offsets = [0, 0], sizes = [1, 128], strides = [1, 1]} : vector<8x128xf32> to vector<1x128xf32>
    %c1_158 = arith.constant 1 : index
    %c0_159 = arith.constant 0 : index
    %370 = vector.load %arg17[%c1_158, %c0_159] : memref<64x128xf32, #tpu.memory_space<vmem>>, vector<1x128xf32>
    tpu.vector_store %arg17[%c1_158, %c0_159], %369 {strides = array<i32>} : memref<64x128xf32, #tpu.memory_space<vmem>>, vector<1x128xf32>,
    %371 = vector.extract_strided_slice %368 {offsets = [1, 0], sizes = [1, 128], strides = [1, 1]} : vector<8x128xf32> to vector<1x128xf32>
    %c9 = arith.constant 9 : index
    %c0_160 = arith.constant 0 : index
    %372 = vector.load %arg17[%c9, %c0_160] : memref<64x128xf32, #tpu.memory_space<vmem>>, vector<1x128xf32>
    tpu.vector_store %arg17[%c9, %c0_160], %371 {strides = array<i32>} : memref<64x128xf32, #tpu.memory_space<vmem>>, vector<1x128xf32>,
    %373 = vector.extract_strided_slice %368 {offsets = [2, 0], sizes = [1, 128], strides = [1, 1]} : vector<8x128xf32> to vector<1x128xf32>
    %c17 = arith.constant 17 : index
    %c0_161 = arith.constant 0 : index
    %374 = vector.load %arg17[%c17, %c0_161] : memref<64x128xf32, #tpu.memory_space<vmem>>, vector<1x128xf32>
    tpu.vector_store %arg17[%c17, %c0_161], %373 {strides = array<i32>} : memref<64x128xf32, #tpu.memory_space<vmem>>, vector<1x128xf32>,
    %375 = vector.extract_strided_slice %368 {offsets = [3, 0], sizes = [1, 128], strides = [1, 1]} : vector<8x128xf32> to vector<1x128xf32>
    %c25 = arith.constant 25 : index
    %c0_162 = arith.constant 0 : index
    %376 = vector.load %arg17[%c25, %c0_162] : memref<64x128xf32, #tpu.memory_space<vmem>>, vector<1x128xf32>
    tpu.vector_store %arg17[%c25, %c0_162], %375 {strides = array<i32>} : memref<64x128xf32, #tpu.memory_space<vmem>>, vector<1x128xf32>,
    %377 = vector.extract_strided_slice %368 {offsets = [4, 0], sizes = [1, 128], strides = [1, 1]} : vector<8x128xf32> to vector<1x128xf32>
    %c33 = arith.constant 33 : index
    %c0_163 = arith.constant 0 : index
    %378 = vector.load %arg17[%c33, %c0_163] : memref<64x128xf32, #tpu.memory_space<vmem>>, vector<1x128xf32>
    tpu.vector_store %arg17[%c33, %c0_163], %377 {strides = array<i32>} : memref<64x128xf32, #tpu.memory_space<vmem>>, vector<1x128xf32>,
    %379 = vector.extract_strided_slice %368 {offsets = [5, 0], sizes = [1, 128], strides = [1, 1]} : vector<8x128xf32> to vector<1x128xf32>
    %c41 = arith.constant 41 : index
    %c0_164 = arith.constant 0 : index
    %380 = vector.load %arg17[%c41, %c0_164] : memref<64x128xf32, #tpu.memory_space<vmem>>, vector<1x128xf32>
    tpu.vector_store %arg17[%c41, %c0_164], %379 {strides = array<i32>} : memref<64x128xf32, #tpu.memory_space<vmem>>, vector<1x128xf32>,
    %381 = vector.extract_strided_slice %368 {offsets = [6, 0], sizes = [1, 128], strides = [1, 1]} : vector<8x128xf32> to vector<1x128xf32>
    %c49 = arith.constant 49 : index
    %c0_165 = arith.constant 0 : index
    %382 = vector.load %arg17[%c49, %c0_165] : memref<64x128xf32, #tpu.memory_space<vmem>>, vector<1x128xf32>
    tpu.vector_store %arg17[%c49, %c0_165], %381 {strides = array<i32>} : memref<64x128xf32, #tpu.memory_space<vmem>>, vector<1x128xf32>,
    %383 = vector.extract_strided_slice %368 {offsets = [7, 0], sizes = [1, 128], strides = [1, 1]} : vector<8x128xf32> to vector<1x128xf32>
    %c57 = arith.constant 57 : index
    %c0_166 = arith.constant 0 : index
    %384 = vector.load %arg17[%c57, %c0_166] : memref<64x128xf32, #tpu.memory_space<vmem>>, vector<1x128xf32>
    tpu.vector_store %arg17[%c57, %c0_166], %383 {strides = array<i32>} : memref<64x128xf32, #tpu.memory_space<vmem>>, vector<1x128xf32>,
    %c16_167 = arith.constant 16 : index
    %c0_168 = arith.constant 0 : index
    %385 = vector.load %arg25[%c16_167, %c0_168] : memref<64x512xf32, #tpu.memory_space<vmem>>, vector<8x512xf32>
    %c0_169 = arith.constant 0 : index
    %c0_170 = arith.constant 0 : index
    %386 = vector.load %arg11[%c0_169, %c0_170] : memref<128x512xf32, #tpu.memory_space<vmem>>, vector<128x512xf32>
    %cst_171 = arith.constant dense<0.000000e+00> : vector<8x512xf32>
    %387 = tpu.matmul %368, %386, %cst_171 {dimension_numbers = #tpu.dot_dimension_numbers<[1], [0], [0], [1], [0, 0, 1, 1], [], []>} : vector<8x128xf32>, vector<128x512xf32>, vector<8x512xf32> -> vector<8x512xf32>
    %388 = arith.addf %385, %387 : vector<8x512xf32>
    %389 = vector.extract_strided_slice %388 {offsets = [0, 0], sizes = [8, 128], strides = [1, 1]} : vector<8x512xf32> to vector<8x128xf32>
    %390 = arith.negf %389 : vector<8x128xf32>
    %391 = math.exp %390 : vector<8x128xf32>
    %cst_172 = arith.constant 1.000000e+00 : f32
    %392 = vector.broadcast %cst_172 : f32 to vector<8x128xf32>
    %393 = arith.addf %392, %391 : vector<8x128xf32>
    %394 = arith.divf %392, %393 : vector<8x128xf32>
    %395 = vector.extract_strided_slice %388 {offsets = [0, 128], sizes = [8, 128], strides = [1, 1]} : vector<8x512xf32> to vector<8x128xf32>
    %396 = arith.negf %395 : vector<8x128xf32>
    %397 = math.exp %396 : vector<8x128xf32>
    %cst_173 = arith.constant 1.000000e+00 : f32
    %398 = vector.broadcast %cst_173 : f32 to vector<8x128xf32>
    %399 = arith.addf %398, %397 : vector<8x128xf32>
    %400 = arith.divf %398, %399 : vector<8x128xf32>
    %401 = vector.extract_strided_slice %388 {offsets = [0, 256], sizes = [8, 128], strides = [1, 1]} : vector<8x512xf32> to vector<8x128xf32>
    %402 = math.tanh %401 : vector<8x128xf32>
    %403 = vector.extract_strided_slice %388 {offsets = [0, 384], sizes = [8, 128], strides = [1, 1]} : vector<8x512xf32> to vector<8x128xf32>
    %404 = arith.negf %403 : vector<8x128xf32>
    %405 = math.exp %404 : vector<8x128xf32>
    %cst_174 = arith.constant 1.000000e+00 : f32
    %406 = vector.broadcast %cst_174 : f32 to vector<8x128xf32>
    %407 = arith.addf %406, %405 : vector<8x128xf32>
    %408 = arith.divf %406, %407 : vector<8x128xf32>
    %409 = arith.mulf %400, %366 : vector<8x128xf32>
    %410 = arith.mulf %394, %402 : vector<8x128xf32>
    %411 = arith.addf %409, %410 : vector<8x128xf32>
    %412 = math.tanh %411 : vector<8x128xf32>
    %413 = arith.mulf %408, %412 : vector<8x128xf32>
    %414 = vector.extract_strided_slice %413 {offsets = [0, 0], sizes = [1, 128], strides = [1, 1]} : vector<8x128xf32> to vector<1x128xf32>
    %c2 = arith.constant 2 : index
    %c0_175 = arith.constant 0 : index
    %415 = vector.load %arg17[%c2, %c0_175] : memref<64x128xf32, #tpu.memory_space<vmem>>, vector<1x128xf32>
    tpu.vector_store %arg17[%c2, %c0_175], %414 {strides = array<i32>} : memref<64x128xf32, #tpu.memory_space<vmem>>, vector<1x128xf32>,
    %416 = vector.extract_strided_slice %413 {offsets = [1, 0], sizes = [1, 128], strides = [1, 1]} : vector<8x128xf32> to vector<1x128xf32>
    %c10 = arith.constant 10 : index
    %c0_176 = arith.constant 0 : index
    %417 = vector.load %arg17[%c10, %c0_176] : memref<64x128xf32, #tpu.memory_space<vmem>>, vector<1x128xf32>
    tpu.vector_store %arg17[%c10, %c0_176], %416 {strides = array<i32>} : memref<64x128xf32, #tpu.memory_space<vmem>>, vector<1x128xf32>,
    %418 = vector.extract_strided_slice %413 {offsets = [2, 0], sizes = [1, 128], strides = [1, 1]} : vector<8x128xf32> to vector<1x128xf32>
    %c18 = arith.constant 18 : index
    %c0_177 = arith.constant 0 : index
    %419 = vector.load %arg17[%c18, %c0_177] : memref<64x128xf32, #tpu.memory_space<vmem>>, vector<1x128xf32>
    tpu.vector_store %arg17[%c18, %c0_177], %418 {strides = array<i32>} : memref<64x128xf32, #tpu.memory_space<vmem>>, vector<1x128xf32>,
    %420 = vector.extract_strided_slice %413 {offsets = [3, 0], sizes = [1, 128], strides = [1, 1]} : vector<8x128xf32> to vector<1x128xf32>
    %c26 = arith.constant 26 : index
    %c0_178 = arith.constant 0 : index
    %421 = vector.load %arg17[%c26, %c0_178] : memref<64x128xf32, #tpu.memory_space<vmem>>, vector<1x128xf32>
    tpu.vector_store %arg17[%c26, %c0_178], %420 {strides = array<i32>} : memref<64x128xf32, #tpu.memory_space<vmem>>, vector<1x128xf32>,
    %422 = vector.extract_strided_slice %413 {offsets = [4, 0], sizes = [1, 128], strides = [1, 1]} : vector<8x128xf32> to vector<1x128xf32>
    %c34 = arith.constant 34 : index
    %c0_179 = arith.constant 0 : index
    %423 = vector.load %arg17[%c34, %c0_179] : memref<64x128xf32, #tpu.memory_space<vmem>>, vector<1x128xf32>
    tpu.vector_store %arg17[%c34, %c0_179], %422 {strides = array<i32>} : memref<64x128xf32, #tpu.memory_space<vmem>>, vector<1x128xf32>,
    %424 = vector.extract_strided_slice %413 {offsets = [5, 0], sizes = [1, 128], strides = [1, 1]} : vector<8x128xf32> to vector<1x128xf32>
    %c42 = arith.constant 42 : index
    %c0_180 = arith.constant 0 : index
    %425 = vector.load %arg17[%c42, %c0_180] : memref<64x128xf32, #tpu.memory_space<vmem>>, vector<1x128xf32>
    tpu.vector_store %arg17[%c42, %c0_180], %424 {strides = array<i32>} : memref<64x128xf32, #tpu.memory_space<vmem>>, vector<1x128xf32>,
    %426 = vector.extract_strided_slice %413 {offsets = [6, 0], sizes = [1, 128], strides = [1, 1]} : vector<8x128xf32> to vector<1x128xf32>
    %c50 = arith.constant 50 : index
    %c0_181 = arith.constant 0 : index
    %427 = vector.load %arg17[%c50, %c0_181] : memref<64x128xf32, #tpu.memory_space<vmem>>, vector<1x128xf32>
    tpu.vector_store %arg17[%c50, %c0_181], %426 {strides = array<i32>} : memref<64x128xf32, #tpu.memory_space<vmem>>, vector<1x128xf32>,
    %428 = vector.extract_strided_slice %413 {offsets = [7, 0], sizes = [1, 128], strides = [1, 1]} : vector<8x128xf32> to vector<1x128xf32>
    %c58 = arith.constant 58 : index
    %c0_182 = arith.constant 0 : index
    %429 = vector.load %arg17[%c58, %c0_182] : memref<64x128xf32, #tpu.memory_space<vmem>>, vector<1x128xf32>
    tpu.vector_store %arg17[%c58, %c0_182], %428 {strides = array<i32>} : memref<64x128xf32, #tpu.memory_space<vmem>>, vector<1x128xf32>,
    %c24_183 = arith.constant 24 : index
    %c0_184 = arith.constant 0 : index
    %430 = vector.load %arg25[%c24_183, %c0_184] : memref<64x512xf32, #tpu.memory_space<vmem>>, vector<8x512xf32>
    %c0_185 = arith.constant 0 : index
    %c0_186 = arith.constant 0 : index
    %431 = vector.load %arg11[%c0_185, %c0_186] : memref<128x512xf32, #tpu.memory_space<vmem>>, vector<128x512xf32>
    %cst_187 = arith.constant dense<0.000000e+00> : vector<8x512xf32>
    %432 = tpu.matmul %413, %431, %cst_187 {dimension_numbers = #tpu.dot_dimension_numbers<[1], [0], [0], [1], [0, 0, 1, 1], [], []>} : vector<8x128xf32>, vector<128x512xf32>, vector<8x512xf32> -> vector<8x512xf32>
    %433 = arith.addf %430, %432 : vector<8x512xf32>
    %434 = vector.extract_strided_slice %433 {offsets = [0, 0], sizes = [8, 128], strides = [1, 1]} : vector<8x512xf32> to vector<8x128xf32>
    %435 = arith.negf %434 : vector<8x128xf32>
    %436 = math.exp %435 : vector<8x128xf32>
    %cst_188 = arith.constant 1.000000e+00 : f32
    %437 = vector.broadcast %cst_188 : f32 to vector<8x128xf32>
    %438 = arith.addf %437, %436 : vector<8x128xf32>
    %439 = arith.divf %437, %438 : vector<8x128xf32>
    %440 = vector.extract_strided_slice %433 {offsets = [0, 128], sizes = [8, 128], strides = [1, 1]} : vector<8x512xf32> to vector<8x128xf32>
    %441 = arith.negf %440 : vector<8x128xf32>
    %442 = math.exp %441 : vector<8x128xf32>
    %cst_189 = arith.constant 1.000000e+00 : f32
    %443 = vector.broadcast %cst_189 : f32 to vector<8x128xf32>
    %444 = arith.addf %443, %442 : vector<8x128xf32>
    %445 = arith.divf %443, %444 : vector<8x128xf32>
    %446 = vector.extract_strided_slice %433 {offsets = [0, 256], sizes = [8, 128], strides = [1, 1]} : vector<8x512xf32> to vector<8x128xf32>
    %447 = math.tanh %446 : vector<8x128xf32>
    %448 = vector.extract_strided_slice %433 {offsets = [0, 384], sizes = [8, 128], strides = [1, 1]} : vector<8x512xf32> to vector<8x128xf32>
    %449 = arith.negf %448 : vector<8x128xf32>
    %450 = math.exp %449 : vector<8x128xf32>
    %cst_190 = arith.constant 1.000000e+00 : f32
    %451 = vector.broadcast %cst_190 : f32 to vector<8x128xf32>
    %452 = arith.addf %451, %450 : vector<8x128xf32>
    %453 = arith.divf %451, %452 : vector<8x128xf32>
    %454 = arith.mulf %445, %411 : vector<8x128xf32>
    %455 = arith.mulf %439, %447 : vector<8x128xf32>
    %456 = arith.addf %454, %455 : vector<8x128xf32>
    %457 = math.tanh %456 : vector<8x128xf32>
    %458 = arith.mulf %453, %457 : vector<8x128xf32>
    %459 = vector.extract_strided_slice %458 {offsets = [0, 0], sizes = [1, 128], strides = [1, 1]} : vector<8x128xf32> to vector<1x128xf32>
    %c3 = arith.constant 3 : index
    %c0_191 = arith.constant 0 : index
    %460 = vector.load %arg17[%c3, %c0_191] : memref<64x128xf32, #tpu.memory_space<vmem>>, vector<1x128xf32>
    tpu.vector_store %arg17[%c3, %c0_191], %459 {strides = array<i32>} : memref<64x128xf32, #tpu.memory_space<vmem>>, vector<1x128xf32>,
    %461 = vector.extract_strided_slice %458 {offsets = [1, 0], sizes = [1, 128], strides = [1, 1]} : vector<8x128xf32> to vector<1x128xf32>
    %c11 = arith.constant 11 : index
    %c0_192 = arith.constant 0 : index
    %462 = vector.load %arg17[%c11, %c0_192] : memref<64x128xf32, #tpu.memory_space<vmem>>, vector<1x128xf32>
    tpu.vector_store %arg17[%c11, %c0_192], %461 {strides = array<i32>} : memref<64x128xf32, #tpu.memory_space<vmem>>, vector<1x128xf32>,
    %463 = vector.extract_strided_slice %458 {offsets = [2, 0], sizes = [1, 128], strides = [1, 1]} : vector<8x128xf32> to vector<1x128xf32>
    %c19 = arith.constant 19 : index
    %c0_193 = arith.constant 0 : index
    %464 = vector.load %arg17[%c19, %c0_193] : memref<64x128xf32, #tpu.memory_space<vmem>>, vector<1x128xf32>
    tpu.vector_store %arg17[%c19, %c0_193], %463 {strides = array<i32>} : memref<64x128xf32, #tpu.memory_space<vmem>>, vector<1x128xf32>,
    %465 = vector.extract_strided_slice %458 {offsets = [3, 0], sizes = [1, 128], strides = [1, 1]} : vector<8x128xf32> to vector<1x128xf32>
    %c27 = arith.constant 27 : index
    %c0_194 = arith.constant 0 : index
    %466 = vector.load %arg17[%c27, %c0_194] : memref<64x128xf32, #tpu.memory_space<vmem>>, vector<1x128xf32>
    tpu.vector_store %arg17[%c27, %c0_194], %465 {strides = array<i32>} : memref<64x128xf32, #tpu.memory_space<vmem>>, vector<1x128xf32>,
    %467 = vector.extract_strided_slice %458 {offsets = [4, 0], sizes = [1, 128], strides = [1, 1]} : vector<8x128xf32> to vector<1x128xf32>
    %c35 = arith.constant 35 : index
    %c0_195 = arith.constant 0 : index
    %468 = vector.load %arg17[%c35, %c0_195] : memref<64x128xf32, #tpu.memory_space<vmem>>, vector<1x128xf32>
    tpu.vector_store %arg17[%c35, %c0_195], %467 {strides = array<i32>} : memref<64x128xf32, #tpu.memory_space<vmem>>, vector<1x128xf32>,
    %469 = vector.extract_strided_slice %458 {offsets = [5, 0], sizes = [1, 128], strides = [1, 1]} : vector<8x128xf32> to vector<1x128xf32>
    %c43 = arith.constant 43 : index
    %c0_196 = arith.constant 0 : index
    %470 = vector.load %arg17[%c43, %c0_196] : memref<64x128xf32, #tpu.memory_space<vmem>>, vector<1x128xf32>
    tpu.vector_store %arg17[%c43, %c0_196], %469 {strides = array<i32>} : memref<64x128xf32, #tpu.memory_space<vmem>>, vector<1x128xf32>,
    %471 = vector.extract_strided_slice %458 {offsets = [6, 0], sizes = [1, 128], strides = [1, 1]} : vector<8x128xf32> to vector<1x128xf32>
    %c51 = arith.constant 51 : index
    %c0_197 = arith.constant 0 : index
    %472 = vector.load %arg17[%c51, %c0_197] : memref<64x128xf32, #tpu.memory_space<vmem>>, vector<1x128xf32>
    tpu.vector_store %arg17[%c51, %c0_197], %471 {strides = array<i32>} : memref<64x128xf32, #tpu.memory_space<vmem>>, vector<1x128xf32>,
    %473 = vector.extract_strided_slice %458 {offsets = [7, 0], sizes = [1, 128], strides = [1, 1]} : vector<8x128xf32> to vector<1x128xf32>
    %c59 = arith.constant 59 : index
    %c0_198 = arith.constant 0 : index
    %474 = vector.load %arg17[%c59, %c0_198] : memref<64x128xf32, #tpu.memory_space<vmem>>, vector<1x128xf32>
    tpu.vector_store %arg17[%c59, %c0_198], %473 {strides = array<i32>} : memref<64x128xf32, #tpu.memory_space<vmem>>, vector<1x128xf32>,
    %c32_199 = arith.constant 32 : index
    %c0_200 = arith.constant 0 : index
    %475 = vector.load %arg25[%c32_199, %c0_200] : memref<64x512xf32, #tpu.memory_space<vmem>>, vector<8x512xf32>
    %c0_201 = arith.constant 0 : index
    %c0_202 = arith.constant 0 : index
    %476 = vector.load %arg11[%c0_201, %c0_202] : memref<128x512xf32, #tpu.memory_space<vmem>>, vector<128x512xf32>
    %cst_203 = arith.constant dense<0.000000e+00> : vector<8x512xf32>
    %477 = tpu.matmul %458, %476, %cst_203 {dimension_numbers = #tpu.dot_dimension_numbers<[1], [0], [0], [1], [0, 0, 1, 1], [], []>} : vector<8x128xf32>, vector<128x512xf32>, vector<8x512xf32> -> vector<8x512xf32>
    %478 = arith.addf %475, %477 : vector<8x512xf32>
    %479 = vector.extract_strided_slice %478 {offsets = [0, 0], sizes = [8, 128], strides = [1, 1]} : vector<8x512xf32> to vector<8x128xf32>
    %480 = arith.negf %479 : vector<8x128xf32>
    %481 = math.exp %480 : vector<8x128xf32>
    %cst_204 = arith.constant 1.000000e+00 : f32
    %482 = vector.broadcast %cst_204 : f32 to vector<8x128xf32>
    %483 = arith.addf %482, %481 : vector<8x128xf32>
    %484 = arith.divf %482, %483 : vector<8x128xf32>
    %485 = vector.extract_strided_slice %478 {offsets = [0, 128], sizes = [8, 128], strides = [1, 1]} : vector<8x512xf32> to vector<8x128xf32>
    %486 = arith.negf %485 : vector<8x128xf32>
    %487 = math.exp %486 : vector<8x128xf32>
    %cst_205 = arith.constant 1.000000e+00 : f32
    %488 = vector.broadcast %cst_205 : f32 to vector<8x128xf32>
    %489 = arith.addf %488, %487 : vector<8x128xf32>
    %490 = arith.divf %488, %489 : vector<8x128xf32>
    %491 = vector.extract_strided_slice %478 {offsets = [0, 256], sizes = [8, 128], strides = [1, 1]} : vector<8x512xf32> to vector<8x128xf32>
    %492 = math.tanh %491 : vector<8x128xf32>
    %493 = vector.extract_strided_slice %478 {offsets = [0, 384], sizes = [8, 128], strides = [1, 1]} : vector<8x512xf32> to vector<8x128xf32>
    %494 = arith.negf %493 : vector<8x128xf32>
    %495 = math.exp %494 : vector<8x128xf32>
    %cst_206 = arith.constant 1.000000e+00 : f32
    %496 = vector.broadcast %cst_206 : f32 to vector<8x128xf32>
    %497 = arith.addf %496, %495 : vector<8x128xf32>
    %498 = arith.divf %496, %497 : vector<8x128xf32>
    %499 = arith.mulf %490, %456 : vector<8x128xf32>
    %500 = arith.mulf %484, %492 : vector<8x128xf32>
    %501 = arith.addf %499, %500 : vector<8x128xf32>
    %502 = math.tanh %501 : vector<8x128xf32>
    %503 = arith.mulf %498, %502 : vector<8x128xf32>
    %504 = vector.extract_strided_slice %503 {offsets = [0, 0], sizes = [1, 128], strides = [1, 1]} : vector<8x128xf32> to vector<1x128xf32>
    %c4 = arith.constant 4 : index
    %c0_207 = arith.constant 0 : index
    %505 = vector.load %arg17[%c4, %c0_207] : memref<64x128xf32, #tpu.memory_space<vmem>>, vector<1x128xf32>
    tpu.vector_store %arg17[%c4, %c0_207], %504 {strides = array<i32>} : memref<64x128xf32, #tpu.memory_space<vmem>>, vector<1x128xf32>,
    %506 = vector.extract_strided_slice %503 {offsets = [1, 0], sizes = [1, 128], strides = [1, 1]} : vector<8x128xf32> to vector<1x128xf32>
    %c12 = arith.constant 12 : index
    %c0_208 = arith.constant 0 : index
    %507 = vector.load %arg17[%c12, %c0_208] : memref<64x128xf32, #tpu.memory_space<vmem>>, vector<1x128xf32>
    tpu.vector_store %arg17[%c12, %c0_208], %506 {strides = array<i32>} : memref<64x128xf32, #tpu.memory_space<vmem>>, vector<1x128xf32>,
    %508 = vector.extract_strided_slice %503 {offsets = [2, 0], sizes = [1, 128], strides = [1, 1]} : vector<8x128xf32> to vector<1x128xf32>
    %c20 = arith.constant 20 : index
    %c0_209 = arith.constant 0 : index
    %509 = vector.load %arg17[%c20, %c0_209] : memref<64x128xf32, #tpu.memory_space<vmem>>, vector<1x128xf32>
    tpu.vector_store %arg17[%c20, %c0_209], %508 {strides = array<i32>} : memref<64x128xf32, #tpu.memory_space<vmem>>, vector<1x128xf32>,
    %510 = vector.extract_strided_slice %503 {offsets = [3, 0], sizes = [1, 128], strides = [1, 1]} : vector<8x128xf32> to vector<1x128xf32>
    %c28 = arith.constant 28 : index
    %c0_210 = arith.constant 0 : index
    %511 = vector.load %arg17[%c28, %c0_210] : memref<64x128xf32, #tpu.memory_space<vmem>>, vector<1x128xf32>
    tpu.vector_store %arg17[%c28, %c0_210], %510 {strides = array<i32>} : memref<64x128xf32, #tpu.memory_space<vmem>>, vector<1x128xf32>,
    %512 = vector.extract_strided_slice %503 {offsets = [4, 0], sizes = [1, 128], strides = [1, 1]} : vector<8x128xf32> to vector<1x128xf32>
    %c36 = arith.constant 36 : index
    %c0_211 = arith.constant 0 : index
    %513 = vector.load %arg17[%c36, %c0_211] : memref<64x128xf32, #tpu.memory_space<vmem>>, vector<1x128xf32>
    tpu.vector_store %arg17[%c36, %c0_211], %512 {strides = array<i32>} : memref<64x128xf32, #tpu.memory_space<vmem>>, vector<1x128xf32>,
    %514 = vector.extract_strided_slice %503 {offsets = [5, 0], sizes = [1, 128], strides = [1, 1]} : vector<8x128xf32> to vector<1x128xf32>
    %c44 = arith.constant 44 : index
    %c0_212 = arith.constant 0 : index
    %515 = vector.load %arg17[%c44, %c0_212] : memref<64x128xf32, #tpu.memory_space<vmem>>, vector<1x128xf32>
    tpu.vector_store %arg17[%c44, %c0_212], %514 {strides = array<i32>} : memref<64x128xf32, #tpu.memory_space<vmem>>, vector<1x128xf32>,
    %516 = vector.extract_strided_slice %503 {offsets = [6, 0], sizes = [1, 128], strides = [1, 1]} : vector<8x128xf32> to vector<1x128xf32>
    %c52 = arith.constant 52 : index
    %c0_213 = arith.constant 0 : index
    %517 = vector.load %arg17[%c52, %c0_213] : memref<64x128xf32, #tpu.memory_space<vmem>>, vector<1x128xf32>
    tpu.vector_store %arg17[%c52, %c0_213], %516 {strides = array<i32>} : memref<64x128xf32, #tpu.memory_space<vmem>>, vector<1x128xf32>,
    %518 = vector.extract_strided_slice %503 {offsets = [7, 0], sizes = [1, 128], strides = [1, 1]} : vector<8x128xf32> to vector<1x128xf32>
    %c60 = arith.constant 60 : index
    %c0_214 = arith.constant 0 : index
    %519 = vector.load %arg17[%c60, %c0_214] : memref<64x128xf32, #tpu.memory_space<vmem>>, vector<1x128xf32>
    tpu.vector_store %arg17[%c60, %c0_214], %518 {strides = array<i32>} : memref<64x128xf32, #tpu.memory_space<vmem>>, vector<1x128xf32>,
    %c40_215 = arith.constant 40 : index
    %c0_216 = arith.constant 0 : index
    %520 = vector.load %arg25[%c40_215, %c0_216] : memref<64x512xf32, #tpu.memory_space<vmem>>, vector<8x512xf32>
    %c0_217 = arith.constant 0 : index
    %c0_218 = arith.constant 0 : index
    %521 = vector.load %arg11[%c0_217, %c0_218] : memref<128x512xf32, #tpu.memory_space<vmem>>, vector<128x512xf32>
    %cst_219 = arith.constant dense<0.000000e+00> : vector<8x512xf32>
    %522 = tpu.matmul %503, %521, %cst_219 {dimension_numbers = #tpu.dot_dimension_numbers<[1], [0], [0], [1], [0, 0, 1, 1], [], []>} : vector<8x128xf32>, vector<128x512xf32>, vector<8x512xf32> -> vector<8x512xf32>
    %523 = arith.addf %520, %522 : vector<8x512xf32>
    %524 = vector.extract_strided_slice %523 {offsets = [0, 0], sizes = [8, 128], strides = [1, 1]} : vector<8x512xf32> to vector<8x128xf32>
    %525 = arith.negf %524 : vector<8x128xf32>
    %526 = math.exp %525 : vector<8x128xf32>
    %cst_220 = arith.constant 1.000000e+00 : f32
    %527 = vector.broadcast %cst_220 : f32 to vector<8x128xf32>
    %528 = arith.addf %527, %526 : vector<8x128xf32>
    %529 = arith.divf %527, %528 : vector<8x128xf32>
    %530 = vector.extract_strided_slice %523 {offsets = [0, 128], sizes = [8, 128], strides = [1, 1]} : vector<8x512xf32> to vector<8x128xf32>
    %531 = arith.negf %530 : vector<8x128xf32>
    %532 = math.exp %531 : vector<8x128xf32>
    %cst_221 = arith.constant 1.000000e+00 : f32
    %533 = vector.broadcast %cst_221 : f32 to vector<8x128xf32>
    %534 = arith.addf %533, %532 : vector<8x128xf32>
    %535 = arith.divf %533, %534 : vector<8x128xf32>
    %536 = vector.extract_strided_slice %523 {offsets = [0, 256], sizes = [8, 128], strides = [1, 1]} : vector<8x512xf32> to vector<8x128xf32>
    %537 = math.tanh %536 : vector<8x128xf32>
    %538 = vector.extract_strided_slice %523 {offsets = [0, 384], sizes = [8, 128], strides = [1, 1]} : vector<8x512xf32> to vector<8x128xf32>
    %539 = arith.negf %538 : vector<8x128xf32>
    %540 = math.exp %539 : vector<8x128xf32>
    %cst_222 = arith.constant 1.000000e+00 : f32
    %541 = vector.broadcast %cst_222 : f32 to vector<8x128xf32>
    %542 = arith.addf %541, %540 : vector<8x128xf32>
    %543 = arith.divf %541, %542 : vector<8x128xf32>
    %544 = arith.mulf %535, %501 : vector<8x128xf32>
    %545 = arith.mulf %529, %537 : vector<8x128xf32>
    %546 = arith.addf %544, %545 : vector<8x128xf32>
    %547 = math.tanh %546 : vector<8x128xf32>
    %548 = arith.mulf %543, %547 : vector<8x128xf32>
    %549 = vector.extract_strided_slice %548 {offsets = [0, 0], sizes = [1, 128], strides = [1, 1]} : vector<8x128xf32> to vector<1x128xf32>
    %c5 = arith.constant 5 : index
    %c0_223 = arith.constant 0 : index
    %550 = vector.load %arg17[%c5, %c0_223] : memref<64x128xf32, #tpu.memory_space<vmem>>, vector<1x128xf32>
    tpu.vector_store %arg17[%c5, %c0_223], %549 {strides = array<i32>} : memref<64x128xf32, #tpu.memory_space<vmem>>, vector<1x128xf32>,
    %551 = vector.extract_strided_slice %548 {offsets = [1, 0], sizes = [1, 128], strides = [1, 1]} : vector<8x128xf32> to vector<1x128xf32>
    %c13 = arith.constant 13 : index
    %c0_224 = arith.constant 0 : index
    %552 = vector.load %arg17[%c13, %c0_224] : memref<64x128xf32, #tpu.memory_space<vmem>>, vector<1x128xf32>
    tpu.vector_store %arg17[%c13, %c0_224], %551 {strides = array<i32>} : memref<64x128xf32, #tpu.memory_space<vmem>>, vector<1x128xf32>,
    %553 = vector.extract_strided_slice %548 {offsets = [2, 0], sizes = [1, 128], strides = [1, 1]} : vector<8x128xf32> to vector<1x128xf32>
    %c21 = arith.constant 21 : index
    %c0_225 = arith.constant 0 : index
    %554 = vector.load %arg17[%c21, %c0_225] : memref<64x128xf32, #tpu.memory_space<vmem>>, vector<1x128xf32>
    tpu.vector_store %arg17[%c21, %c0_225], %553 {strides = array<i32>} : memref<64x128xf32, #tpu.memory_space<vmem>>, vector<1x128xf32>,
    %555 = vector.extract_strided_slice %548 {offsets = [3, 0], sizes = [1, 128], strides = [1, 1]} : vector<8x128xf32> to vector<1x128xf32>
    %c29 = arith.constant 29 : index
    %c0_226 = arith.constant 0 : index
    %556 = vector.load %arg17[%c29, %c0_226] : memref<64x128xf32, #tpu.memory_space<vmem>>, vector<1x128xf32>
    tpu.vector_store %arg17[%c29, %c0_226], %555 {strides = array<i32>} : memref<64x128xf32, #tpu.memory_space<vmem>>, vector<1x128xf32>,
    %557 = vector.extract_strided_slice %548 {offsets = [4, 0], sizes = [1, 128], strides = [1, 1]} : vector<8x128xf32> to vector<1x128xf32>
    %c37 = arith.constant 37 : index
    %c0_227 = arith.constant 0 : index
    %558 = vector.load %arg17[%c37, %c0_227] : memref<64x128xf32, #tpu.memory_space<vmem>>, vector<1x128xf32>
    tpu.vector_store %arg17[%c37, %c0_227], %557 {strides = array<i32>} : memref<64x128xf32, #tpu.memory_space<vmem>>, vector<1x128xf32>,
    %559 = vector.extract_strided_slice %548 {offsets = [5, 0], sizes = [1, 128], strides = [1, 1]} : vector<8x128xf32> to vector<1x128xf32>
    %c45 = arith.constant 45 : index
    %c0_228 = arith.constant 0 : index
    %560 = vector.load %arg17[%c45, %c0_228] : memref<64x128xf32, #tpu.memory_space<vmem>>, vector<1x128xf32>
    tpu.vector_store %arg17[%c45, %c0_228], %559 {strides = array<i32>} : memref<64x128xf32, #tpu.memory_space<vmem>>, vector<1x128xf32>,
    %561 = vector.extract_strided_slice %548 {offsets = [6, 0], sizes = [1, 128], strides = [1, 1]} : vector<8x128xf32> to vector<1x128xf32>
    %c53 = arith.constant 53 : index
    %c0_229 = arith.constant 0 : index
    %562 = vector.load %arg17[%c53, %c0_229] : memref<64x128xf32, #tpu.memory_space<vmem>>, vector<1x128xf32>
    tpu.vector_store %arg17[%c53, %c0_229], %561 {strides = array<i32>} : memref<64x128xf32, #tpu.memory_space<vmem>>, vector<1x128xf32>,
    %563 = vector.extract_strided_slice %548 {offsets = [7, 0], sizes = [1, 128], strides = [1, 1]} : vector<8x128xf32> to vector<1x128xf32>
    %c61 = arith.constant 61 : index
    %c0_230 = arith.constant 0 : index
    %564 = vector.load %arg17[%c61, %c0_230] : memref<64x128xf32, #tpu.memory_space<vmem>>, vector<1x128xf32>
    tpu.vector_store %arg17[%c61, %c0_230], %563 {strides = array<i32>} : memref<64x128xf32, #tpu.memory_space<vmem>>, vector<1x128xf32>,
    %c48_231 = arith.constant 48 : index
    %c0_232 = arith.constant 0 : index
    %565 = vector.load %arg25[%c48_231, %c0_232] : memref<64x512xf32, #tpu.memory_space<vmem>>, vector<8x512xf32>
    %c0_233 = arith.constant 0 : index
    %c0_234 = arith.constant 0 : index
    %566 = vector.load %arg11[%c0_233, %c0_234] : memref<128x512xf32, #tpu.memory_space<vmem>>, vector<128x512xf32>
    %cst_235 = arith.constant dense<0.000000e+00> : vector<8x512xf32>
    %567 = tpu.matmul %548, %566, %cst_235 {dimension_numbers = #tpu.dot_dimension_numbers<[1], [0], [0], [1], [0, 0, 1, 1], [], []>} : vector<8x128xf32>, vector<128x512xf32>, vector<8x512xf32> -> vector<8x512xf32>
    %568 = arith.addf %565, %567 : vector<8x512xf32>
    %569 = vector.extract_strided_slice %568 {offsets = [0, 0], sizes = [8, 128], strides = [1, 1]} : vector<8x512xf32> to vector<8x128xf32>
    %570 = arith.negf %569 : vector<8x128xf32>
    %571 = math.exp %570 : vector<8x128xf32>
    %cst_236 = arith.constant 1.000000e+00 : f32
    %572 = vector.broadcast %cst_236 : f32 to vector<8x128xf32>
    %573 = arith.addf %572, %571 : vector<8x128xf32>
    %574 = arith.divf %572, %573 : vector<8x128xf32>
    %575 = vector.extract_strided_slice %568 {offsets = [0, 128], sizes = [8, 128], strides = [1, 1]} : vector<8x512xf32> to vector<8x128xf32>
    %576 = arith.negf %575 : vector<8x128xf32>
    %577 = math.exp %576 : vector<8x128xf32>
    %cst_237 = arith.constant 1.000000e+00 : f32
    %578 = vector.broadcast %cst_237 : f32 to vector<8x128xf32>
    %579 = arith.addf %578, %577 : vector<8x128xf32>
    %580 = arith.divf %578, %579 : vector<8x128xf32>
    %581 = vector.extract_strided_slice %568 {offsets = [0, 256], sizes = [8, 128], strides = [1, 1]} : vector<8x512xf32> to vector<8x128xf32>
    %582 = math.tanh %581 : vector<8x128xf32>
    %583 = vector.extract_strided_slice %568 {offsets = [0, 384], sizes = [8, 128], strides = [1, 1]} : vector<8x512xf32> to vector<8x128xf32>
    %584 = arith.negf %583 : vector<8x128xf32>
    %585 = math.exp %584 : vector<8x128xf32>
    %cst_238 = arith.constant 1.000000e+00 : f32
    %586 = vector.broadcast %cst_238 : f32 to vector<8x128xf32>
    %587 = arith.addf %586, %585 : vector<8x128xf32>
    %588 = arith.divf %586, %587 : vector<8x128xf32>
    %589 = arith.mulf %580, %546 : vector<8x128xf32>
    %590 = arith.mulf %574, %582 : vector<8x128xf32>
    %591 = arith.addf %589, %590 : vector<8x128xf32>
    %592 = math.tanh %591 : vector<8x128xf32>
    %593 = arith.mulf %588, %592 : vector<8x128xf32>
    %594 = vector.extract_strided_slice %593 {offsets = [0, 0], sizes = [1, 128], strides = [1, 1]} : vector<8x128xf32> to vector<1x128xf32>
    %c6 = arith.constant 6 : index
    %c0_239 = arith.constant 0 : index
    %595 = vector.load %arg17[%c6, %c0_239] : memref<64x128xf32, #tpu.memory_space<vmem>>, vector<1x128xf32>
    tpu.vector_store %arg17[%c6, %c0_239], %594 {strides = array<i32>} : memref<64x128xf32, #tpu.memory_space<vmem>>, vector<1x128xf32>,
    %596 = vector.extract_strided_slice %593 {offsets = [1, 0], sizes = [1, 128], strides = [1, 1]} : vector<8x128xf32> to vector<1x128xf32>
    %c14 = arith.constant 14 : index
    %c0_240 = arith.constant 0 : index
    %597 = vector.load %arg17[%c14, %c0_240] : memref<64x128xf32, #tpu.memory_space<vmem>>, vector<1x128xf32>
    tpu.vector_store %arg17[%c14, %c0_240], %596 {strides = array<i32>} : memref<64x128xf32, #tpu.memory_space<vmem>>, vector<1x128xf32>,
    %598 = vector.extract_strided_slice %593 {offsets = [2, 0], sizes = [1, 128], strides = [1, 1]} : vector<8x128xf32> to vector<1x128xf32>
    %c22 = arith.constant 22 : index
    %c0_241 = arith.constant 0 : index
    %599 = vector.load %arg17[%c22, %c0_241] : memref<64x128xf32, #tpu.memory_space<vmem>>, vector<1x128xf32>
    tpu.vector_store %arg17[%c22, %c0_241], %598 {strides = array<i32>} : memref<64x128xf32, #tpu.memory_space<vmem>>, vector<1x128xf32>,
    %600 = vector.extract_strided_slice %593 {offsets = [3, 0], sizes = [1, 128], strides = [1, 1]} : vector<8x128xf32> to vector<1x128xf32>
    %c30 = arith.constant 30 : index
    %c0_242 = arith.constant 0 : index
    %601 = vector.load %arg17[%c30, %c0_242] : memref<64x128xf32, #tpu.memory_space<vmem>>, vector<1x128xf32>
    tpu.vector_store %arg17[%c30, %c0_242], %600 {strides = array<i32>} : memref<64x128xf32, #tpu.memory_space<vmem>>, vector<1x128xf32>,
    %602 = vector.extract_strided_slice %593 {offsets = [4, 0], sizes = [1, 128], strides = [1, 1]} : vector<8x128xf32> to vector<1x128xf32>
    %c38 = arith.constant 38 : index
    %c0_243 = arith.constant 0 : index
    %603 = vector.load %arg17[%c38, %c0_243] : memref<64x128xf32, #tpu.memory_space<vmem>>, vector<1x128xf32>
    tpu.vector_store %arg17[%c38, %c0_243], %602 {strides = array<i32>} : memref<64x128xf32, #tpu.memory_space<vmem>>, vector<1x128xf32>,
    %604 = vector.extract_strided_slice %593 {offsets = [5, 0], sizes = [1, 128], strides = [1, 1]} : vector<8x128xf32> to vector<1x128xf32>
    %c46 = arith.constant 46 : index
    %c0_244 = arith.constant 0 : index
    %605 = vector.load %arg17[%c46, %c0_244] : memref<64x128xf32, #tpu.memory_space<vmem>>, vector<1x128xf32>
    tpu.vector_store %arg17[%c46, %c0_244], %604 {strides = array<i32>} : memref<64x128xf32, #tpu.memory_space<vmem>>, vector<1x128xf32>,
    %606 = vector.extract_strided_slice %593 {offsets = [6, 0], sizes = [1, 128], strides = [1, 1]} : vector<8x128xf32> to vector<1x128xf32>
    %c54 = arith.constant 54 : index
    %c0_245 = arith.constant 0 : index
    %607 = vector.load %arg17[%c54, %c0_245] : memref<64x128xf32, #tpu.memory_space<vmem>>, vector<1x128xf32>
    tpu.vector_store %arg17[%c54, %c0_245], %606 {strides = array<i32>} : memref<64x128xf32, #tpu.memory_space<vmem>>, vector<1x128xf32>,
    %608 = vector.extract_strided_slice %593 {offsets = [7, 0], sizes = [1, 128], strides = [1, 1]} : vector<8x128xf32> to vector<1x128xf32>
    %c62 = arith.constant 62 : index
    %c0_246 = arith.constant 0 : index
    %609 = vector.load %arg17[%c62, %c0_246] : memref<64x128xf32, #tpu.memory_space<vmem>>, vector<1x128xf32>
    tpu.vector_store %arg17[%c62, %c0_246], %608 {strides = array<i32>} : memref<64x128xf32, #tpu.memory_space<vmem>>, vector<1x128xf32>,
    %c56_247 = arith.constant 56 : index
    %c0_248 = arith.constant 0 : index
    %610 = vector.load %arg25[%c56_247, %c0_248] : memref<64x512xf32, #tpu.memory_space<vmem>>, vector<8x512xf32>
    %c0_249 = arith.constant 0 : index
    %c0_250 = arith.constant 0 : index
    %611 = vector.load %arg11[%c0_249, %c0_250] : memref<128x512xf32, #tpu.memory_space<vmem>>, vector<128x512xf32>
    %cst_251 = arith.constant dense<0.000000e+00> : vector<8x512xf32>
    %612 = tpu.matmul %593, %611, %cst_251 {dimension_numbers = #tpu.dot_dimension_numbers<[1], [0], [0], [1], [0, 0, 1, 1], [], []>} : vector<8x128xf32>, vector<128x512xf32>, vector<8x512xf32> -> vector<8x512xf32>
    %613 = arith.addf %610, %612 : vector<8x512xf32>
    %614 = vector.extract_strided_slice %613 {offsets = [0, 0], sizes = [8, 128], strides = [1, 1]} : vector<8x512xf32> to vector<8x128xf32>
    %615 = arith.negf %614 : vector<8x128xf32>
    %616 = math.exp %615 : vector<8x128xf32>
    %cst_252 = arith.constant 1.000000e+00 : f32
    %617 = vector.broadcast %cst_252 : f32 to vector<8x128xf32>
    %618 = arith.addf %617, %616 : vector<8x128xf32>
    %619 = arith.divf %617, %618 : vector<8x128xf32>
    %620 = vector.extract_strided_slice %613 {offsets = [0, 128], sizes = [8, 128], strides = [1, 1]} : vector<8x512xf32> to vector<8x128xf32>
    %621 = arith.negf %620 : vector<8x128xf32>
    %622 = math.exp %621 : vector<8x128xf32>
    %cst_253 = arith.constant 1.000000e+00 : f32
    %623 = vector.broadcast %cst_253 : f32 to vector<8x128xf32>
    %624 = arith.addf %623, %622 : vector<8x128xf32>
    %625 = arith.divf %623, %624 : vector<8x128xf32>
    %626 = vector.extract_strided_slice %613 {offsets = [0, 256], sizes = [8, 128], strides = [1, 1]} : vector<8x512xf32> to vector<8x128xf32>
    %627 = math.tanh %626 : vector<8x128xf32>
    %628 = vector.extract_strided_slice %613 {offsets = [0, 384], sizes = [8, 128], strides = [1, 1]} : vector<8x512xf32> to vector<8x128xf32>
    %629 = arith.negf %628 : vector<8x128xf32>
    %630 = math.exp %629 : vector<8x128xf32>
    %cst_254 = arith.constant 1.000000e+00 : f32
    %631 = vector.broadcast %cst_254 : f32 to vector<8x128xf32>
    %632 = arith.addf %631, %630 : vector<8x128xf32>
    %633 = arith.divf %631, %632 : vector<8x128xf32>
    %634 = arith.mulf %625, %591 : vector<8x128xf32>
    %635 = arith.mulf %619, %627 : vector<8x128xf32>
    %636 = arith.addf %634, %635 : vector<8x128xf32>
    %637 = math.tanh %636 : vector<8x128xf32>
    %638 = arith.mulf %633, %637 : vector<8x128xf32>
    %639 = vector.extract_strided_slice %638 {offsets = [0, 0], sizes = [1, 128], strides = [1, 1]} : vector<8x128xf32> to vector<1x128xf32>
    %c7 = arith.constant 7 : index
    %c0_255 = arith.constant 0 : index
    %640 = vector.load %arg17[%c7, %c0_255] : memref<64x128xf32, #tpu.memory_space<vmem>>, vector<1x128xf32>
    tpu.vector_store %arg17[%c7, %c0_255], %639 {strides = array<i32>} : memref<64x128xf32, #tpu.memory_space<vmem>>, vector<1x128xf32>,
    %641 = vector.extract_strided_slice %638 {offsets = [1, 0], sizes = [1, 128], strides = [1, 1]} : vector<8x128xf32> to vector<1x128xf32>
    %c15 = arith.constant 15 : index
    %c0_256 = arith.constant 0 : index
    %642 = vector.load %arg17[%c15, %c0_256] : memref<64x128xf32, #tpu.memory_space<vmem>>, vector<1x128xf32>
    tpu.vector_store %arg17[%c15, %c0_256], %641 {strides = array<i32>} : memref<64x128xf32, #tpu.memory_space<vmem>>, vector<1x128xf32>,
    %643 = vector.extract_strided_slice %638 {offsets = [2, 0], sizes = [1, 128], strides = [1, 1]} : vector<8x128xf32> to vector<1x128xf32>
    %c23 = arith.constant 23 : index
    %c0_257 = arith.constant 0 : index
    %644 = vector.load %arg17[%c23, %c0_257] : memref<64x128xf32, #tpu.memory_space<vmem>>, vector<1x128xf32>
    tpu.vector_store %arg17[%c23, %c0_257], %643 {strides = array<i32>} : memref<64x128xf32, #tpu.memory_space<vmem>>, vector<1x128xf32>,
    %645 = vector.extract_strided_slice %638 {offsets = [3, 0], sizes = [1, 128], strides = [1, 1]} : vector<8x128xf32> to vector<1x128xf32>
    %c31 = arith.constant 31 : index
    %c0_258 = arith.constant 0 : index
    %646 = vector.load %arg17[%c31, %c0_258] : memref<64x128xf32, #tpu.memory_space<vmem>>, vector<1x128xf32>
    tpu.vector_store %arg17[%c31, %c0_258], %645 {strides = array<i32>} : memref<64x128xf32, #tpu.memory_space<vmem>>, vector<1x128xf32>,
    %647 = vector.extract_strided_slice %638 {offsets = [4, 0], sizes = [1, 128], strides = [1, 1]} : vector<8x128xf32> to vector<1x128xf32>
    %c39 = arith.constant 39 : index
    %c0_259 = arith.constant 0 : index
    %648 = vector.load %arg17[%c39, %c0_259] : memref<64x128xf32, #tpu.memory_space<vmem>>, vector<1x128xf32>
    tpu.vector_store %arg17[%c39, %c0_259], %647 {strides = array<i32>} : memref<64x128xf32, #tpu.memory_space<vmem>>, vector<1x128xf32>,
    %649 = vector.extract_strided_slice %638 {offsets = [5, 0], sizes = [1, 128], strides = [1, 1]} : vector<8x128xf32> to vector<1x128xf32>
    %c47 = arith.constant 47 : index
    %c0_260 = arith.constant 0 : index
    %650 = vector.load %arg17[%c47, %c0_260] : memref<64x128xf32, #tpu.memory_space<vmem>>, vector<1x128xf32>
    tpu.vector_store %arg17[%c47, %c0_260], %649 {strides = array<i32>} : memref<64x128xf32, #tpu.memory_space<vmem>>, vector<1x128xf32>,
    %651 = vector.extract_strided_slice %638 {offsets = [6, 0], sizes = [1, 128], strides = [1, 1]} : vector<8x128xf32> to vector<1x128xf32>
    %c55 = arith.constant 55 : index
    %c0_261 = arith.constant 0 : index
    %652 = vector.load %arg17[%c55, %c0_261] : memref<64x128xf32, #tpu.memory_space<vmem>>, vector<1x128xf32>
    tpu.vector_store %arg17[%c55, %c0_261], %651 {strides = array<i32>} : memref<64x128xf32, #tpu.memory_space<vmem>>, vector<1x128xf32>,
    %653 = vector.extract_strided_slice %638 {offsets = [7, 0], sizes = [1, 128], strides = [1, 1]} : vector<8x128xf32> to vector<1x128xf32>
    %c63 = arith.constant 63 : index
    %c0_262 = arith.constant 0 : index
    %654 = vector.load %arg17[%c63, %c0_262] : memref<64x128xf32, #tpu.memory_space<vmem>>, vector<1x128xf32>
    tpu.vector_store %arg17[%c63, %c0_262], %653 {strides = array<i32>} : memref<64x128xf32, #tpu.memory_space<vmem>>, vector<1x128xf32>,
    %c1_263 = arith.constant 1 : index
    %c0_264 = arith.constant 0 : index
    %c0_265 = arith.constant 0 : index
    %655 = vector.load %arg21[%c1_263, %c0_264, %c0_265] : memref<2x8x128xf32, #tpu.memory_space<vmem>>, vector<1x8x128xf32>
    %656 = vector.shape_cast %655 : vector<1x8x128xf32> to vector<8x128xf32>
    %657 = vector.shape_cast %638 : vector<8x128xf32> to vector<1x8x128xf32>
    tpu.vector_store %arg21[%c1_263, %c0_264, %c0_265], %657 {strides = array<i32>} : memref<2x8x128xf32, #tpu.memory_space<vmem>>, vector<1x8x128xf32>,
    %c1_266 = arith.constant 1 : index
    %c0_267 = arith.constant 0 : index
    %c0_268 = arith.constant 0 : index
    %658 = vector.load %arg22[%c1_266, %c0_267, %c0_268] : memref<2x8x128xf32, #tpu.memory_space<vmem>>, vector<1x8x128xf32>
    %659 = vector.shape_cast %658 : vector<1x8x128xf32> to vector<8x128xf32>
    %660 = vector.shape_cast %636 : vector<8x128xf32> to vector<1x8x128xf32>
    tpu.vector_store %arg22[%c1_266, %c0_267, %c0_268], %660 {strides = array<i32>} : memref<2x8x128xf32, #tpu.memory_space<vmem>>, vector<1x8x128xf32>,
    %c0_269 = arith.constant 0 : index
    %c0_270 = arith.constant 0 : index
    %661 = vector.load %arg17[%c0_269, %c0_270] : memref<64x128xf32, #tpu.memory_space<vmem>>, vector<64x128xf32>
    %c0_271 = arith.constant 0 : index
    %c0_272 = arith.constant 0 : index
    %662 = vector.load %arg13[%c0_271, %c0_272] : memref<128x48xf32, #tpu.memory_space<vmem>>, vector<128x48xf32>
    %cst_273 = arith.constant dense<0.000000e+00> : vector<64x48xf32>
    %663 = tpu.matmul %661, %662, %cst_273 {dimension_numbers = #tpu.dot_dimension_numbers<[1], [0], [0], [1], [0, 0, 1, 1], [], []>} : vector<64x128xf32>, vector<128x48xf32>, vector<64x48xf32> -> vector<64x48xf32>
    %c0_274 = arith.constant 0 : index
    %c0_275 = arith.constant 0 : index
    %664 = vector.load %arg14[%c0_274, %c0_275] : memref<1x48xf32, #tpu.memory_space<vmem>>, vector<1x48xf32>
    %665 = vector.broadcast %664 : vector<1x48xf32> to vector<64x48xf32>
    %666 = arith.addf %663, %665 : vector<64x48xf32>
    %cst_276 = arith.constant dense<0xFF800000> : vector<64xf32>
    %667 = vector.multi_reduction <maximumf>, %666, %cst_276 [1] : vector<64x48xf32> to vector<64xf32>
    %668 = vector.shape_cast %667 : vector<64xf32> to vector<64x1xf32>
    %669 = vector.broadcast %668 : vector<64x1xf32> to vector<64x48xf32>
    %670 = arith.subf %666, %669 : vector<64x48xf32>
    %671 = math.exp %670 : vector<64x48xf32>
    %cst_277 = arith.constant dense<0.000000e+00> : vector<64xf32>
    %672 = vector.multi_reduction <add>, %671, %cst_277 [1] : vector<64x48xf32> to vector<64xf32>
    %673 = vector.shape_cast %672 : vector<64xf32> to vector<64x1xf32>
    %c0_278 = arith.constant 0 : index
    %c0_279 = arith.constant 0 : index
    %674 = vector.load %arg18[%c0_278, %c0_279] : memref<64x48xf32, #tpu.memory_space<vmem>>, vector<64x48xf32>
    tpu.vector_store %arg18[%c0_278, %c0_279], %666 {strides = array<i32>} : memref<64x48xf32, #tpu.memory_space<vmem>>, vector<64x48xf32>,
    %675 = tpu.reciprocal %673 {approx = true} : vector<64x1xf32> -> vector<64x1xf32>
    %676 = vector.broadcast %675 : vector<64x1xf32> to vector<64x48xf32>
    %677 = arith.mulf %671, %676 : vector<64x48xf32>
    %c0_280 = arith.constant 0 : index
    %c0_281 = arith.constant 0 : index
    %678 = vector.load %arg19[%c0_280, %c0_281] : memref<64x48xf32, #tpu.memory_space<vmem>>, vector<64x48xf32>
    tpu.vector_store %arg19[%c0_280, %c0_281], %677 {strides = array<i32>} : memref<64x48xf32, #tpu.memory_space<vmem>>, vector<64x48xf32>,
    %679 = vector.broadcast %668 : vector<64x1xf32> to vector<64x48xf32>
    %680 = arith.subf %666, %679 : vector<64x48xf32>
    %681 = math.log %673 : vector<64x1xf32>
    %682 = vector.broadcast %681 : vector<64x1xf32> to vector<64x48xf32>
    %683 = arith.subf %680, %682 : vector<64x48xf32>
    %c0_282 = arith.constant 0 : index
    %c0_283 = arith.constant 0 : index
    %684 = vector.load %arg20[%c0_282, %c0_283] : memref<64x48xf32, #tpu.memory_space<vmem>>, vector<64x48xf32>
    tpu.vector_store %arg20[%c0_282, %c0_283], %683 {strides = array<i32>} : memref<64x48xf32, #tpu.memory_space<vmem>>, vector<64x48xf32>,
    return
  }
  func.func @transform_0(%arg0: i32) -> (i32, i32) {
    %c0_i32 = arith.constant 0 : i32
    %c0_i32_0 = arith.constant 0 : i32
    %c0_i32_1 = arith.constant 0 : i32
    return %c0_i32, %c0_i32_0 : i32, i32
  }
  func.func @transform_1(%arg0: i32) -> (i32, i32) {
    %c0_i32 = arith.constant 0 : i32
    %c0_i32_0 = arith.constant 0 : i32
    %c0_i32_1 = arith.constant 0 : i32
    return %c0_i32, %c0_i32_0 : i32, i32
  }
  func.func @transform_2(%arg0: i32) -> (i32, i32) {
    %c0_i32 = arith.constant 0 : i32
    %c0_i32_0 = arith.constant 0 : i32
    %c0_i32_1 = arith.constant 0 : i32
    return %c0_i32, %c0_i32_0 : i32, i32
  }
  func.func @transform_3(%arg0: i32) -> (i32, i32) {
    %c0_i32 = arith.constant 0 : i32
    %c0_i32_0 = arith.constant 0 : i32
    %c0_i32_1 = arith.constant 0 : i32
    return %c0_i32, %c0_i32_0 : i32, i32
  }
  func.func @transform_4(%arg0: i32) -> (i32, i32) {
    %c0_i32 = arith.constant 0 : i32
    %c0_i32_0 = arith.constant 0 : i32
    %c0_i32_1 = arith.constant 0 : i32
    return %c0_i32, %c0_i32_0 : i32, i32
  }
  func.func @transform_5(%arg0: i32) -> (i32, i32) {
    %c0_i32 = arith.constant 0 : i32
    %c0_i32_0 = arith.constant 0 : i32
    %c0_i32_1 = arith.constant 0 : i32
    return %c0_i32, %c0_i32_0 : i32, i32
  }
  func.func @transform_6(%arg0: i32) -> (i32, i32) {
    %c0_i32 = arith.constant 0 : i32
    %c0_i32_0 = arith.constant 0 : i32
    %c0_i32_1 = arith.constant 0 : i32
    return %c0_i32, %c0_i32_0 : i32, i32
  }
  func.func @transform_7(%arg0: i32) -> (i32, i32) {
    %c0_i32 = arith.constant 0 : i32
    %c0_i32_0 = arith.constant 0 : i32
    %c0_i32_1 = arith.constant 0 : i32
    return %c0_i32, %c0_i32_0 : i32, i32
  }
  func.func @transform_8(%arg0: i32) -> (i32, i32) {
    %c0_i32 = arith.constant 0 : i32
    %c0_i32_0 = arith.constant 0 : i32
    %c0_i32_1 = arith.constant 0 : i32
    return %c0_i32, %c0_i32_0 : i32, i32
  }
  func.func @transform_9(%arg0: i32) -> (i32, i32) {
    %c0_i32 = arith.constant 0 : i32
    %c0_i32_0 = arith.constant 0 : i32
    %c0_i32_1 = arith.constant 0 : i32
    return %c0_i32, %c0_i32_0 : i32, i32
  }
  func.func @transform_10(%arg0: i32) -> (i32, i32) {
    %c0_i32 = arith.constant 0 : i32
    %c0_i32_0 = arith.constant 0 : i32
    %c0_i32_1 = arith.constant 0 : i32
    return %c0_i32, %c0_i32_0 : i32, i32
  }
  func.func @transform_11(%arg0: i32) -> (i32, i32) {
    %c0_i32 = arith.constant 0 : i32
    %c0_i32_0 = arith.constant 0 : i32
    %c0_i32_1 = arith.constant 0 : i32
    return %c0_i32, %c0_i32_0 : i32, i32
  }
  func.func @transform_12(%arg0: i32) -> (i32, i32) {
    %c0_i32 = arith.constant 0 : i32
    %c0_i32_0 = arith.constant 0 : i32
    %c0_i32_1 = arith.constant 0 : i32
    return %c0_i32, %c0_i32_0 : i32, i32
  }
  func.func @transform_13(%arg0: i32) -> (i32, i32) {
    %c0_i32 = arith.constant 0 : i32
    %c0_i32_0 = arith.constant 0 : i32
    %c0_i32_1 = arith.constant 0 : i32
    return %c0_i32, %c0_i32_0 : i32, i32
  }
  func.func @transform_14(%arg0: i32) -> (i32, i32, i32) {
    %c0_i32 = arith.constant 0 : i32
    %c0_i32_0 = arith.constant 0 : i32
    %c0_i32_1 = arith.constant 0 : i32
    %c0_i32_2 = arith.constant 0 : i32
    return %c0_i32, %c0_i32_0, %c0_i32_1 : i32, i32, i32
  }
  func.func @transform_15(%arg0: i32) -> (i32, i32, i32) {
    %c0_i32 = arith.constant 0 : i32
    %c0_i32_0 = arith.constant 0 : i32
    %c0_i32_1 = arith.constant 0 : i32
    %c0_i32_2 = arith.constant 0 : i32
    return %c0_i32, %c0_i32_0, %c0_i32_1 : i32, i32, i32
  }
  func.func @transform_16(%arg0: i32) -> (i32, i32) {
    %c0_i32 = arith.constant 0 : i32
    %c0_i32_0 = arith.constant 0 : i32
    %c0_i32_1 = arith.constant 0 : i32
    return %c0_i32, %c0_i32_0 : i32, i32
  }
  func.func @transform_17(%arg0: i32) -> (i32, i32) {
    %c0_i32 = arith.constant 0 : i32
    %c0_i32_0 = arith.constant 0 : i32
    %c0_i32_1 = arith.constant 0 : i32
    return %c0_i32, %c0_i32_0 : i32, i32
  }
  func.func @transform_18(%arg0: i32) -> (i32, i32) {
    %c0_i32 = arith.constant 0 : i32
    %c0_i32_0 = arith.constant 0 : i32
    %c0_i32_1 = arith.constant 0 : i32
    return %c0_i32, %c0_i32_0 : i32, i32
  }
  func.func @transform_19(%arg0: i32) -> (i32, i32) {
    %c0_i32 = arith.constant 0 : i32
    %c0_i32_0 = arith.constant 0 : i32
    %c0_i32_1 = arith.constant 0 : i32
    return %c0_i32, %c0_i32_0 : i32, i32
  }
  func.func @transform_20(%arg0: i32) -> (i32, i32, i32) {
    %c0_i32 = arith.constant 0 : i32
    %c0_i32_0 = arith.constant 0 : i32
    %c0_i32_1 = arith.constant 0 : i32
    %c0_i32_2 = arith.constant 0 : i32
    return %c0_i32, %c0_i32_0, %c0_i32_1 : i32, i32, i32
  }
  func.func @transform_21(%arg0: i32) -> (i32, i32, i32) {
    %c0_i32 = arith.constant 0 : i32
    %c0_i32_0 = arith.constant 0 : i32
    %c0_i32_1 = arith.constant 0 : i32
    %c0_i32_2 = arith.constant 0 : i32
    return %c0_i32, %c0_i32_0, %c0_i32_1 : i32, i32, i32
  }
}

</mosaic_0001>

<bundles_post_ra>
// kernel: forward.1
= control target key start
LH: loop header
LB: loop body
LE: loop exit
PB: predicated region body
PF: predicated region fallthrough
CT: control target
= control target key end

     0   :  { %s9513_s0 = inlined_call_operand.vmem [shape: s32[64,1], index: 0, kind: input, shape index: {}]   ;;  %s9514_s1 = inlined_call_operand.vmem [shape: s32[64,1], index: 1, kind: input, shape index: {}]   ;;  %s9515_s2 = inlined_call_operand.vmem [shape: s32[64,1], index: 2, kind: input, shape index: {}]   ;;  %s9516_s3 = inlined_call_operand.vmem [shape: f32[48,48], index: 3, kind: input, shape index: {}]   ;;  %s9517_s4 = inlined_call_operand.vmem [shape: f32[13,48], index: 4, kind: input, shape index: {}]   ;;  %s9518_s5 = inlined_call_operand.vmem [shape: f32[10,32], index: 5, kind: input, shape index: {}]   ;;  %s9519_s6 = inlined_call_operand.hbm [shape: f32[128,512], index: 6, kind: input, shape index: {}]   ;;  %s9520_s7 = inlined_call_operand.hbm [shape: f32[128,512], index: 7, kind: input, shape index: {}]   ;;  %s9521_s8 = inlined_call_operand.vmem [shape: f32[1,512], index: 8, kind: input, shape index: {}]   ;;  %s9522_s9 = inlined_call_operand.hbm [shape: f32[128,512], index: 9, kind: input, shape index: {}]   ;;  %s9523_s10 = inlined_call_operand.hbm [shape: f32[128,512], index: 10, kind: input, shape index: {}]   ;;  %s9524_s11 = inlined_call_operand.vmem [shape: f32[1,512], index: 11, kind: input, shape index: {}]   ;;  %s9525_s12 = inlined_call_operand.vmem [shape: f32[128,48], index: 12, kind: input, shape index: {}]   ;;  %s9526_s13 = inlined_call_operand.vmem [shape: f32[1,48], index: 13, kind: input, shape index: {}]   ;;  %s9527_s14 = inlined_call_operand.vmem [shape: f32[2,8,128], index: 14, kind: input, shape index: {}]   ;;  %s9528_s15 = inlined_call_operand.vmem [shape: f32[2,8,128], index: 15, kind: input, shape index: {}]   ;;  %s9529_s16 = inlined_call_operand.hbm [shape: f32[64,128], index: 16, kind: output, shape index: {0}]   ;;  %s9530_s17 = inlined_call_operand.vmem [shape: f32[64,48], index: 17, kind: output, shape index: {1}]   ;;  %s9531_s18 = inlined_call_operand.vmem [shape: f32[64,48], index: 18, kind: output, shape index: {2}]   ;;  %s9532_s19 = inlined_call_operand.vmem [shape: f32[64,48], index: 19, kind: output, shape index: {3}]   ;;  %s9533_s20 = inlined_call_operand.hbm [shape: f32[2,8,128], index: 20, kind: output, shape index: {4}]   ;;  %s9534_s21 = inlined_call_operand.hbm [shape: f32[2,8,128], index: 21, kind: output, shape index: {5}]  }
   0x1   :  { %9541 = sst [smem:[#allocation22_spill]] %s9513_s0 }
   0x2   :  { %9542 = sst [smem:[#allocation23_spill]] %s9514_s1 }
   0x3   :  { %9543 = sst [smem:[#allocation24_spill]] %s9515_s2 }
   0x4   :  { %9544 = sst [smem:[#allocation25_spill]] %s9516_s3 }
   0x5   :  { %9545 = sst [smem:[#allocation26_spill]] %s9517_s4 }
   0x6   :  { %9546 = sst [smem:[#allocation27_spill]] %s9518_s5 }
   0x7   :  { %27 = vsyncpa [#allocation6], 0 }
   0x8   :  { %28 = vsyncpa [#allocation9], 0 }
   0x9   :  { %29 = vsyncpa [#allocation12], 0 }
   0xa   :  { %30 = vsyncpa [#allocation7], 0 }
   0xb   :  { %31 = vsyncpa [#allocation15], 0  ;;  %s7795_s2 = smov [#allocation8]   ;;  %s7796_s26 = smov [#allocation5]  }
   0xc   :  { %s61_s25 = sshll.u32 %s7795_s2, 4  ;;  %s49_s27 = sshll.u32 %s7796_s26, 4  ;;  %s62_s25 = int_to_ptr.vmem [resolvable:$true] %s61_s25  ;;  %s7921_s27 = int_to_ptr.vmem [resolvable:$true] %s49_s27 }
   0xd   :  { %s7631_s29 = scalar_lea.hbm %s9520_s7, 8192 }
   0xe   :  { %p7632_p0 = scmp.ne.s32.totalorder %s9520_s7, %s7631_s29  ;;  %p7635_p1 = scmp.lt.u32.totalorder %s7631_s29, %s9520_s7 }
  0x10   :  { %p7637_p2 = pnand %p7635_p1, %p7632_p0 }
  0x12   :  { %7640 = shalt.err (!%p7637_p2)
}
  0x13   :  { %s7641_s22 = scalar_lea.vmem %s62_s25, 8192  ;;  %p7646_p4 = scmp.lt.s32.totalorder %s62_s25, %s62_s25 }
  0x14   :  { %p7642_p3 = scmp.ne.s32.totalorder %s62_s25, %s7641_s22  ;;  %p7647_p5 = scmp.lt.s32.totalorder %s7641_s22, %s7641_s22 }
  0x16   :  { %p7648_p6 = por %p7647_p5, %p7646_p4 }
  0x18   :  { %p7649_p7 = pnand %p7648_p6, %p7642_p3 }
  0x1a   :  { %7652 = shalt.err (!%p7649_p7)
}
  0x1b   :  { %s7797_s23 = smov 512   ;;  %s7798_s1 = smov 32  }
  0x1c   :  { %67 = dma.hbm_to_vmem [thread:$0]  %s9520_s7, 8192, %s62_s25, [#allocation9], %s7797_s23, %s7797_s23, %s7798_s1  }
  0x1d   :  { %s7653_s28 = scalar_lea.hbm %s9519_s6, 8192 }
  0x1e   :  { %p7654_p8 = scmp.ne.s32.totalorder %s9519_s6, %s7653_s28  ;;  %p7657_p9 = scmp.lt.u32.totalorder %s7653_s28, %s9519_s6 }
  0x20   :  { %p7659_p10 = pnand %p7657_p9, %p7654_p8 }
  0x22   :  { %7662 = shalt.err (!%p7659_p10)
}
  0x23   :  { %s7663_s5 = scalar_lea.vmem %s7921_s27, 8192  ;;  %p7668_p12 = scmp.lt.s32.totalorder %s7921_s27, %s7921_s27 }
  0x24   :  { %p7664_p11 = scmp.ne.s32.totalorder %s7921_s27, %s7663_s5  ;;  %p7669_p13 = scmp.lt.s32.totalorder %s7663_s5, %s7663_s5 }
  0x26   :  { %p7670_p0 = por %p7669_p13, %p7668_p12 }
  0x28   :  { %p7671_p1 = pnand %p7670_p0, %p7664_p11 }
  0x2a   :  { %7674 = shalt.err (!%p7671_p1)
}
  0x2b   :  { %55 = dma.hbm_to_vmem [thread:$0]  %s9519_s6, 8192, %s7921_s27, [#allocation6], %s7797_s23, %s7797_s23, %s7798_s1  }
  0x2c   :  { %s7799_s22 = smov [#allocation10]   ;;  %s7800_s2 = smov [#allocation11]  }
  0x2d   :  { %s75_s24 = sshll.u32 %s7799_s22, 4  ;;  %s87_s26 = sshll.u32 %s7800_s2, 4  ;;  %s76_s24 = int_to_ptr.vmem [resolvable:$true] %s75_s24  ;;  %s7958_s26 = int_to_ptr.vmem [resolvable:$true] %s87_s26 }
  0x2e   :  { %s7675_s29 = scalar_lea.hbm %s9522_s9, 8192 }
  0x2f   :  { %p7676_p2 = scmp.ne.s32.totalorder %s9522_s9, %s7675_s29  ;;  %p7679_p3 = scmp.lt.u32.totalorder %s7675_s29, %s9522_s9 }
  0x31   :  { %p7681_p4 = pnand %p7679_p3, %p7676_p2 }
  0x33   :  { %7684 = shalt.err (!%p7681_p4)
}
  0x34   :  { %s7685_s6 = scalar_lea.vmem %s76_s24, 8192  ;;  %p7690_p6 = scmp.lt.s32.totalorder %s76_s24, %s76_s24 }
  0x35   :  { %p7686_p5 = scmp.ne.s32.totalorder %s76_s24, %s7685_s6  ;;  %p7691_p7 = scmp.lt.s32.totalorder %s7685_s6, %s7685_s6 }
  0x37   :  { %p7692_p8 = por %p7691_p7, %p7690_p6 }
  0x39   :  { %p7693_p9 = pnand %p7692_p8, %p7686_p5 }
  0x3b   :  { %7696 = shalt.err (!%p7693_p9)
}
  0x3c   :  { %81 = dma.hbm_to_vmem [thread:$0]  %s9522_s9, 8192, %s76_s24, [#allocation9], %s7797_s23, %s7797_s23, %s7798_s1  }
  0x3d   :  { %s7697_s2 = scalar_lea.hbm %s9523_s10, 8192 }
  0x3e   :  { %p7698_p10 = scmp.ne.s32.totalorder %s9523_s10, %s7697_s2  ;;  %p7701_p11 = scmp.lt.u32.totalorder %s7697_s2, %s9523_s10 }
  0x40   :  { %p7703_p12 = pnand %p7701_p11, %p7698_p10 }
  0x42   :  { %7706 = shalt.err (!%p7703_p12)
}
  0x43   :  { %s7707_s4 = scalar_lea.vmem %s7958_s26, 8192  ;;  %p7712_p0 = scmp.lt.s32.totalorder %s7958_s26, %s7958_s26 }
  0x44   :  { %p7708_p13 = scmp.ne.s32.totalorder %s7958_s26, %s7707_s4  ;;  %p7713_p1 = scmp.lt.s32.totalorder %s7707_s4, %s7707_s4 }
  0x46   :  { %p7714_p2 = por %p7713_p1, %p7712_p0 }
  0x48   :  { %p7715_p3 = pnand %p7714_p2, %p7708_p13 }
  0x4a   :  { %7718 = shalt.err (!%p7715_p3)
}
  0x4b   :  { %93 = dma.hbm_to_vmem [thread:$0]  %s9523_s10, 8192, %s7958_s26, [#allocation12], %s7797_s23, %s7797_s23, %s7798_s1  }
  0x4c   :  { %7785 = dma.done.wait [#allocation6], 8192  }
  0x4d   :  { %7786 = vsyncadd [#allocation6], 4294959104 }
  0x4e   :  { %7787 = dma.done.wait [#allocation9], 16384  }
  0x4f   :  { %7788 = vsyncadd [#allocation9], 4294950912 }
  0x50   :  { %7789 = dma.done.wait [#allocation12], 8192  }
  0x51   :  { %7790 = vsyncadd [#allocation12], 4294959104  ;;  %v7801_v0 = vmov 0   ;;  %v7802_v1 = vmov 0.0   ;;  %s9547_s6 = sld [smem:[#allocation22_spill]]  ;;  %s9548_s0 = sld [smem:[#allocation25_spill]]  ;;  %v116_v39 = vlaneseq }
  0x52   :  { %7326 = vset.pattern.permute.xlu1 %v7801_v0  ;;  %7325 = vset.pattern.permute.xlu0 %v7801_v0  ;;  %s9549_s29 = sld [smem:[#allocation23_spill]]  ;;  %s9550_s30 = sld [smem:[#allocation26_spill]]  ;;  %vm401_vm0 = vcmask 1044480   ;;  %vm7803_vm1 = vmmov 1   ;;  %vm180_vm3 = vcmask 392192   ;;  %vm634_vm6 = vcmask 1041408  }
  0x53   :  { %942 = vmatprep.mubr.f32.mxu0 %v7802_v1  ;;  %vm8057_vm2 = vmpackc.low %vm401_vm0, %vm7803_vm1  ;;  %s9553_s24 = sld [smem:[#allocation24_spill]]  ;;  %v8100_v40 = vand.u32 127, %v116_v39  ;;  %s9554_s9 = sld [smem:[#allocation27_spill]]  ;;  %vm376_vm15 = vcmask 105472   ;;  %v802_v51 = vld [vmem:[#allocation5 + $0x50] sm:$0xff] }
  0x54   :  { %vm8116_vm8 = vmpackc.low %vm634_vm6, %vm7803_vm1  ;;  %s7805_s5 = smov 96   ;;  %s7807_s3 = smov [#allocation13]  }
  0x55   :  { %s5657_s28 = sshll.u32 %s7807_s3, 4  ;;  %s5658_s28 = int_to_ptr.vmem [resolvable:$true] %s5657_s28 }
  0x57   :  { %v120_v2 = vld [vmem:[%s9547_s6 + $0x10] sm:$0xff]  ;;  %v118_v3 = vld [vmem:[%s9547_s6] sm:$0xff]  ;;  %v121_v4 = vld [vmem:[%s9547_s6 + $0x18] sm:$0xff] }
  0x58   :  { %133 = vperm.xlu1 %7326, %v120_v2   ;;  %127 = vperm.xlu0 %7325, %v118_v3   ;;  %v119_v5 = vld [vmem:[%s9547_s6 + $0x8] sm:$0xff]  ;;  %v122_v7 = vld [vmem:[%s9547_s6 + $0x20] sm:$0xff]  ;;  %v176_v10 = vld [vmem:[%s9548_s0 + $0x10] sm:$0xff] }
  0x59   :  { %v123_v6 = vld [vmem:[%s9547_s6 + $0x28] sm:$0xff]  ;;  %v174_v8 = vld [vmem:[%s9548_s0] sm:$0xff]  ;;  %v177_v12 = vld [vmem:[%s9548_s0 + $0x18] sm:$0xff] }
  0x5a   :  { %v175_v9 = vld [vmem:[%s9548_s0 + $0x8] sm:$0xff]  ;;  %v125_v13 = vld [vmem:[%s9547_s6 + $0x38] sm:$0xff]  ;;  %v124_v14 = vld [vmem:[%s9547_s6 + $0x30] sm:$0xff]  ;;  %v5977_v15 = vpack.c.bf16 %v177_v12, %v176_v10 }
  0x5b   :  { %v5973_v11 = vpack.c.bf16 %v175_v9, %v174_v8  ;;  %v178_v16 = vld [vmem:[%s9548_s0 + $0x20] sm:$0xff]  ;;  %v179_v17 = vld [vmem:[%s9548_s0 + $0x28] sm:$0xff]  ;;  %v321_v23 = vld [vmem:[%s9549_s29 + $0x18] sm:$0xff] }
  0x5c   :  { %136 = vperm.xlu1 %7326, %v121_v4   ;;  %130 = vperm.xlu0 %7325, %v119_v5   ;;  %v319_v18 = vld [vmem:[%s9549_s29 + $0x8] sm:$0xff]  ;;  %v318_v19 = vld [vmem:[%s9549_s29] sm:$0xff]  ;;  %v5981_v20 = vpack.c.bf16 %v179_v17, %v178_v16  ;;  %v320_v24 = vld [vmem:[%s9549_s29 + $0x10] sm:$0xff] }
  0x5d   :  { %5974 = vmatprep.subr.bf16.mxu1 %v5973_v11  ;;  %v374_v21 = vld [vmem:[%s9550_s30] sm:$0xff]  ;;  %v375_v22 = vld [vmem:[%s9550_s30 + $0x8] sm:$0x1f]  ;;  %v325_v29 = vld [vmem:[%s9549_s29 + $0x38] sm:$0xff]  ;;  %s7804_s30 = smov 48  }
  0x5e   :  { %5976 = vmatpush3.bf16.msra.mxu1 %v5973_v11  ;;  %v5985_v25 = vpack.c.bf16 %v375_v22, %v374_v21  ;;  %v323_v27 = vld [vmem:[%s9549_s29 + $0x28] sm:$0xff]  ;;  %v322_v28 = vld [vmem:[%s9549_s29 + $0x20] sm:$0xff]  ;;  %v324_v30 = vld [vmem:[%s9549_s29 + $0x30] sm:$0xff] }
  0x5f   :  { %5978 = vmatprep.subr.bf16.mxu1 %v5977_v15  ;;  %v552_v31 = vld [vmem:[%s9553_s24 + $0x8] sm:$0xff]  ;;  %v551_v32 = vld [vmem:[%s9553_s24] sm:$0xff]  ;;  %v554_v33 = vld [vmem:[%s9553_s24 + $0x18] sm:$0xff] }
  0x60   :  { %142 = vperm.xlu1 %7326, %v123_v6   ;;  %139 = vperm.xlu0 %7325, %v122_v7   ;;  %v553_v34 = vld [vmem:[%s9553_s24 + $0x10] sm:$0xff]  ;;  %v556_v35 = vld [vmem:[%s9553_s24 + $0x28] sm:$0xff]  ;;  %v555_v36 = vld [vmem:[%s9553_s24 + $0x20] sm:$0xff] }
  0x61   :  { %v558_v37 = vld [vmem:[%s9553_s24 + $0x38] sm:$0xff]  ;;  %v557_v38 = vld [vmem:[%s9553_s24 + $0x30] sm:$0xff]  ;;  %v607_v44 = vld [vmem:[%s9554_s9] sm:$0xff] }
  0x62   :  { %5980 = vmatpush3.bf16.msra.mxu1 %v5977_v15  ;;  %v608_v45 = vld [vmem:[%s9554_s9 + $0x8] sm:$0x3] }
  0x63   :  { %5982 = vmatprep.subr.bf16.mxu1 %v5981_v20  ;;  %v5991_v49 = vpack.c.bf16 %v608_v45, %v607_v44  ;;  %v805_v44 = vld [vmem:[#allocation5 + $0x68] sm:$0xff]  ;;  %v800_v45 = vld [vmem:[#allocation5 + $0x40] sm:$0xff] }
  0x64   :  { %148 = vperm.xlu1 %7326, %v125_v13   ;;  %145 = vperm.xlu0 %7325, %v124_v14  }
  0x66   :  { %5984 = vmatpush3.bf16.msra.mxu1 %v5981_v20 }
  0x67   :  { %5987 = vmatprep.subr.msk.bf16.mxu1 %vm8057_vm2, %v5985_v25 }
  0x68   :  { %330 = vperm.xlu1 %7326, %v319_v18   ;;  %327 = vperm.xlu0 %7325, %v318_v19  }
  0x6c   :  { %336 = vperm.xlu1 %7326, %v321_v23   ;;  %333 = vperm.xlu0 %7325, %v320_v24  }
  0x70   :  { %342 = vperm.xlu1 %7326, %v323_v27   ;;  %339 = vperm.xlu0 %7325, %v322_v28  }
  0x74   :  { %348 = vperm.xlu1 %7326, %v325_v29   ;;  %345 = vperm.xlu0 %7325, %v324_v30   ;;  %v793_v30 = vld [vmem:[#allocation5 + $0x8] sm:$0xff] }
  0x78   :  { %563 = vperm.xlu1 %7326, %v552_v31   ;;  %560 = vperm.xlu0 %7325, %v551_v32   ;;  %v797_v31 = vld [vmem:[#allocation5 + $0x28] sm:$0xff]  ;;  %v792_v32 = vld [vmem:[#allocation5] sm:$0xff] }
  0x7c   :  { %569 = vperm.xlu1 %7326, %v554_v33   ;;  %566 = vperm.xlu0 %7325, %v553_v34   ;;  %v5997_v33 = vpack.c.bf16 %v797_v31, %v793_v30  ;;  %v796_v34 = vld [vmem:[#allocation5 + $0x20] sm:$0xff]  ;;  %v826_v30 = vld [vmem:[#allocation5 + $0x110] sm:$0xff] }
  0x7e   :  { %5998 = vmatprep.subr.bf16.mxu0 %v5997_v33  ;;  %v830_v33 = vld [vmem:[#allocation5 + $0x130] sm:$0xff] }
  0x80   :  { %575 = vperm.xlu1 %7326, %v556_v35   ;;  %572 = vperm.xlu0 %7325, %v555_v36   ;;  %v795_v35 = vld [vmem:[#allocation5 + $0x18] sm:$0xff] }
  0x81   :  { %v799_v36 = vld [vmem:[#allocation5 + $0x38] sm:$0xff] }
  0x84   :  { %581 = vperm.xlu1 %7326, %v558_v37   ;;  %578 = vperm.xlu0 %7325, %v557_v38   ;;  %v5999_v37 = vpack.c.bf16 %v796_v34, %v792_v32  ;;  %v6029_v38 = vpack.c.bf16 %v799_v36, %v795_v35  ;;  %v6047_v35 = vpack.c.bf16 %v830_v33, %v826_v30  ;;  %v833_v36 = vld [vmem:[#allocation5 + $0x148] sm:$0xff] }
  0x86   :  { %6000 = vmatpush1.bf16.msra.mxu0 %v5999_v37  ;;  %v837_v37 = vld [vmem:[#allocation5 + $0x168] sm:$0xff] }
  0xd7   :  { %v134_v41 = vpop.permute.xlu1 %133  ;;  %v128_v42 = vpop.permute.xlu0 %127 }
  0xd8   :  { %vm150_vm4 = vcmp.eq.s32.totalorder %v128_v42, %v8100_v40  ;;  %vm152_vm5 = vcmp.eq.s32.totalorder %v134_v41, %v8100_v40  ;;  %v798_v41 = vld [vmem:[#allocation5 + $0x30] sm:$0xff]  ;;  %v801_v42 = vld [vmem:[#allocation5 + $0x48] sm:$0xff] }
  0xd9   :  { %v5714_v43 = vsel %vm150_vm4, 1.0, %v7802_v1  ;;  %v5716_v48 = vsel %vm152_vm5, 1.0, %v7802_v1 }
  0xda   :  { %5885 = vmatprep.mubr.msk.f32.mxu1 %vm180_vm3, %v5714_v43 }
  0xdb   :  { %v137_v46 = vpop.permute.xlu1 %136  ;;  %v131_v47 = vpop.permute.xlu0 %130 }
  0xdc   :  { %vm151_vm7 = vcmp.eq.s32.totalorder %v131_v47, %v8100_v40  ;;  %vm153_vm9 = vcmp.eq.s32.totalorder %v137_v46, %v8100_v40  ;;  %v804_v46 = vld [vmem:[#allocation5 + $0x60] sm:$0xff]  ;;  %v6001_v47 = vpack.c.bf16 %v805_v44, %v801_v42 }
  0xdd   :  { %v5715_v50 = vsel %vm151_vm7, 1.0, %v7802_v1  ;;  %v5717_v54 = vsel %vm153_vm9, 1.0, %v7802_v1  ;;  %vm609_vm9 = vcmask 80896   ;;  %v832_v42 = vld [vmem:[#allocation5 + $0x140] sm:$0xff] }
  0xde   :  { %5886 = vmatmul.mubr.msk.f32.vlgmr.msra.gmra.mrb[0].mxu1 %vm180_vm3, %v5715_v50  ;;  %v807_v50 = vld [vmem:[#allocation5 + $0x78] sm:$0xff]  ;;  %6002 = vmatprep.subr.bf16.mxu0 %v6001_v47 }
  0xdf   :  { %5990 = vmatpush3.bf16.msk.msra.mxu1 %vm8057_vm2, %v5985_v25  ;;  %v143_v52 = vpop.permute.xlu1 %142  ;;  %5888 = vmatprep.mubr.msk.f32.mxu1 %vm180_vm3, %v5716_v48  ;;  %v140_v53 = vpop.permute.xlu0 %139  ;;  %v6003_v48 = vpack.c.bf16 %v804_v46, %v800_v45  ;;  %v834_v45 = vld [vmem:[#allocation5 + $0x150] sm:$0xff] }
  0xe0   :  { %vm154_vm10 = vcmp.eq.s32.totalorder %v140_v53, %v8100_v40  ;;  %5993 = vmatprep.subr.msk.bf16.mxu1 %vm8116_vm8, %v5991_v49  ;;  %vm155_vm11 = vcmp.eq.s32.totalorder %v143_v52, %v8100_v40  ;;  %v806_v53 = vld [vmem:[#allocation5 + $0x70] sm:$0xff] }
  0xe1   :  { %v5718_v55 = vsel %vm154_vm10, 1.0, %v7802_v1  ;;  %v5719_v58 = vsel %vm155_vm11, 1.0, %v7802_v1  ;;  %6004 = vmatpush1.bf16.msra.mxu0 %v6003_v48  ;;  %v838_v48 = vld [vmem:[#allocation5 + $0x170] sm:$0xff] }
  0xe2   :  { %5889 = vmatmul.mubr.msk.f32.gmra.mrb[2].mxu1 %vm180_vm3, %v5717_v54  ;;  %v809_v54 = vld [vmem:[#allocation5 + $0x88] sm:$0xff] }
  0xe3   :  { %v149_v56 = vpop.permute.xlu1 %148  ;;  %5891 = vmatprep.mubr.msk.f32.mxu1 %vm180_vm3, %v5718_v55  ;;  %v146_v57 = vpop.permute.xlu0 %145  ;;  %v813_v55 = vld [vmem:[#allocation5 + $0xa8] sm:$0xff] }
  0xe4   :  { %vm156_vm12 = vcmp.eq.s32.totalorder %v146_v57, %v8100_v40  ;;  %vm157_vm13 = vcmp.eq.s32.totalorder %v149_v56, %v8100_v40  ;;  %v6035_v56 = vpack.c.bf16 %v806_v53, %v802_v51  ;;  %v6005_v57 = vpack.c.bf16 %v813_v55, %v809_v54  ;;  %v841_v51 = vld [vmem:[#allocation5 + $0x188] sm:$0xff]  ;;  %v843_v54 = vld [vmem:[#allocation5 + $0x198] sm:$0xff] }
  0xe5   :  { %v5720_v59 = vsel %vm156_vm12, 1.0, %v7802_v1  ;;  %v5721_v62 = vsel %vm157_vm13, 1.0, %v7802_v1  ;;  %v847_v55 = vld [vmem:[#allocation5 + $0x1b8] sm:$0xff] }
  0xe6   :  { %5892 = vmatmul.mubr.msk.f32.gmra.mrb[4].mxu1 %vm180_vm3, %v5719_v58  ;;  %6006 = vmatprep.subr.bf16.mxu0 %v6005_v57  ;;  %v844_v57 = vld [vmem:[#allocation5 + $0x1a0] sm:$0xff] }
  0xe7   :  { %v331_v60 = vpop.permute.xlu1 %330  ;;  %5894 = vmatprep.mubr.msk.f32.mxu1 %vm180_vm3, %v5720_v59  ;;  %v328_v61 = vpop.permute.xlu0 %327 }
  0xe8   :  { %vm350_vm14 = vcmp.eq.s32.totalorder %v328_v61, %v8100_v40  ;;  %vm351_vm0 = vcmp.eq.s32.totalorder %v331_v60, %v8100_v40  ;;  %v811_v60 = vld [vmem:[#allocation5 + $0x98] sm:$0xff] }
  0xe9   :  { %v5730_v63 = vsel %vm350_vm14, 1.0, %v7802_v1  ;;  %v5731_v3 = vsel %vm351_vm0, 1.0, %v7802_v1  ;;  %v815_v61 = vld [vmem:[#allocation5 + $0xb8] sm:$0xff] }
  0xea   :  { %5895 = vmatmul.mubr.msk.f32.gmra.mrb[6].mxu1 %vm180_vm3, %v5721_v62  ;;  %v808_v62 = vld [vmem:[#allocation5 + $0x80] sm:$0xff] }
  0xeb   :  { %v337_v0 = vpop.permute.xlu1 %336  ;;  %5901 = vmatprep.mubr.msk.f32.mxu1 %vm376_vm15, %v5730_v63  ;;  %v334_v2 = vpop.permute.xlu0 %333  ;;  %v812_v63 = vld [vmem:[#allocation5 + $0xa0] sm:$0xff] }
  0xec   :  { %vm352_vm1 = vcmp.eq.s32.totalorder %v334_v2, %v8100_v40  ;;  %vm353_vm2 = vcmp.eq.s32.totalorder %v337_v0, %v8100_v40  ;;  %v6037_v0 = vpack.c.bf16 %v815_v61, %v811_v60  ;;  %v810_v2 = vld [vmem:[#allocation5 + $0x90] sm:$0xff] }
  0xed   :  { %v5732_v4 = vsel %vm352_vm1, 1.0, %v7802_v1  ;;  %v5733_v7 = vsel %vm353_vm2, 1.0, %v7802_v1  ;;  %vm542_vm1 = vcmask 785792   ;;  %vm775_vm2 = vcmask 1048320  }
  0xee   :  { %5902 = vmatmul.mubr.msk.f32.vlgmr.msra.gmra.mrb[8].mxu1 %vm376_vm15, %v5731_v3 }
  0xef   :  { %5996 = vmatpush3.bf16.msk.msra.mxu1 %vm8116_vm8, %v5991_v49  ;;  %v343_v5 = vpop.permute.xlu1 %342  ;;  %5904 = vmatprep.mubr.msk.f32.mxu1 %vm376_vm15, %v5732_v4  ;;  %v340_v6 = vpop.permute.xlu0 %339  ;;  %v803_v49 = vld [vmem:[#allocation5 + $0x58] sm:$0xff]  ;;  %v6007_v4 = vpack.c.bf16 %v812_v63, %v808_v62  ;;  %v846_v62 = vld [vmem:[#allocation5 + $0x1b0] sm:$0xff] }
  0xf0   :  { %vm354_vm4 = vcmp.eq.s32.totalorder %v340_v6, %v8100_v40  ;;  %vm355_vm5 = vcmp.eq.s32.totalorder %v343_v5, %v8100_v40  ;;  %6030 = vmatprep.subr.bf16.mxu1 %v6029_v38  ;;  %v6033_v52 = vpack.c.bf16 %v807_v50, %v803_v49  ;;  %v814_v5 = vld [vmem:[#allocation5 + $0xb0] sm:$0xff]  ;;  %v6017_v38 = vpack.c.bf16 %v837_v37, %v833_v36 }
  0xf1   :  { %v5734_v8 = vsel %vm354_vm4, 1.0, %v7802_v1  ;;  %v5735_v11 = vsel %vm355_vm5, 1.0, %v7802_v1  ;;  %6008 = vmatpush1.bf16.msra.mxu0 %v6007_v4  ;;  %v6051_v50 = vpack.c.bf16 %v838_v48, %v834_v45  ;;  %v1151_v45 = vld [vmem:[#allocation8 + $0x48] sm:$0xff]  ;;  %v1157_v48 = vld [vmem:[#allocation8 + $0x78] sm:$0xff] }
  0xf2   :  { %5905 = vmatmul.mubr.msk.f32.gmra.mrb[10].mxu1 %vm376_vm15, %v5733_v7  ;;  %v6039_v7 = vpack.c.bf16 %v814_v5, %v810_v2  ;;  %v849_v2 = vld [vmem:[#allocation5 + $0x1c8] sm:$0xff]  ;;  %v851_v5 = vld [vmem:[#allocation5 + $0x1d8] sm:$0xff] }
  0xf3   :  { %v349_v9 = vpop.permute.xlu1 %348  ;;  %5907 = vmatprep.mubr.msk.f32.mxu1 %vm376_vm15, %v5734_v8  ;;  %v346_v10 = vpop.permute.xlu0 %345  ;;  %v817_v8 = vld [vmem:[#allocation5 + $0xc8] sm:$0xff] }
  0xf4   :  { %vm356_vm6 = vcmp.eq.s32.totalorder %v346_v10, %v8100_v40  ;;  %vm357_vm7 = vcmp.eq.s32.totalorder %v349_v9, %v8100_v40  ;;  %v821_v9 = vld [vmem:[#allocation5 + $0xe8] sm:$0xff] }
  0xf5   :  { %v5736_v12 = vsel %vm356_vm6, 1.0, %v7802_v1  ;;  %v5737_v15 = vsel %vm357_vm7, 1.0, %v7802_v1  ;;  %v6009_v10 = vpack.c.bf16 %v821_v9, %v817_v8  ;;  %v852_v8 = vld [vmem:[#allocation5 + $0x1e0] sm:$0xff] }
  0xf6   :  { %5908 = vmatmul.mubr.msk.f32.gmra.mrb[12].mxu1 %vm376_vm15, %v5735_v11  ;;  %v819_v11 = vld [vmem:[#allocation5 + $0xd8] sm:$0xff] }
  0xf7   :  { %v564_v13 = vpop.permute.xlu1 %563  ;;  %5910 = vmatprep.mubr.msk.f32.mxu1 %vm376_vm15, %v5736_v12  ;;  %v561_v14 = vpop.permute.xlu0 %560  ;;  %v823_v12 = vld [vmem:[#allocation5 + $0xf8] sm:$0xff]  ;;  %6010 = vmatprep.subr.bf16.mxu0 %v6009_v10  ;;  %v850_v10 = vld [vmem:[#allocation5 + $0x1d0] sm:$0xff] }
  0xf8   :  { %vm583_vm8 = vcmp.eq.s32.totalorder %v561_v14, %v8100_v40  ;;  %vm584_vm10 = vcmp.eq.s32.totalorder %v564_v13, %v8100_v40  ;;  %v816_v13 = vld [vmem:[#allocation5 + $0xc0] sm:$0xff] }
  0xf9   :  { %v5747_v16 = vsel %vm583_vm8, 1.0, %v7802_v1  ;;  %v5748_v19 = vsel %vm584_vm10, 1.0, %v7802_v1  ;;  %v820_v14 = vld [vmem:[#allocation5 + $0xe0] sm:$0xff] }
  0xfa   :  { %5911 = vmatmul.mubr.msk.f32.gmra.mrb[14].mxu1 %vm376_vm15, %v5737_v15  ;;  %v6041_v15 = vpack.c.bf16 %v823_v12, %v819_v11 }
  0xfb   :  { %v570_v17 = vpop.permute.xlu1 %569  ;;  %5917 = vmatprep.mubr.msk.f32.mxu1 %vm609_vm9, %v5747_v16  ;;  %v567_v18 = vpop.permute.xlu0 %566  ;;  %v818_v16 = vld [vmem:[#allocation5 + $0xd0] sm:$0xff] }
  0xfc   :  { %vm585_vm11 = vcmp.eq.s32.totalorder %v567_v18, %v8100_v40  ;;  %vm586_vm12 = vcmp.eq.s32.totalorder %v570_v17, %v8100_v40  ;;  %v6011_v18 = vpack.c.bf16 %v820_v14, %v816_v13  ;;  %v854_v13 = vld [vmem:[#allocation5 + $0x1f0] sm:$0xff] }
  0xfd   :  { %v5749_v20 = vsel %vm585_vm11, 1.0, %v7802_v1  ;;  %v5750_v23 = vsel %vm586_vm12, 1.0, %v7802_v1 }
  0xfe   :  { %5918 = vmatmul.mubr.msk.f32.vlgmr.msra.gmra.mrb[16].mxu1 %vm609_vm9, %v5748_v19  ;;  %v822_v19 = vld [vmem:[#allocation5 + $0xf0] sm:$0xff]  ;;  %6012 = vmatpush1.bf16.msra.mxu0 %v6011_v18 }
  0xff   :  { %v576_v21 = vpop.permute.xlu1 %575  ;;  %5920 = vmatprep.mubr.msk.f32.mxu1 %vm609_vm9, %v5749_v20  ;;  %v573_v22 = vpop.permute.xlu0 %572 }
 0x100   :  { %vm587_vm13 = vcmp.eq.s32.totalorder %v573_v22, %v8100_v40  ;;  %vm588_vm14 = vcmp.eq.s32.totalorder %v576_v21, %v8100_v40  ;;  %v6043_v21 = vpack.c.bf16 %v822_v19, %v818_v16  ;;  %v825_v22 = vld [vmem:[#allocation5 + $0x108] sm:$0xff]  ;;  %v1145_v19 = vld [vmem:[#allocation8 + $0x18] sm:$0xff] }
 0x101   :  { %v5751_v24 = vsel %vm587_vm13, 1.0, %v7802_v1  ;;  %v5752_v27 = vsel %vm588_vm14, 1.0, %v7802_v1  ;;  %v1143_v16 = vld [vmem:[#allocation8 + $0x8] sm:$0xff] }
 0x102   :  { %5921 = vmatmul.mubr.msk.f32.gmra.mrb[18].mxu1 %vm609_vm9, %v5750_v23  ;;  %v829_v23 = vld [vmem:[#allocation5 + $0x128] sm:$0xff] }
 0x103   :  { %v582_v25 = vpop.permute.xlu1 %581  ;;  %5923 = vmatprep.mubr.msk.f32.mxu1 %vm609_vm9, %v5751_v24  ;;  %v579_v26 = vpop.permute.xlu0 %578  ;;  %v6013_v24 = vpack.c.bf16 %v829_v23, %v825_v22 }
 0x104   :  { %vm589_vm15 = vcmp.eq.s32.totalorder %v579_v26, %v8100_v40  ;;  %vm590_vm0 = vcmp.eq.s32.totalorder %v582_v25, %v8100_v40  ;;  %v794_v40 = vld [vmem:[#allocation5 + $0x10] sm:$0xff]  ;;  %v827_v25 = vld [vmem:[#allocation5 + $0x118] sm:$0xff] }
 0x105   :  { %v5753_v28 = vsel %vm589_vm15, 1.0, %v7802_v1  ;;  %v5754_v29 = vsel %vm590_vm0, 1.0, %v7802_v1  ;;  %v6031_v43 = vpack.c.bf16 %v798_v41, %v794_v40  ;;  %v831_v26 = vld [vmem:[#allocation5 + $0x138] sm:$0xff]  ;;  %6014 = vmatprep.subr.bf16.mxu0 %v6013_v24 }
 0x106   :  { %5924 = vmatmul.mubr.msk.f32.gmra.mrb[20].mxu1 %vm609_vm9, %v5752_v27  ;;  %v824_v27 = vld [vmem:[#allocation5 + $0x100] sm:$0xff]  ;;  %v835_v40 = vld [vmem:[#allocation5 + $0x158] sm:$0xff] }
 0x107   :  { %5926 = vmatprep.mubr.msk.f32.mxu1 %vm609_vm9, %v5753_v28  ;;  %6032 = vmatpush1.bf16.msra.mxu1 %v6031_v43  ;;  %v828_v28 = vld [vmem:[#allocation5 + $0x120] sm:$0xff]  ;;  %v839_v41 = vld [vmem:[#allocation5 + $0x178] sm:$0xff] }
 0x108   :  { %6034 = vmatprep.subr.bf16.mxu1 %v6033_v52  ;;  %v6015_v32 = vpack.c.bf16 %v828_v28, %v824_v27  ;;  %v836_v43 = vld [vmem:[#allocation5 + $0x160] sm:$0xff]  ;;  %v6049_v44 = vpack.c.bf16 %v839_v41, %v835_v40  ;;  %v845_v52 = vld [vmem:[#allocation5 + $0x1a8] sm:$0xff]  ;;  %v1144_v41 = vld [vmem:[#allocation8 + $0x10] sm:$0xff] }
 0x109   :  { %v6019_v47 = vpack.c.bf16 %v836_v43, %v832_v42  ;;  %v6021_v53 = vpack.c.bf16 %v845_v52, %v841_v51  ;;  %v1146_v40 = vld [vmem:[#allocation8 + $0x20] sm:$0xff]  ;;  %v1148_v42 = vld [vmem:[#allocation8 + $0x30] sm:$0xff] }
 0x10a   :  { %5927 = vmatmul.mubr.msk.f32.gmra.mrb[22].mxu1 %vm609_vm9, %v5754_v29  ;;  %v6045_v29 = vpack.c.bf16 %v831_v26, %v827_v25  ;;  %6016 = vmatpush1.bf16.msra.mxu0 %v6015_v32  ;;  %v1150_v51 = vld [vmem:[#allocation8 + $0x40] sm:$0xff] }
 0x10b   :  { %1055 = vmatprep.mubr.f32.mxu1 %v7802_v1  ;;  %6036 = vmatpush1.bf16.msra.mxu1 %v6035_v56  ;;  %v840_v56 = vld [vmem:[#allocation5 + $0x180] sm:$0xff] }
 0x10c   :  { %6038 = vmatprep.subr.bf16.mxu1 %v6037_v0  ;;  %6018 = vmatprep.subr.bf16.mxu0 %v6017_v38  ;;  %v6023_v61 = vpack.c.bf16 %v844_v57, %v840_v56  ;;  %v1142_v38 = vld [vmem:[#allocation8] sm:$0xff] }
 0x10d   :  { %v1154_v52 = vld [vmem:[#allocation8 + $0x60] sm:$0xff] }
 0x10e   :  { %6020 = vmatpush1.bf16.msra.mxu0 %v6019_v47  ;;  %v1153_v47 = vld [vmem:[#allocation8 + $0x58] sm:$0xff] }
 0x10f   :  { %6040 = vmatpush1.bf16.msra.mxu1 %v6039_v7  ;;  %6022 = vmatprep.subr.bf16.mxu0 %v6021_v53  ;;  %v848_v7 = vld [vmem:[#allocation5 + $0x1c0] sm:$0xff]  ;;  %v1152_v53 = vld [vmem:[#allocation8 + $0x50] sm:$0xff] }
 0x110   :  { %6042 = vmatprep.subr.bf16.mxu1 %v6041_v15  ;;  %v6027_v12 = vpack.c.bf16 %v852_v8, %v848_v7  ;;  %v6059_v15 = vpack.c.bf16 %v854_v13, %v850_v10  ;;  %v1171_v13 = vld [vmem:[#allocation8 + $0xe8] sm:$0xff] }
 0x112   :  { %6024 = vmatpush1.bf16.msra.mxu0 %v6023_v61  ;;  %v1163_v61 = vld [vmem:[#allocation8 + $0xa8] sm:$0xff] }
 0x113   :  { %6044 = vmatpush1.bf16.msra.mxu1 %v6043_v21 }
 0x114   :  { %6046 = vmatprep.subr.bf16.mxu1 %v6045_v29 }
 0x117   :  { %6048 = vmatpush1.bf16.msra.mxu1 %v6047_v35 }
 0x118   :  { %6050 = vmatprep.subr.bf16.mxu1 %v6049_v44 }
 0x11b   :  { %6052 = vmatpush1.bf16.msra.mxu1 %v6051_v50  ;;  %v8224_v50 = vpack.c.bf16 %v1148_v42, %v1144_v41 }
 0x1b1   :  { %v5887_v58 = vpop.f32.mrb[0].mxu1 }
 0x1b2   :  { %311 = vst.msk [vmem:[#allocation2 + $0x8] sm:$0xff] %vm180_vm3, %v5887_v58  ;;  %v271_v59 = vpop.f32.mrb[1].mxu1  ;;  %v6053_v58 = vpack.c.bf16 %v847_v55, %v843_v54  ;;  %v1156_v54 = vld [vmem:[#allocation8 + $0x70] sm:$0xff] }
 0x1b3   :  { %310 = vst.msk [vmem:[#allocation2] sm:$0xff] %vm180_vm3, %v271_v59  ;;  %v842_v59 = vld [vmem:[#allocation5 + $0x190] sm:$0xff] }
 0x1b4   :  { %6054 = vmatprep.subr.bf16.mxu1 %v6053_v58  ;;  %v6055_v0 = vpack.c.bf16 %v846_v62, %v842_v59  ;;  %v8228_v59 = vpack.c.bf16 %v1157_v48, %v1153_v47  ;;  %v1161_v62 = vld [vmem:[#allocation8 + $0x98] sm:$0xff] }
 0x1b5   :  { %v5890_v3 = vpop.f32.mrb[2].mxu1 }
 0x1b6   :  { %313 = vst.msk [vmem:[#allocation2 + $0x18] sm:$0xff] %vm180_vm3, %v5890_v3  ;;  %v281_v6 = vpop.f32.mrb[3].mxu1  ;;  %v853_v3 = vld [vmem:[#allocation5 + $0x1e8] sm:$0xff]  ;;  %6056 = vmatpush1.bf16.msra.mxu1 %v6055_v0  ;;  %v8234_v0 = vpack.c.bf16 %v1154_v52, %v1150_v51  ;;  %v1182_v51 = vld [vmem:[#allocation8 + $0x140] sm:$0xff] }
 0x1b7   :  { %312 = vst.msk [vmem:[#allocation2 + $0x10] sm:$0xff] %vm180_vm3, %v281_v6  ;;  %v6025_v4 = vpack.c.bf16 %v853_v3, %v849_v2  ;;  %v855_v6 = vld [vmem:[#allocation5 + $0x1f8] sm:$0xff]  ;;  %v8236_v2 = vpack.c.bf16 %v1156_v54, %v1152_v53  ;;  %v1158_v3 = vld [vmem:[#allocation8 + $0x80] sm:$0xff]  ;;  %v1184_v53 = vld [vmem:[#allocation8 + $0x150] sm:$0xff] }
 0x1b8   :  { %v6057_v9 = vpack.c.bf16 %v855_v6, %v851_v5  ;;  %v1160_v5 = vld [vmem:[#allocation8 + $0x90] sm:$0xff]  ;;  %v1186_v52 = vld [vmem:[#allocation8 + $0x160] sm:$0xff] }
 0x1b9   :  { %v5893_v17 = vpop.f32.mrb[4].mxu1  ;;  %6026 = vmatprep.subr.bf16.mxu0 %v6025_v4  ;;  %v1162_v4 = vld [vmem:[#allocation8 + $0xa0] sm:$0xff]  ;;  %v1164_v6 = vld [vmem:[#allocation8 + $0xb0] sm:$0xff] }
 0x1ba   :  { %315 = vst.msk [vmem:[#allocation2 + $0x28] sm:$0xff] %vm180_vm3, %v5893_v17  ;;  %v291_v20 = vpop.f32.mrb[5].mxu1  ;;  %6058 = vmatprep.subr.bf16.mxu1 %v6057_v9  ;;  %v1147_v17 = vld [vmem:[#allocation8 + $0x28] sm:$0xff]  ;;  %6028 = vmatpush1.bf16.msra.mxu0 %v6027_v12  ;;  %v1188_v54 = vld [vmem:[#allocation8 + $0x170] sm:$0xff] }
 0x1bb   :  { %314 = vst.msk [vmem:[#allocation2 + $0x20] sm:$0xff] %vm180_vm3, %v291_v20  ;;  %v8203_v18 = vpack.c.bf16 %v1147_v17, %v1143_v16  ;;  %v1149_v20 = vld [vmem:[#allocation8 + $0x38] sm:$0xff]  ;;  %6060 = vmatpush1.bf16.msra.mxu1 %v6059_v15  ;;  %v1167_v12 = vld [vmem:[#allocation8 + $0xc8] sm:$0xff]  ;;  %v8250_v16 = vpack.c.bf16 %v1162_v4, %v1158_v3  ;;  %v8252_v17 = vpack.c.bf16 %v1164_v6, %v1160_v5  ;;  %v1190_v6 = vld [vmem:[#allocation8 + $0x180] sm:$0xff] }
 0x1bc   :  { %v8205_v21 = vpack.c.bf16 %v1149_v20, %v1145_v19  ;;  %v1173_v15 = vld [vmem:[#allocation8 + $0xf8] sm:$0xff]  ;;  %v1166_v19 = vld [vmem:[#allocation8 + $0xc0] sm:$0xff]  ;;  %v8295_v4 = vpack.c.bf16 %v1186_v52, %v1182_v51  ;;  %v8297_v5 = vpack.c.bf16 %v1188_v54, %v1184_v53 }
 0x1bd   :  { %v5896_v31 = vpop.f32.mrb[6].mxu1  ;;  %6062 = vmatprep.subr.bf16.mxu0 %v8203_v18  ;;  %v1170_v20 = vld [vmem:[#allocation8 + $0xe0] sm:$0xff]  ;;  %v1197_v3 = vld [vmem:[#allocation8 + $0x1b8] sm:$0xff] }
 0x1be   :  { %317 = vst.msk [vmem:[#allocation2 + $0x38] sm:$0xff] %vm180_vm3, %v5896_v31  ;;  %v301_v34 = vpop.f32.mrb[7].mxu1  ;;  %6094 = vmatprep.subr.bf16.mxu1 %v8205_v21 }
 0x1bf   :  { %316 = vst.msk [vmem:[#allocation2 + $0x30] sm:$0xff] %vm180_vm3, %v301_v34 }
 0x1c1   :  { %v5903_v46 = vpop.f32.mrb[8].mxu1 }
 0x1c2   :  { %v471_v49 = vpop.f32.mrb[9].mxu1 }
 0x1c3   :  { %518 = vrot.lane.b32.xlu0 %v471_v49, %s7804_s30  ;;  %v8222_v49 = vpack.c.bf16 %v1146_v40, %v1142_v38 }
 0x1c5   :  { %v5906_v60 = vpop.f32.mrb[10].mxu1 }
 0x1c6   :  { %v481_v63 = vpop.f32.mrb[11].mxu1 }
 0x1c7   :  { %520 = vrot.lane.b32.xlu0 %v5903_v46, %s7804_s30  ;;  %v1155_v46 = vld [vmem:[#allocation8 + $0x68] sm:$0xff] }
 0x1c8   :  { %v8226_v58 = vpack.c.bf16 %v1155_v46, %v1151_v45  ;;  %v1185_v45 = vld [vmem:[#allocation8 + $0x158] sm:$0xff] }
 0x1c9   :  { %v5909_v11 = vpop.f32.mrb[12].mxu1  ;;  %v1189_v46 = vld [vmem:[#allocation8 + $0x178] sm:$0xff] }
 0x1ca   :  { %v491_v14 = vpop.f32.mrb[13].mxu1 }
 0x1cb   :  { %522 = vrot.lane.b32.xlu0 %v481_v63, %s7804_s30  ;;  %v1165_v63 = vld [vmem:[#allocation8 + $0xb8] sm:$0xff] }
 0x1cd   :  { %v5912_v22 = vpop.f32.mrb[14].mxu1 }
 0x1ce   :  { %v501_v23 = vpop.f32.mrb[15].mxu1 }
 0x1cf   :  { %524 = vrot.lane.b32.xlu0 %v5906_v60, %s7804_s30  ;;  %v1159_v60 = vld [vmem:[#allocation8 + $0x88] sm:$0xff] }
 0x1d0   :  { %v8242_v10 = vpack.c.bf16 %v1163_v61, %v1159_v60  ;;  %v8290_v60 = vpack.c.bf16 %v1189_v46, %v1185_v45  ;;  %v1191_v61 = vld [vmem:[#allocation8 + $0x188] sm:$0xff]  ;;  %v856_v46 = vld [vmem:[%s9521_s8] sm:$0xf] }
 0x1d1   :  { %v5919_v24 = vpop.f32.mrb[16].mxu1 }
 0x1d2   :  { %v704_v25 = vpop.f32.mrb[17].mxu1 }
 0x1d3   :  { %526 = vrot.lane.b32.xlu0 %v491_v14, %s7804_s30  ;;  %751 = vrot.lane.b32.xlu1 %v704_v25, %s7805_s5  ;;  %v1169_v14 = vld [vmem:[#allocation8 + $0xd8] sm:$0xff] }
 0x1d5   :  { %v5922_v26 = vpop.f32.mrb[18].mxu1 }
 0x1d6   :  { %v714_v27 = vpop.f32.mrb[19].mxu1 }
 0x1d7   :  { %528 = vrot.lane.b32.xlu0 %v5909_v11, %s7804_s30  ;;  %753 = vrot.lane.b32.xlu1 %v5919_v24, %s7805_s5  ;;  %v8244_v11 = vpack.c.bf16 %v1165_v63, %v1161_v62  ;;  %v1195_v62 = vld [vmem:[#allocation8 + $0x1a8] sm:$0xff]  ;;  %v1193_v63 = vld [vmem:[#allocation8 + $0x198] sm:$0xff] }
 0x1d9   :  { %v5925_v28 = vpop.f32.mrb[20].mxu1 }
 0x1da   :  { %v724_v29 = vpop.f32.mrb[21].mxu1 }
 0x1db   :  { %530 = vrot.lane.b32.xlu0 %v501_v23, %s7804_s30  ;;  %755 = vrot.lane.b32.xlu1 %v714_v27, %s7805_s5  ;;  %v1172_v23 = vld [vmem:[#allocation8 + $0xf0] sm:$0xff]  ;;  %v8260_v27 = vpack.c.bf16 %v1173_v15, %v1169_v14  ;;  %v8303_v14 = vpack.c.bf16 %v1195_v62, %v1191_v61  ;;  %v8305_v15 = vpack.c.bf16 %v1197_v3, %v1193_v63 }
 0x1dd   :  { %v5928_v30 = vpop.f32.mrb[22].mxu1 }
 0x1de   :  { %v734_v31 = vpop.f32.mrb[23].mxu1 }
 0x1df   :  { %532 = vrot.lane.b32.xlu0 %v5912_v22, %s7804_s30  ;;  %757 = vrot.lane.b32.xlu1 %v5922_v26, %s7805_s5  ;;  %v1168_v22 = vld [vmem:[#allocation8 + $0xd0] sm:$0xff]  ;;  %v8258_v26 = vpack.c.bf16 %v1171_v13, %v1167_v12 }
 0x1e3   :  { %759 = vrot.lane.b32.xlu1 %v724_v29, %s7805_s5  ;;  %v1179_v29 = vld [vmem:[#allocation8 + $0x128] sm:$0xff] }
 0x1e7   :  { %761 = vrot.lane.b32.xlu1 %v5925_v28, %s7805_s5  ;;  %v1175_v28 = vld [vmem:[#allocation8 + $0x108] sm:$0xff] }
 0x1e8   :  { %v8273_v41 = vpack.c.bf16 %v1179_v29, %v1175_v28  ;;  %v1198_v28 = vld [vmem:[#allocation8 + $0x1c0] sm:$0xff] }
 0x1e9   :  { %v1202_v29 = vld [vmem:[#allocation8 + $0x1e0] sm:$0xff] }
 0x1eb   :  { %763 = vrot.lane.b32.xlu1 %v734_v31, %s7805_s5  ;;  %v1181_v31 = vld [vmem:[#allocation8 + $0x138] sm:$0xff] }
 0x1ef   :  { %765 = vrot.lane.b32.xlu1 %v5928_v30, %s7805_s5  ;;  %v1177_v30 = vld [vmem:[#allocation8 + $0x118] sm:$0xff] }
 0x1f0   :  { %v8275_v42 = vpack.c.bf16 %v1181_v31, %v1177_v30  ;;  %v1200_v30 = vld [vmem:[#allocation8 + $0x1d0] sm:$0xff] }
 0x1f1   :  { %v1204_v31 = vld [vmem:[#allocation8 + $0x1f0] sm:$0xff] }
 0x235   :  { %v519_v32 = vpop.permute.xlu0 %518 }
 0x236   :  { %543 = vst.msk [vmem:[#allocation2] sm:$0xff] %vm542_vm1, %v519_v32  ;;  %v8265_v32 = vpack.c.bf16 %v1170_v20, %v1166_v19  ;;  %v1199_v19 = vld [vmem:[#allocation8 + $0x1c8] sm:$0xff] }
 0x237   :  { %v1203_v20 = vld [vmem:[#allocation8 + $0x1e8] sm:$0xff] }
 0x239   :  { %v521_v33 = vpop.permute.xlu0 %520 }
 0x23a   :  { %544 = vst.msk [vmem:[#allocation2 + $0x8] sm:$0xff] %vm542_vm1, %v521_v33  ;;  %v8267_v33 = vpack.c.bf16 %v1172_v23, %v1168_v22  ;;  %v1201_v22 = vld [vmem:[#allocation8 + $0x1d8] sm:$0xff] }
 0x23b   :  { %v1205_v23 = vld [vmem:[#allocation8 + $0x1f8] sm:$0xff] }
 0x23d   :  { %v523_v34 = vpop.permute.xlu0 %522 }
 0x23e   :  { %545 = vst.msk [vmem:[#allocation2 + $0x10] sm:$0xff] %vm542_vm1, %v523_v34  ;;  %v1174_v34 = vld [vmem:[#allocation8 + $0x100] sm:$0xff] }
 0x241   :  { %v525_v35 = vpop.permute.xlu0 %524 }
 0x242   :  { %546 = vst.msk [vmem:[#allocation2 + $0x18] sm:$0xff] %vm542_vm1, %v525_v35  ;;  %v1178_v35 = vld [vmem:[#allocation8 + $0x120] sm:$0xff] }
 0x243   :  { %v8280_v47 = vpack.c.bf16 %v1178_v35, %v1174_v34  ;;  %v8318_v35 = vpack.c.bf16 %v1203_v20, %v1199_v19 }
 0x245   :  { %v752_v36 = vpop.permute.xlu1 %751  ;;  %v527_v37 = vpop.permute.xlu0 %526 }
 0x246   :  { %776 = vst.msk [vmem:[#allocation2] sm:$0xff] %vm775_vm2, %v752_v36  ;;  %v1176_v36 = vld [vmem:[#allocation8 + $0x110] sm:$0xff] }
 0x247   :  { %547 = vst.msk [vmem:[#allocation2 + $0x20] sm:$0xff] %vm542_vm1, %v527_v37  ;;  %v1180_v37 = vld [vmem:[#allocation8 + $0x130] sm:$0xff] }
 0x248   :  { %v8282_v48 = vpack.c.bf16 %v1180_v37, %v1176_v36  ;;  %v8320_v36 = vpack.c.bf16 %v1205_v23, %v1201_v22  ;;  %v8324_v37 = vpack.c.bf16 %v1202_v29, %v1198_v28  ;;  %v1137_v29 = vld [vmem:[%s9528_s15] sm:$0xff] }
 0x249   :  { %v754_v43 = vpop.permute.xlu1 %753  ;;  %v529_v44 = vpop.permute.xlu0 %528 }
 0x24a   :  { %777 = vst.msk [vmem:[#allocation2 + $0x8] sm:$0xff] %vm775_vm2, %v754_v43  ;;  %v1183_v43 = vld [vmem:[#allocation8 + $0x148] sm:$0xff] }
 0x24b   :  { %548 = vst.msk [vmem:[#allocation2 + $0x28] sm:$0xff] %vm542_vm1, %v529_v44  ;;  %v1187_v44 = vld [vmem:[#allocation8 + $0x168] sm:$0xff] }
 0x24d   :  { %v756_v55 = vpop.permute.xlu1 %755  ;;  %v531_v56 = vpop.permute.xlu0 %530  ;;  %v784_v57 = vld [vmem:[#allocation2] sm:$0xff] }
 0x24e   :  { %778 = vst.msk [vmem:[#allocation2 + $0x10] sm:$0xff] %vm775_vm2, %v756_v55  ;;  %943 = vmatmul.mubr.f32.vlgmr.msra.gmra.mrb[0].mxu0 %v784_v57  ;;  %1056 = vmatmul.mubr.f32.vlgmr.msra.gmra.mrb[24].mxu1 %v784_v57  ;;  %v8288_v57 = vpack.c.bf16 %v1187_v44, %v1183_v43  ;;  %v1136_v43 = vld [vmem:[%s9527_s14] sm:$0xff]  ;;  %v8376_v44 = vshrl.u32 %v116_v39, 7 }
 0x24f   :  { %549 = vst.msk [vmem:[#allocation2 + $0x30] sm:$0xff] %vm542_vm1, %v531_v56  ;;  %6064 = vmatpush1.bf16.msra.mxu0 %v8222_v49  ;;  %6096 = vmatpush1.bf16.msra.mxu1 %v8224_v50 }
 0x250   :  { %948 = vmatprep.mubr.f32.mxu0 %v7802_v1  ;;  %1061 = vmatprep.mubr.f32.mxu1 %v7802_v1  ;;  %v860_v45 = vsub.s32 0, %v8376_v44  ;;  %v864_v51 = vsub.s32 1, %v8376_v44  ;;  %v872_v39 = vsub.s32 3, %v8376_v44 }
 0x251   :  { %v758_v7 = vpop.permute.xlu1 %757  ;;  %6066 = vmatprep.subr.bf16.mxu0 %v8226_v58  ;;  %v533_v8 = vpop.permute.xlu0 %532  ;;  %v785_v9 = vld [vmem:[#allocation2 + $0x8] sm:$0xff]  ;;  %6098 = vmatprep.subr.bf16.mxu1 %v8228_v59 }
 0x252   :  { %779 = vst.msk [vmem:[#allocation2 + $0x18] sm:$0xff] %vm775_vm2, %v758_v7  ;;  %949 = vmatmul.mubr.f32.gmra.mrb[2].mxu0 %v785_v9  ;;  %1062 = vmatmul.mubr.f32.gmra.mrb[26].mxu1 %v785_v9  ;;  %v1194_v7 = vld [vmem:[#allocation8 + $0x1a0] sm:$0xff]  ;;  %v1196_v9 = vld [vmem:[#allocation8 + $0x1b0] sm:$0xff]  ;;  %v8385_v52 = vrot.slane %v856_v46, %v860_v45  ;;  %v8396_v3 = vrot.slane %v856_v46, %v872_v39 }
 0x253   :  { %550 = vst.msk [vmem:[#allocation2 + $0x38] sm:$0xff] %vm542_vm1, %v533_v8  ;;  %6068 = vmatpush1.bf16.msra.mxu0 %v8234_v0  ;;  %6100 = vmatpush1.bf16.msra.mxu1 %v8236_v2  ;;  %v1192_v8 = vld [vmem:[#allocation8 + $0x190] sm:$0xff] }
 0x254   :  { %954 = vmatprep.mubr.f32.mxu0 %v7802_v1  ;;  %1067 = vmatprep.mubr.f32.mxu1 %v7802_v1 }
 0x255   :  { %v760_v24 = vpop.permute.xlu1 %759  ;;  %6070 = vmatprep.subr.bf16.mxu0 %v8242_v10  ;;  %v786_v25 = vld [vmem:[#allocation2 + $0x10] sm:$0xff]  ;;  %6102 = vmatprep.subr.bf16.mxu1 %v8244_v11 }
 0x256   :  { %780 = vst.msk [vmem:[#allocation2 + $0x20] sm:$0xff] %vm775_vm2, %v760_v24  ;;  %955 = vmatmul.mubr.f32.gmra.mrb[4].mxu0 %v786_v25  ;;  %1068 = vmatmul.mubr.f32.gmra.mrb[28].mxu1 %v786_v25  ;;  %v8310_v24 = vpack.c.bf16 %v1194_v7, %v1190_v6  ;;  %v8312_v25 = vpack.c.bf16 %v1196_v9, %v1192_v8  ;;  %v868_v6 = vsub.s32 2, %v8376_v44 }
 0x257   :  { %6072 = vmatpush1.bf16.msra.mxu0 %v8250_v16  ;;  %6104 = vmatpush1.bf16.msra.mxu1 %v8252_v17 }
 0x258   :  { %960 = vmatprep.mubr.f32.mxu0 %v7802_v1  ;;  %1073 = vmatprep.mubr.f32.mxu1 %v7802_v1  ;;  %v8402_v8 = vrot.slane %v856_v46, %v868_v6 }
 0x259   :  { %v762_v38 = vpop.permute.xlu1 %761  ;;  %6074 = vmatprep.subr.bf16.mxu0 %v8258_v26  ;;  %v787_v40 = vld [vmem:[#allocation2 + $0x18] sm:$0xff]  ;;  %6106 = vmatprep.subr.bf16.mxu1 %v8260_v27 }
 0x25a   :  { %781 = vst.msk [vmem:[#allocation2 + $0x28] sm:$0xff] %vm775_vm2, %v762_v38  ;;  %961 = vmatmul.mubr.f32.gmra.mrb[6].mxu0 %v787_v40  ;;  %1074 = vmatmul.mubr.f32.gmra.mrb[30].mxu1 %v787_v40  ;;  %v8326_v38 = vpack.c.bf16 %v1204_v31, %v1200_v30 }
 0x25b   :  { %6076 = vmatpush1.bf16.msra.mxu0 %v8265_v32  ;;  %6108 = vmatpush1.bf16.msra.mxu1 %v8267_v33 }
 0x25c   :  { %966 = vmatprep.mubr.f32.mxu0 %v7802_v1  ;;  %1079 = vmatprep.mubr.f32.mxu1 %v7802_v1 }
 0x25d   :  { %v764_v55 = vpop.permute.xlu1 %763  ;;  %6078 = vmatprep.subr.bf16.mxu0 %v8273_v41  ;;  %v788_v56 = vld [vmem:[#allocation2 + $0x20] sm:$0xff]  ;;  %6110 = vmatprep.subr.bf16.mxu1 %v8275_v42 }
 0x25e   :  { %782 = vst.msk [vmem:[#allocation2 + $0x30] sm:$0xff] %vm775_vm2, %v764_v55  ;;  %967 = vmatmul.mubr.f32.gmra.mrb[8].mxu0 %v788_v56  ;;  %1080 = vmatmul.mubr.f32.gmra.mrb[32].mxu1 %v788_v56 }
 0x25f   :  { %6080 = vmatpush1.bf16.msra.mxu0 %v8280_v47  ;;  %6112 = vmatpush1.bf16.msra.mxu1 %v8282_v48 }
 0x260   :  { %972 = vmatprep.mubr.f32.mxu0 %v7802_v1  ;;  %1085 = vmatprep.mubr.f32.mxu1 %v7802_v1 }
 0x261   :  { %v766_v12 = vpop.permute.xlu1 %765  ;;  %6082 = vmatprep.subr.bf16.mxu0 %v8288_v57  ;;  %v789_v13 = vld [vmem:[#allocation2 + $0x28] sm:$0xff]  ;;  %6114 = vmatprep.subr.bf16.mxu1 %v8290_v60 }
 0x262   :  { %783 = vst.msk [vmem:[#allocation2 + $0x38] sm:$0xff] %vm775_vm2, %v766_v12  ;;  %973 = vmatmul.mubr.f32.gmra.mrb[10].mxu0 %v789_v13  ;;  %1086 = vmatmul.mubr.f32.gmra.mrb[34].mxu1 %v789_v13 }
 0x263   :  { %6084 = vmatpush1.bf16.msra.mxu0 %v8295_v4  ;;  %6116 = vmatpush1.bf16.msra.mxu1 %v8297_v5 }
 0x264   :  { %978 = vmatprep.mubr.f32.mxu0 %v7802_v1  ;;  %1091 = vmatprep.mubr.f32.mxu1 %v7802_v1 }
 0x265   :  { %6086 = vmatprep.subr.bf16.mxu0 %v8303_v14  ;;  %v790_v34 = vld [vmem:[#allocation2 + $0x30] sm:$0xff]  ;;  %6118 = vmatprep.subr.bf16.mxu1 %v8305_v15 }
 0x266   :  { %979 = vmatmul.mubr.f32.gmra.mrb[12].mxu0 %v790_v34  ;;  %1092 = vmatmul.mubr.f32.gmra.mrb[36].mxu1 %v790_v34 }
 0x267   :  { %6088 = vmatpush1.bf16.msra.mxu0 %v8310_v24  ;;  %6120 = vmatpush1.bf16.msra.mxu1 %v8312_v25 }
 0x268   :  { %984 = vmatprep.mubr.f32.mxu0 %v7802_v1  ;;  %1097 = vmatprep.mubr.f32.mxu1 %v7802_v1 }
 0x269   :  { %6090 = vmatprep.subr.bf16.mxu0 %v8318_v35  ;;  %v791_v40 = vld [vmem:[#allocation2 + $0x38] sm:$0xff]  ;;  %6122 = vmatprep.subr.bf16.mxu1 %v8320_v36 }
 0x26a   :  { %985 = vmatmul.mubr.f32.gmra.mrb[14].mxu0 %v791_v40  ;;  %1098 = vmatmul.mubr.f32.gmra.mrb[38].mxu1 %v791_v40 }
 0x26b   :  { %6092 = vmatpush1.bf16.msra.mxu0 %v8324_v37  ;;  %6124 = vmatpush1.bf16.msra.mxu1 %v8326_v38 }
 0x26c   :  { %1270 = vmatprep.mubr.f32.mxu0 %v7802_v1  ;;  %1341 = vmatprep.mubr.f32.mxu1 %v7802_v1 }
 0x26d   :  { %6126 = vmatprep.subr.bf16.mxu0 %v8203_v18  ;;  %6158 = vmatprep.subr.bf16.mxu1 %v8205_v21 }
 0x26e   :  { %1271 = vmatmul.mubr.f32.vlgmr.msra.gmra.mrb[0].mxu0 %v1136_v43  ;;  %1342 = vmatmul.mubr.f32.vlgmr.msra.gmra.mrb[24].mxu1 %v1136_v43 }
 0x26f   :  { %6128 = vmatpush1.bf16.msra.mxu0 %v8222_v49  ;;  %6160 = vmatpush1.bf16.msra.mxu1 %v8224_v50 }
 0x270   :  { %6130 = vmatprep.subr.bf16.mxu0 %v8226_v58  ;;  %6162 = vmatprep.subr.bf16.mxu1 %v8228_v59 }
 0x271   :  { %1509 = vmatprep.mubr.f32.mxu0 %v7802_v1  ;;  %1580 = vmatprep.mubr.f32.mxu1 %v7802_v1 }
 0x273   :  { %6132 = vmatpush1.bf16.msra.mxu0 %v8234_v0  ;;  %6164 = vmatpush1.bf16.msra.mxu1 %v8236_v2 }
 0x274   :  { %6134 = vmatprep.subr.bf16.mxu0 %v8242_v10  ;;  %6166 = vmatprep.subr.bf16.mxu1 %v8244_v11 }
 0x277   :  { %6136 = vmatpush1.bf16.msra.mxu0 %v8250_v16  ;;  %6168 = vmatpush1.bf16.msra.mxu1 %v8252_v17 }
 0x278   :  { %6138 = vmatprep.subr.bf16.mxu0 %v8258_v26  ;;  %6170 = vmatprep.subr.bf16.mxu1 %v8260_v27 }
 0x27b   :  { %6140 = vmatpush1.bf16.msra.mxu0 %v8265_v32  ;;  %6172 = vmatpush1.bf16.msra.mxu1 %v8267_v33 }
 0x27c   :  { %6142 = vmatprep.subr.bf16.mxu0 %v8273_v41  ;;  %6174 = vmatprep.subr.bf16.mxu1 %v8275_v42 }
 0x27f   :  { %6144 = vmatpush1.bf16.msra.mxu0 %v8280_v47  ;;  %6176 = vmatpush1.bf16.msra.mxu1 %v8282_v48 }
 0x280   :  { %6146 = vmatprep.subr.bf16.mxu0 %v8288_v57  ;;  %6178 = vmatprep.subr.bf16.mxu1 %v8290_v60 }
 0x283   :  { %6148 = vmatpush1.bf16.msra.mxu0 %v8295_v4  ;;  %6180 = vmatpush1.bf16.msra.mxu1 %v8297_v5 }
 0x284   :  { %6150 = vmatprep.subr.bf16.mxu0 %v8303_v14  ;;  %6182 = vmatprep.subr.bf16.mxu1 %v8305_v15 }
 0x287   :  { %6152 = vmatpush1.bf16.msra.mxu0 %v8310_v24  ;;  %6184 = vmatpush1.bf16.msra.mxu1 %v8312_v25 }
 0x288   :  { %6154 = vmatprep.subr.bf16.mxu0 %v8318_v35  ;;  %6186 = vmatprep.subr.bf16.mxu1 %v8320_v36 }
 0x28b   :  { %6156 = vmatpush1.bf16.msra.mxu0 %v8324_v37  ;;  %6188 = vmatpush1.bf16.msra.mxu1 %v8326_v38 }
 0x28c   :  { %6190 = vmatprep.subr.bf16.mxu0 %v8203_v18  ;;  %6222 = vmatprep.subr.bf16.mxu1 %v8205_v21  ;;  %v8389_v18 = vrot.slane %v856_v46, %v864_v51 }
 0x341   :  { %v1272_v21 = vpop.f32.mrb[0].mxu0  ;;  %v1343_v53 = vpop.f32.mrb[24].mxu1 }
 0x342   :  { %v7181_v54 = vadd.f32 %v1272_v21, %v8385_v52  ;;  %v1274_v55 = vpop.f32.mrb[1].mxu0  ;;  %v1345_v56 = vpop.f32.mrb[25].mxu1  ;;  %v7197_v12 = vadd.f32 %v1343_v53, %v8402_v8 }
 0x343   :  { %v7182_v61 = vadd.f32 %v1274_v55, %v8389_v18  ;;  %v7198_v7 = vadd.f32 %v1345_v56, %v8396_v3 }
 0x344   :  { %v5764_v62 = vmul.f32 -1.442695, %v7181_v54 }
 0x345   :  { %v5765_v63 = vmul.f32 -1.442695, %v7182_v61  ;;  %v5766_v9 = vmul.f32 -1.442695, %v7198_v7 }
 0x346   :  { %7327 = vpow2.f32 %v5764_v62 }
 0x347   :  { %7329 = vpow2.f32 %v5765_v63 }
 0x348   :  { %7331 = vpow2.f32 %v5766_v9 }
 0x349   :  { %7333 = vtanh.f32 %v7197_v12 }
 0x350   :  { %v7328_v13 = vpop.eup %7327 }
 0x351   :  { %v7330_v19 = vpop.eup %7329  ;;  %v1355_v20 = vadd.f32 1.0, %v7328_v13 }
 0x352   :  { %v1361_v22 = vadd.f32 1.0, %v7330_v19  ;;  %v7332_v23 = vpop.eup %7331 }
 0x353   :  { %7335 = vrcp.f32 %v1355_v20  ;;  %v7334_v28 = vpop.eup %7333  ;;  %v1368_v40 = vadd.f32 1.0, %v7332_v23 }
 0x354   :  { %7337 = vrcp.f32 %v1361_v22 }
 0x355   :  { %7339 = vrcp.f32 %v1368_v40  ;;  %v1864_v40 = vld [vmem:[#allocation8 + $0x28] sm:$0xff] }
 0x35d   :  { %v7336_v30 = vpop.eup %7335 }
 0x35e   :  { %v7338_v31 = vpop.eup %7337  ;;  %v1372_v34 = vmul.f32 %v7336_v30, %v7334_v28 }
 0x35f   :  { %v1371_v43 = vmul.f32 %v7338_v31, %v1137_v29  ;;  %v7340_v21 = vpop.eup %7339 }
 0x361   :  { %v8408_v46 = vadd.f32 %v1372_v34, %v1371_v43  ;;  %v1860_v34 = vld [vmem:[#allocation8 + $0x8] sm:$0xff]  ;;  %v1862_v43 = vld [vmem:[#allocation8 + $0x18] sm:$0xff] }
 0x363   :  { %7341 = vtanh.f32 %v8408_v46 }
 0x36d   :  { %v7342_v53 = vpop.eup %7341 }
 0x36e   :  { %v8411_v54 = vmul.f32 %v7342_v53, %v7340_v21  ;;  %v1866_v21 = vld [vmem:[#allocation8 + $0x38] sm:$0xff]  ;;  %v1859_v53 = vld [vmem:[#allocation8] sm:$0xff] }
 0x370   :  { %1510 = vmatmul.mubr.f32.vlgmr.msra.gmra.mrb[2].mxu0 %v8411_v54  ;;  %1581 = vmatmul.mubr.f32.vlgmr.msra.gmra.mrb[26].mxu1 %v8411_v54 }
 0x371   :  { %6192 = vmatpush1.bf16.msra.mxu0 %v8222_v49  ;;  %6224 = vmatpush1.bf16.msra.mxu1 %v8224_v50 }
 0x372   :  { %6194 = vmatprep.subr.bf16.mxu0 %v8226_v58  ;;  %6226 = vmatprep.subr.bf16.mxu1 %v8228_v59 }
 0x373   :  { %1748 = vmatprep.mubr.f32.mxu0 %v7802_v1  ;;  %1819 = vmatprep.mubr.f32.mxu1 %v7802_v1 }
 0x375   :  { %6196 = vmatpush1.bf16.msra.mxu0 %v8234_v0  ;;  %6228 = vmatpush1.bf16.msra.mxu1 %v8236_v2 }
 0x376   :  { %6198 = vmatprep.subr.bf16.mxu0 %v8242_v10  ;;  %6230 = vmatprep.subr.bf16.mxu1 %v8244_v11 }
 0x379   :  { %6200 = vmatpush1.bf16.msra.mxu0 %v8250_v16  ;;  %6232 = vmatpush1.bf16.msra.mxu1 %v8252_v17 }
 0x37a   :  { %6202 = vmatprep.subr.bf16.mxu0 %v8258_v26  ;;  %6234 = vmatprep.subr.bf16.mxu1 %v8260_v27 }
 0x37d   :  { %6204 = vmatpush1.bf16.msra.mxu0 %v8265_v32  ;;  %6236 = vmatpush1.bf16.msra.mxu1 %v8267_v33 }
 0x37e   :  { %6206 = vmatprep.subr.bf16.mxu0 %v8273_v41  ;;  %6238 = vmatprep.subr.bf16.mxu1 %v8275_v42 }
 0x381   :  { %6208 = vmatpush1.bf16.msra.mxu0 %v8280_v47  ;;  %6240 = vmatpush1.bf16.msra.mxu1 %v8282_v48 }
 0x382   :  { %6210 = vmatprep.subr.bf16.mxu0 %v8288_v57  ;;  %6242 = vmatprep.subr.bf16.mxu1 %v8290_v60 }
 0x385   :  { %6212 = vmatpush1.bf16.msra.mxu0 %v8295_v4  ;;  %6244 = vmatpush1.bf16.msra.mxu1 %v8297_v5 }
 0x386   :  { %6214 = vmatprep.subr.bf16.mxu0 %v8303_v14  ;;  %6246 = vmatprep.subr.bf16.mxu1 %v8305_v15 }
 0x389   :  { %6216 = vmatpush1.bf16.msra.mxu0 %v8310_v24  ;;  %6248 = vmatpush1.bf16.msra.mxu1 %v8312_v25 }
 0x38a   :  { %6218 = vmatprep.subr.bf16.mxu0 %v8318_v35  ;;  %6250 = vmatprep.subr.bf16.mxu1 %v8320_v36 }
 0x38d   :  { %6220 = vmatpush1.bf16.msra.mxu0 %v8324_v37  ;;  %6252 = vmatpush1.bf16.msra.mxu1 %v8326_v38 }
 0x443   :  { %v1511_v49 = vpop.f32.mrb[2].mxu0  ;;  %v1582_v50 = vpop.f32.mrb[26].mxu1 }
 0x444   :  { %v7183_v58 = vadd.f32 %v1511_v49, %v8385_v52  ;;  %v1513_v59 = vpop.f32.mrb[3].mxu0  ;;  %v1584_v0 = vpop.f32.mrb[27].mxu1  ;;  %v7199_v56 = vadd.f32 %v1582_v50, %v8402_v8  ;;  %v1863_v49 = vld [vmem:[#allocation8 + $0x20] sm:$0xff]  ;;  %v8463_v50 = vpack.c.bf16 %v1866_v21, %v1862_v43 }
 0x445   :  { %v7184_v2 = vadd.f32 %v1513_v59, %v8389_v18  ;;  %v7200_v17 = vadd.f32 %v1584_v0, %v8396_v3  ;;  %v1861_v59 = vld [vmem:[#allocation8 + $0x10] sm:$0xff] }
 0x446   :  { %v5767_v10 = vmul.f32 -1.442695, %v7183_v58  ;;  %v8465_v58 = vpack.c.bf16 %v1863_v49, %v1859_v53  ;;  %v1865_v0 = vld [vmem:[#allocation8 + $0x30] sm:$0xff]  ;;  %6286 = vmatprep.subr.bf16.mxu1 %v8463_v50 }
 0x447   :  { %v5768_v16 = vmul.f32 -1.442695, %v7184_v2  ;;  %v5769_v55 = vmul.f32 -1.442695, %v7200_v17  ;;  %v8468_v2 = vpack.c.bf16 %v1865_v0, %v1861_v59  ;;  %v1870_v17 = vld [vmem:[#allocation8 + $0x58] sm:$0xff] }
 0x448   :  { %7343 = vpow2.f32 %v5767_v10  ;;  %v1868_v10 = vld [vmem:[#allocation8 + $0x48] sm:$0xff] }
 0x449   :  { %7345 = vpow2.f32 %v5768_v16  ;;  %v1872_v16 = vld [vmem:[#allocation8 + $0x68] sm:$0xff] }
 0x44a   :  { %7347 = vpow2.f32 %v5769_v55  ;;  %v8473_v55 = vpack.c.bf16 %v1872_v16, %v1868_v10  ;;  %v2121_v10 = vld [vmem:[#allocation8 + $0xb8] sm:$0xff] }
 0x44b   :  { %7349 = vtanh.f32 %v7199_v56  ;;  %v1874_v56 = vld [vmem:[#allocation8 + $0x78] sm:$0xff] }
 0x452   :  { %v7344_v61 = vpop.eup %7343 }
 0x453   :  { %v7346_v62 = vpop.eup %7345  ;;  %v1594_v63 = vadd.f32 1.0, %v7344_v61  ;;  %v1867_v61 = vld [vmem:[#allocation8 + $0x40] sm:$0xff] }
 0x454   :  { %v1600_v7 = vadd.f32 1.0, %v7346_v62  ;;  %v7348_v9 = vpop.eup %7347  ;;  %v1871_v62 = vld [vmem:[#allocation8 + $0x60] sm:$0xff] }
 0x455   :  { %7351 = vrcp.f32 %v1594_v63  ;;  %v7350_v12 = vpop.eup %7349  ;;  %v1607_v22 = vadd.f32 1.0, %v7348_v9  ;;  %v8475_v63 = vpack.c.bf16 %v1874_v56, %v1870_v17  ;;  %v1869_v9 = vld [vmem:[#allocation8 + $0x50] sm:$0xff]  ;;  %v2123_v17 = vld [vmem:[#allocation8 + $0xc8] sm:$0xff] }
 0x456   :  { %7353 = vrcp.f32 %v1600_v7  ;;  %v8477_v7 = vpack.c.bf16 %v1871_v62, %v1867_v61  ;;  %v2127_v56 = vld [vmem:[#allocation8 + $0xe8] sm:$0xff]  ;;  %v2125_v61 = vld [vmem:[#allocation8 + $0xd8] sm:$0xff] }
 0x457   :  { %7355 = vrcp.f32 %v1607_v22  ;;  %v8543_v62 = vpack.c.bf16 %v2127_v56, %v2123_v17  ;;  %v2149_v17 = vld [vmem:[#allocation8 + $0x198] sm:$0xff] }
 0x458   :  { %v2153_v56 = vld [vmem:[#allocation8 + $0x1b8] sm:$0xff] }
 0x45f   :  { %v7352_v13 = vpop.eup %7351 }
 0x460   :  { %v7354_v19 = vpop.eup %7353  ;;  %v1611_v20 = vmul.f32 %v7352_v13, %v7350_v12  ;;  %v1873_v12 = vld [vmem:[#allocation8 + $0x70] sm:$0xff] }
 0x461   :  { %v1610_v23 = vmul.f32 %v7354_v19, %v8408_v46  ;;  %v7356_v29 = vpop.eup %7355  ;;  %v8461_v46 = vpack.c.bf16 %v1864_v40, %v1860_v34  ;;  %v8480_v13 = vpack.c.bf16 %v1873_v12, %v1869_v9  ;;  %v1876_v19 = vld [vmem:[#allocation8 + $0x88] sm:$0xff]  ;;  %v1881_v40 = vld [vmem:[#allocation8 + $0xb0] sm:$0xff]  ;;  %v2129_v9 = vld [vmem:[#allocation8 + $0xf8] sm:$0xff] }
 0x462   :  { %v2122_v12 = vld [vmem:[#allocation8 + $0xc0] sm:$0xff] }
 0x463   :  { %v8452_v28 = vadd.f32 %v1611_v20, %v1610_v23  ;;  %6254 = vmatprep.subr.bf16.mxu0 %v8461_v46  ;;  %v1880_v20 = vld [vmem:[#allocation8 + $0xa8] sm:$0xff]  ;;  %v1875_v23 = vld [vmem:[#allocation8 + $0x80] sm:$0xff] }
 0x464   :  { %v8485_v22 = vpack.c.bf16 %v1880_v20, %v1876_v19  ;;  %v2126_v19 = vld [vmem:[#allocation8 + $0xe0] sm:$0xff]  ;;  %v8545_v20 = vpack.c.bf16 %v2129_v9, %v2125_v61  ;;  %v8579_v9 = vpack.c.bf16 %v2153_v56, %v2149_v17 }
 0x465   :  { %7357 = vtanh.f32 %v8452_v28 }
 0x46f   :  { %v7358_v30 = vpop.eup %7357 }
 0x470   :  { %v8455_v31 = vmul.f32 %v7358_v30, %v7356_v29  ;;  %v1879_v29 = vld [vmem:[#allocation8 + $0xa0] sm:$0xff]  ;;  %v1877_v30 = vld [vmem:[#allocation8 + $0x90] sm:$0xff] }
 0x471   :  { %v8488_v34 = vpack.c.bf16 %v1879_v29, %v1875_v23  ;;  %v8491_v43 = vpack.c.bf16 %v1881_v40, %v1877_v30  ;;  %v8547_v23 = vpack.c.bf16 %v2126_v19, %v2122_v12  ;;  %v2124_v29 = vld [vmem:[#allocation8 + $0xd0] sm:$0xff]  ;;  %v2146_v12 = vld [vmem:[#allocation8 + $0x180] sm:$0xff] }
 0x472   :  { %1749 = vmatmul.mubr.f32.vlgmr.msra.gmra.mrb[4].mxu0 %v8455_v31  ;;  %1820 = vmatmul.mubr.f32.vlgmr.msra.gmra.mrb[28].mxu1 %v8455_v31  ;;  %v2128_v30 = vld [vmem:[#allocation8 + $0xf0] sm:$0xff]  ;;  %v2150_v19 = vld [vmem:[#allocation8 + $0x1a0] sm:$0xff] }
 0x473   :  { %1987 = vmatprep.mubr.f32.mxu0 %v7802_v1  ;;  %2058 = vmatprep.mubr.f32.mxu1 %v7802_v1  ;;  %v8550_v40 = vpack.c.bf16 %v2128_v30, %v2124_v29  ;;  %v2148_v29 = vld [vmem:[#allocation8 + $0x190] sm:$0xff]  ;;  %v8582_v30 = vpack.c.bf16 %v2150_v19, %v2146_v12 }
 0x474   :  { %6256 = vmatpush1.bf16.msra.mxu0 %v8465_v58  ;;  %6288 = vmatpush1.bf16.msra.mxu1 %v8468_v2 }
 0x475   :  { %6258 = vmatprep.subr.bf16.mxu0 %v8473_v55  ;;  %6290 = vmatprep.subr.bf16.mxu1 %v8475_v63 }
 0x478   :  { %6260 = vmatpush1.bf16.msra.mxu0 %v8477_v7  ;;  %6292 = vmatpush1.bf16.msra.mxu1 %v8480_v13 }
 0x479   :  { %6294 = vmatprep.subr.bf16.mxu1 %v8244_v11  ;;  %6262 = vmatprep.subr.bf16.mxu0 %v8485_v22 }
 0x47c   :  { %6264 = vmatpush1.bf16.msra.mxu0 %v8488_v34  ;;  %6296 = vmatpush1.bf16.msra.mxu1 %v8491_v43 }
 0x47d   :  { %6266 = vmatprep.subr.bf16.mxu0 %v8258_v26  ;;  %6298 = vmatprep.subr.bf16.mxu1 %v8260_v27 }
 0x480   :  { %6268 = vmatpush1.bf16.msra.mxu0 %v8265_v32  ;;  %6300 = vmatpush1.bf16.msra.mxu1 %v8267_v33 }
 0x481   :  { %6270 = vmatprep.subr.bf16.mxu0 %v8273_v41  ;;  %6302 = vmatprep.subr.bf16.mxu1 %v8275_v42 }
 0x484   :  { %6272 = vmatpush1.bf16.msra.mxu0 %v8280_v47  ;;  %6304 = vmatpush1.bf16.msra.mxu1 %v8282_v48 }
 0x485   :  { %6274 = vmatprep.subr.bf16.mxu0 %v8288_v57  ;;  %6306 = vmatprep.subr.bf16.mxu1 %v8290_v60 }
 0x488   :  { %6276 = vmatpush1.bf16.msra.mxu0 %v8295_v4  ;;  %6308 = vmatpush1.bf16.msra.mxu1 %v8297_v5 }
 0x489   :  { %6278 = vmatprep.subr.bf16.mxu0 %v8303_v14  ;;  %6310 = vmatprep.subr.bf16.mxu1 %v8305_v15 }
 0x48c   :  { %6280 = vmatpush1.bf16.msra.mxu0 %v8310_v24  ;;  %6312 = vmatpush1.bf16.msra.mxu1 %v8312_v25 }
 0x48d   :  { %6282 = vmatprep.subr.bf16.mxu0 %v8318_v35  ;;  %6314 = vmatprep.subr.bf16.mxu1 %v8320_v36 }
 0x490   :  { %6284 = vmatpush1.bf16.msra.mxu0 %v8324_v37  ;;  %6316 = vmatpush1.bf16.msra.mxu1 %v8326_v38 }
 0x491   :  { %6318 = vmatprep.subr.bf16.mxu0 %v8461_v46  ;;  %6350 = vmatprep.subr.bf16.mxu1 %v8463_v50 }
 0x545   :  { %v1750_v11 = vpop.f32.mrb[4].mxu0  ;;  %v1821_v26 = vpop.f32.mrb[28].mxu1 }
 0x546   :  { %v7185_v27 = vadd.f32 %v1750_v11, %v8385_v52  ;;  %v1752_v32 = vpop.f32.mrb[5].mxu0  ;;  %v1823_v33 = vpop.f32.mrb[29].mxu1  ;;  %v7201_v60 = vadd.f32 %v1821_v26, %v8402_v8  ;;  %v2131_v11 = vld [vmem:[#allocation8 + $0x108] sm:$0xff] }
 0x547   :  { %v7186_v41 = vadd.f32 %v1752_v32, %v8389_v18  ;;  %v7202_v48 = vadd.f32 %v1823_v33, %v8396_v3  ;;  %v2135_v26 = vld [vmem:[#allocation8 + $0x128] sm:$0xff]  ;;  %v2137_v33 = vld [vmem:[#allocation8 + $0x138] sm:$0xff] }
 0x548   :  { %v5770_v42 = vmul.f32 -1.442695, %v7185_v27  ;;  %v2133_v27 = vld [vmem:[#allocation8 + $0x118] sm:$0xff]  ;;  %v8555_v32 = vpack.c.bf16 %v2135_v26, %v2131_v11  ;;  %v2152_v11 = vld [vmem:[#allocation8 + $0x1b0] sm:$0xff]  ;;  %v2155_v26 = vld [vmem:[#allocation8 + $0x1c8] sm:$0xff] }
 0x549   :  { %v5771_v47 = vmul.f32 -1.442695, %v7186_v41  ;;  %v5772_v57 = vmul.f32 -1.442695, %v7202_v48  ;;  %v2130_v41 = vld [vmem:[#allocation8 + $0x100] sm:$0xff] }
 0x54a   :  { %7359 = vpow2.f32 %v5770_v42  ;;  %v2134_v42 = vld [vmem:[#allocation8 + $0x120] sm:$0xff] }
 0x54b   :  { %7361 = vpow2.f32 %v5771_v47  ;;  %v8557_v47 = vpack.c.bf16 %v2137_v33, %v2133_v27  ;;  %v8559_v48 = vpack.c.bf16 %v2134_v42, %v2130_v41  ;;  %v2159_v27 = vld [vmem:[#allocation8 + $0x1e8] sm:$0xff]  ;;  %v8586_v33 = vpack.c.bf16 %v2152_v11, %v2148_v29  ;;  %v2157_v42 = vld [vmem:[#allocation8 + $0x1d8] sm:$0xff] }
 0x54c   :  { %7363 = vpow2.f32 %v5772_v57  ;;  %v2132_v57 = vld [vmem:[#allocation8 + $0x110] sm:$0xff]  ;;  %v8588_v41 = vpack.c.bf16 %v2159_v27, %v2155_v26 }
 0x54d   :  { %7365 = vtanh.f32 %v7201_v60  ;;  %v2136_v60 = vld [vmem:[#allocation8 + $0x130] sm:$0xff] }
 0x554   :  { %v7360_v4 = vpop.eup %7359 }
 0x555   :  { %v7362_v5 = vpop.eup %7361  ;;  %v1833_v14 = vadd.f32 1.0, %v7360_v4  ;;  %v8562_v4 = vpack.c.bf16 %v2136_v60, %v2132_v57  ;;  %v2161_v57 = vld [vmem:[#allocation8 + $0x1f8] sm:$0xff]  ;;  %v2154_v60 = vld [vmem:[#allocation8 + $0x1c0] sm:$0xff] }
 0x556   :  { %v1839_v15 = vadd.f32 1.0, %v7362_v5  ;;  %v7364_v24 = vpop.eup %7363  ;;  %v2139_v5 = vld [vmem:[#allocation8 + $0x148] sm:$0xff] }
 0x557   :  { %7367 = vrcp.f32 %v1833_v14  ;;  %v7366_v25 = vpop.eup %7365  ;;  %v1846_v38 = vadd.f32 1.0, %v7364_v24  ;;  %v2143_v14 = vld [vmem:[#allocation8 + $0x168] sm:$0xff] }
 0x558   :  { %7369 = vrcp.f32 %v1839_v15  ;;  %v2141_v15 = vld [vmem:[#allocation8 + $0x158] sm:$0xff]  ;;  %v8566_v24 = vpack.c.bf16 %v2143_v14, %v2139_v5  ;;  %v8591_v5 = vpack.c.bf16 %v2161_v57, %v2157_v42  ;;  %v2158_v14 = vld [vmem:[#allocation8 + $0x1e0] sm:$0xff] }
 0x559   :  { %7371 = vrcp.f32 %v1846_v38 }
 0x561   :  { %v7368_v35 = vpop.eup %7367 }
 0x562   :  { %v7370_v36 = vpop.eup %7369  ;;  %v1850_v37 = vmul.f32 %v7368_v35, %v7366_v25  ;;  %v2145_v25 = vld [vmem:[#allocation8 + $0x178] sm:$0xff]  ;;  %v2138_v35 = vld [vmem:[#allocation8 + $0x140] sm:$0xff] }
 0x563   :  { %v1849_v21 = vmul.f32 %v7370_v36, %v8452_v28  ;;  %v7372_v49 = vpop.eup %7371  ;;  %v2117_v28 = vld [vmem:[#allocation8 + $0x98] sm:$0xff]  ;;  %v2142_v36 = vld [vmem:[#allocation8 + $0x160] sm:$0xff] }
 0x564   :  { %v8539_v16 = vpack.c.bf16 %v2121_v10, %v2117_v28  ;;  %v8571_v38 = vpack.c.bf16 %v2142_v36, %v2138_v35  ;;  %v2151_v10 = vld [vmem:[#allocation8 + $0x1a8] sm:$0xff]  ;;  %v8594_v35 = vpack.c.bf16 %v2158_v14, %v2154_v60 }
 0x565   :  { %v8522_v53 = vadd.f32 %v1850_v37, %v1849_v21  ;;  %v8569_v37 = vpack.c.bf16 %v2145_v25, %v2141_v15  ;;  %v2140_v21 = vld [vmem:[#allocation8 + $0x150] sm:$0xff] }
 0x566   :  { %v2156_v15 = vld [vmem:[#allocation8 + $0x1d0] sm:$0xff] }
 0x567   :  { %7373 = vtanh.f32 %v8522_v53  ;;  %v2160_v25 = vld [vmem:[#allocation8 + $0x1f0] sm:$0xff] }
 0x568   :  { %v8598_v36 = vpack.c.bf16 %v2160_v25, %v2156_v15 }
 0x571   :  { %v7374_v59 = vpop.eup %7373 }
 0x572   :  { %v8525_v0 = vmul.f32 %v7374_v59, %v7372_v49  ;;  %v2144_v49 = vld [vmem:[#allocation8 + $0x170] sm:$0xff]  ;;  %v2147_v59 = vld [vmem:[#allocation8 + $0x188] sm:$0xff] }
 0x573   :  { %v8574_v28 = vpack.c.bf16 %v2144_v49, %v2140_v21  ;;  %v8577_v61 = vpack.c.bf16 %v2151_v10, %v2147_v59 }
 0x574   :  { %1988 = vmatmul.mubr.f32.vlgmr.msra.gmra.mrb[6].mxu0 %v8525_v0  ;;  %2059 = vmatmul.mubr.f32.vlgmr.msra.gmra.mrb[30].mxu1 %v8525_v0 }
 0x575   :  { %6320 = vmatpush1.bf16.msra.mxu0 %v8465_v58  ;;  %6352 = vmatpush1.bf16.msra.mxu1 %v8468_v2 }
 0x576   :  { %6322 = vmatprep.subr.bf16.mxu0 %v8473_v55  ;;  %6354 = vmatprep.subr.bf16.mxu1 %v8475_v63 }
 0x577   :  { %2226 = vmatprep.mubr.f32.mxu0 %v7802_v1  ;;  %2297 = vmatprep.mubr.f32.mxu1 %v7802_v1 }
 0x579   :  { %6324 = vmatpush1.bf16.msra.mxu0 %v8477_v7  ;;  %6356 = vmatpush1.bf16.msra.mxu1 %v8480_v13 }
 0x57a   :  { %6326 = vmatprep.subr.bf16.mxu0 %v8485_v22  ;;  %6358 = vmatprep.subr.bf16.mxu1 %v8539_v16 }
 0x57d   :  { %6328 = vmatpush1.bf16.msra.mxu0 %v8488_v34  ;;  %6360 = vmatpush1.bf16.msra.mxu1 %v8491_v43 }
 0x57e   :  { %6330 = vmatprep.subr.bf16.mxu0 %v8543_v62  ;;  %6362 = vmatprep.subr.bf16.mxu1 %v8545_v20 }
 0x581   :  { %6332 = vmatpush1.bf16.msra.mxu0 %v8547_v23  ;;  %6364 = vmatpush1.bf16.msra.mxu1 %v8550_v40 }
 0x582   :  { %6334 = vmatprep.subr.bf16.mxu0 %v8555_v32  ;;  %6366 = vmatprep.subr.bf16.mxu1 %v8557_v47 }
 0x585   :  { %6336 = vmatpush1.bf16.msra.mxu0 %v8559_v48  ;;  %6368 = vmatpush1.bf16.msra.mxu1 %v8562_v4 }
 0x586   :  { %6338 = vmatprep.subr.bf16.mxu0 %v8566_v24  ;;  %6370 = vmatprep.subr.bf16.mxu1 %v8569_v37 }
 0x589   :  { %6340 = vmatpush1.bf16.msra.mxu0 %v8571_v38  ;;  %6372 = vmatpush1.bf16.msra.mxu1 %v8574_v28 }
 0x58a   :  { %6342 = vmatprep.subr.bf16.mxu0 %v8577_v61  ;;  %6374 = vmatprep.subr.bf16.mxu1 %v8579_v9 }
 0x58d   :  { %6344 = vmatpush1.bf16.msra.mxu0 %v8582_v30  ;;  %6376 = vmatpush1.bf16.msra.mxu1 %v8586_v33 }
 0x58e   :  { %6346 = vmatprep.subr.bf16.mxu0 %v8588_v41  ;;  %6378 = vmatprep.subr.bf16.mxu1 %v8591_v5 }
 0x591   :  { %6348 = vmatpush1.bf16.msra.mxu0 %v8594_v35  ;;  %6380 = vmatpush1.bf16.msra.mxu1 %v8598_v36 }
 0x592   :  { %6382 = vmatprep.subr.bf16.mxu0 %v8461_v46  ;;  %6414 = vmatprep.subr.bf16.mxu1 %v8463_v50 }
 0x647   :  { %v1989_v21 = vpop.f32.mrb[6].mxu0  ;;  %v2060_v49 = vpop.f32.mrb[30].mxu1 }
 0x648   :  { %v7187_v59 = vadd.f32 %v1989_v21, %v8385_v52  ;;  %v1991_v10 = vpop.f32.mrb[7].mxu0  ;;  %v2062_v17 = vpop.f32.mrb[31].mxu1  ;;  %v7203_v26 = vadd.f32 %v2060_v49, %v8402_v8 }
 0x649   :  { %v7188_v56 = vadd.f32 %v1991_v10, %v8389_v18  ;;  %v7204_v29 = vadd.f32 %v2062_v17, %v8396_v3 }
 0x64a   :  { %v5773_v12 = vmul.f32 -1.442695, %v7187_v59 }
 0x64b   :  { %v5774_v19 = vmul.f32 -1.442695, %v7188_v56  ;;  %v5775_v11 = vmul.f32 -1.442695, %v7204_v29 }
 0x64c   :  { %7375 = vpow2.f32 %v5773_v12 }
 0x64d   :  { %7377 = vpow2.f32 %v5774_v19 }
 0x64e   :  { %7379 = vpow2.f32 %v5775_v11 }
 0x64f   :  { %7381 = vtanh.f32 %v7203_v26 }
 0x656   :  { %v7376_v27 = vpop.eup %7375 }
 0x657   :  { %v7378_v42 = vpop.eup %7377  ;;  %v2072_v57 = vadd.f32 1.0, %v7376_v27 }
 0x658   :  { %v2078_v60 = vadd.f32 1.0, %v7378_v42  ;;  %v7380_v14 = vpop.eup %7379 }
 0x659   :  { %7383 = vrcp.f32 %v2072_v57  ;;  %v7382_v15 = vpop.eup %7381  ;;  %v2085_v10 = vadd.f32 1.0, %v7380_v14 }
 0x65a   :  { %7385 = vrcp.f32 %v2078_v60 }
 0x65b   :  { %7387 = vrcp.f32 %v2085_v10 }
 0x663   :  { %v7384_v25 = vpop.eup %7383 }
 0x664   :  { %v7386_v21 = vpop.eup %7385  ;;  %v2089_v59 = vmul.f32 %v7384_v25, %v7382_v15 }
 0x665   :  { %v2088_v56 = vmul.f32 %v7386_v21, %v8522_v53  ;;  %v7388_v49 = vpop.eup %7387 }
 0x667   :  { %v8610_v17 = vadd.f32 %v2089_v59, %v2088_v56 }
 0x669   :  { %7389 = vtanh.f32 %v8610_v17 }
 0x673   :  { %v7390_v12 = vpop.eup %7389 }
 0x674   :  { %v8613_v19 = vmul.f32 %v7390_v12, %v7388_v49 }
 0x676   :  { %2227 = vmatmul.mubr.f32.vlgmr.msra.gmra.mrb[8].mxu0 %v8613_v19  ;;  %2298 = vmatmul.mubr.f32.vlgmr.msra.gmra.mrb[32].mxu1 %v8613_v19 }
 0x677   :  { %6384 = vmatpush1.bf16.msra.mxu0 %v8465_v58  ;;  %6416 = vmatpush1.bf16.msra.mxu1 %v8468_v2 }
 0x678   :  { %6386 = vmatprep.subr.bf16.mxu0 %v8473_v55  ;;  %6418 = vmatprep.subr.bf16.mxu1 %v8475_v63 }
 0x679   :  { %2465 = vmatprep.mubr.f32.mxu0 %v7802_v1  ;;  %2536 = vmatprep.mubr.f32.mxu1 %v7802_v1 }
 0x67b   :  { %6388 = vmatpush1.bf16.msra.mxu0 %v8477_v7  ;;  %6420 = vmatpush1.bf16.msra.mxu1 %v8480_v13 }
 0x67c   :  { %6390 = vmatprep.subr.bf16.mxu0 %v8485_v22  ;;  %6422 = vmatprep.subr.bf16.mxu1 %v8539_v16 }
 0x67f   :  { %6392 = vmatpush1.bf16.msra.mxu0 %v8488_v34  ;;  %6424 = vmatpush1.bf16.msra.mxu1 %v8491_v43 }
 0x680   :  { %6394 = vmatprep.subr.bf16.mxu0 %v8543_v62  ;;  %6426 = vmatprep.subr.bf16.mxu1 %v8545_v20 }
 0x683   :  { %6396 = vmatpush1.bf16.msra.mxu0 %v8547_v23  ;;  %6428 = vmatpush1.bf16.msra.mxu1 %v8550_v40 }
 0x684   :  { %6398 = vmatprep.subr.bf16.mxu0 %v8555_v32  ;;  %6430 = vmatprep.subr.bf16.mxu1 %v8557_v47 }
 0x687   :  { %6400 = vmatpush1.bf16.msra.mxu0 %v8559_v48  ;;  %6432 = vmatpush1.bf16.msra.mxu1 %v8562_v4 }
 0x688   :  { %6402 = vmatprep.subr.bf16.mxu0 %v8566_v24  ;;  %6434 = vmatprep.subr.bf16.mxu1 %v8569_v37 }
 0x68b   :  { %6404 = vmatpush1.bf16.msra.mxu0 %v8571_v38  ;;  %6436 = vmatpush1.bf16.msra.mxu1 %v8574_v28 }
 0x68c   :  { %6406 = vmatprep.subr.bf16.mxu0 %v8577_v61  ;;  %6438 = vmatprep.subr.bf16.mxu1 %v8579_v9 }
 0x68f   :  { %6408 = vmatpush1.bf16.msra.mxu0 %v8582_v30  ;;  %6440 = vmatpush1.bf16.msra.mxu1 %v8586_v33 }
 0x690   :  { %6410 = vmatprep.subr.bf16.mxu0 %v8588_v41  ;;  %6442 = vmatprep.subr.bf16.mxu1 %v8591_v5 }
 0x693   :  { %6412 = vmatpush1.bf16.msra.mxu0 %v8594_v35  ;;  %6444 = vmatpush1.bf16.msra.mxu1 %v8598_v36 }
 0x694   :  { %6446 = vmatprep.subr.bf16.mxu0 %v8461_v46  ;;  %6478 = vmatprep.subr.bf16.mxu1 %v8463_v50 }
 0x749   :  { %v2228_v53 = vpop.f32.mrb[8].mxu0  ;;  %v2299_v29 = vpop.f32.mrb[32].mxu1 }
 0x74a   :  { %v7189_v11 = vadd.f32 %v2228_v53, %v8385_v52  ;;  %v2230_v26 = vpop.f32.mrb[9].mxu0  ;;  %v2301_v27 = vpop.f32.mrb[33].mxu1  ;;  %v7205_v25 = vadd.f32 %v2299_v29, %v8402_v8 }
 0x74b   :  { %v7190_v42 = vadd.f32 %v2230_v26, %v8389_v18  ;;  %v7206_v14 = vadd.f32 %v2301_v27, %v8396_v3 }
 0x74c   :  { %v5776_v57 = vmul.f32 -1.442695, %v7189_v11 }
 0x74d   :  { %v5777_v60 = vmul.f32 -1.442695, %v7190_v42  ;;  %v5778_v15 = vmul.f32 -1.442695, %v7206_v14 }
 0x74e   :  { %7391 = vpow2.f32 %v5776_v57 }
 0x74f   :  { %7393 = vpow2.f32 %v5777_v60 }
 0x750   :  { %7395 = vpow2.f32 %v5778_v15 }
 0x751   :  { %7397 = vtanh.f32 %v7205_v25 }
 0x758   :  { %v7392_v46 = vpop.eup %7391 }
 0x759   :  { %v7394_v21 = vpop.eup %7393  ;;  %v2311_v50 = vadd.f32 1.0, %v7392_v46 }
 0x75a   :  { %v2317_v59 = vadd.f32 1.0, %v7394_v21  ;;  %v7396_v10 = vpop.eup %7395 }
 0x75b   :  { %7399 = vrcp.f32 %v2311_v50  ;;  %v7398_v56 = vpop.eup %7397  ;;  %v2324_v11 = vadd.f32 1.0, %v7396_v10 }
 0x75c   :  { %7401 = vrcp.f32 %v2317_v59 }
 0x75d   :  { %7403 = vrcp.f32 %v2324_v11 }
 0x765   :  { %v7400_v49 = vpop.eup %7399 }
 0x766   :  { %v7402_v12 = vpop.eup %7401  ;;  %v2328_v53 = vmul.f32 %v7400_v49, %v7398_v56 }
 0x767   :  { %v2327_v26 = vmul.f32 %v7402_v12, %v8610_v17  ;;  %v7404_v29 = vpop.eup %7403 }
 0x769   :  { %v8656_v27 = vadd.f32 %v2328_v53, %v2327_v26 }
 0x76b   :  { %7405 = vtanh.f32 %v8656_v27 }
 0x775   :  { %v7406_v42 = vpop.eup %7405 }
 0x776   :  { %v8659_v57 = vmul.f32 %v7406_v42, %v7404_v29  ;;  %v2816_v42 = vld [vmem:[#allocation8 + $0x8] sm:$0xff] }
 0x778   :  { %2466 = vmatmul.mubr.f32.vlgmr.msra.gmra.mrb[10].mxu0 %v8659_v57  ;;  %2537 = vmatmul.mubr.f32.vlgmr.msra.gmra.mrb[34].mxu1 %v8659_v57 }
 0x779   :  { %6448 = vmatpush1.bf16.msra.mxu0 %v8465_v58  ;;  %6480 = vmatpush1.bf16.msra.mxu1 %v8468_v2 }
 0x77a   :  { %6450 = vmatprep.subr.bf16.mxu0 %v8473_v55  ;;  %6482 = vmatprep.subr.bf16.mxu1 %v8475_v63 }
 0x77b   :  { %2704 = vmatprep.mubr.f32.mxu0 %v7802_v1  ;;  %2775 = vmatprep.mubr.f32.mxu1 %v7802_v1 }
 0x77d   :  { %6452 = vmatpush1.bf16.msra.mxu0 %v8477_v7  ;;  %6484 = vmatpush1.bf16.msra.mxu1 %v8480_v13 }
 0x77e   :  { %6454 = vmatprep.subr.bf16.mxu0 %v8485_v22  ;;  %6486 = vmatprep.subr.bf16.mxu1 %v8539_v16 }
 0x781   :  { %6456 = vmatpush1.bf16.msra.mxu0 %v8488_v34  ;;  %6488 = vmatpush1.bf16.msra.mxu1 %v8491_v43 }
 0x782   :  { %6458 = vmatprep.subr.bf16.mxu0 %v8543_v62  ;;  %6490 = vmatprep.subr.bf16.mxu1 %v8545_v20 }
 0x785   :  { %6460 = vmatpush1.bf16.msra.mxu0 %v8547_v23  ;;  %6492 = vmatpush1.bf16.msra.mxu1 %v8550_v40 }
 0x786   :  { %6462 = vmatprep.subr.bf16.mxu0 %v8555_v32  ;;  %6494 = vmatprep.subr.bf16.mxu1 %v8557_v47 }
 0x789   :  { %6464 = vmatpush1.bf16.msra.mxu0 %v8559_v48  ;;  %6496 = vmatpush1.bf16.msra.mxu1 %v8562_v4 }
 0x78a   :  { %6466 = vmatprep.subr.bf16.mxu0 %v8566_v24  ;;  %6498 = vmatprep.subr.bf16.mxu1 %v8569_v37 }
 0x78d   :  { %6468 = vmatpush1.bf16.msra.mxu0 %v8571_v38  ;;  %6500 = vmatpush1.bf16.msra.mxu1 %v8574_v28 }
 0x78e   :  { %6470 = vmatprep.subr.bf16.mxu0 %v8577_v61  ;;  %6502 = vmatprep.subr.bf16.mxu1 %v8579_v9 }
 0x791   :  { %6472 = vmatpush1.bf16.msra.mxu0 %v8582_v30  ;;  %6504 = vmatpush1.bf16.msra.mxu1 %v8586_v33 }
 0x792   :  { %6474 = vmatprep.subr.bf16.mxu0 %v8588_v41  ;;  %6506 = vmatprep.subr.bf16.mxu1 %v8591_v5 }
 0x795   :  { %6476 = vmatpush1.bf16.msra.mxu0 %v8594_v35  ;;  %6508 = vmatpush1.bf16.msra.mxu1 %v8598_v36 }
 0x84b   :  { %v2467_v58 = vpop.f32.mrb[10].mxu0  ;;  %v2538_v2 = vpop.f32.mrb[34].mxu1 }
 0x84c   :  { %v7191_v55 = vadd.f32 %v2467_v58, %v8385_v52  ;;  %v2469_v63 = vpop.f32.mrb[11].mxu0  ;;  %v2540_v7 = vpop.f32.mrb[35].mxu1  ;;  %v7207_v60 = vadd.f32 %v2538_v2, %v8402_v8  ;;  %v2820_v58 = vld [vmem:[#allocation8 + $0x28] sm:$0xff] }
 0x84d   :  { %v7192_v13 = vadd.f32 %v2469_v63, %v8389_v18  ;;  %v7208_v43 = vadd.f32 %v2540_v7, %v8396_v3  ;;  %v6509_v2 = vpack.c.bf16 %v2820_v58, %v2816_v42  ;;  %v2815_v63 = vld [vmem:[#allocation8] sm:$0xff] }
 0x84e   :  { %v5779_v22 = vmul.f32 -1.442695, %v7191_v55  ;;  %v2822_v55 = vld [vmem:[#allocation8 + $0x38] sm:$0xff]  ;;  %v2819_v7 = vld [vmem:[#allocation8 + $0x20] sm:$0xff] }
 0x84f   :  { %v5780_v34 = vmul.f32 -1.442695, %v7192_v13  ;;  %v5781_v17 = vmul.f32 -1.442695, %v7208_v43  ;;  %v2821_v43 = vld [vmem:[#allocation8 + $0x30] sm:$0xff]  ;;  %6510 = vmatprep.subr.bf16.mxu0 %v6509_v2  ;;  %v2831_v58 = vld [vmem:[#allocation8 + $0x80] sm:$0xff] }
 0x850   :  { %7407 = vpow2.f32 %v5779_v22  ;;  %v6511_v22 = vpack.c.bf16 %v2819_v7, %v2815_v63  ;;  %v2833_v2 = vld [vmem:[#allocation8 + $0x90] sm:$0xff] }
 0x851   :  { %7409 = vpow2.f32 %v5780_v34  ;;  %v2817_v34 = vld [vmem:[#allocation8 + $0x10] sm:$0xff] }
 0x852   :  { %7411 = vpow2.f32 %v5781_v17  ;;  %v6543_v17 = vpack.c.bf16 %v2821_v43, %v2817_v34  ;;  %v2837_v63 = vld [vmem:[#allocation8 + $0xb0] sm:$0xff] }
 0x853   :  { %7413 = vtanh.f32 %v7207_v60  ;;  %v2824_v60 = vld [vmem:[#allocation8 + $0x48] sm:$0xff]  ;;  %v6551_v7 = vpack.c.bf16 %v2837_v63, %v2833_v2  ;;  %v3070_v63 = vld [vmem:[#allocation10 + $0x50] sm:$0xff] }
 0x85a   :  { %v7408_v14 = vpop.eup %7407 }
 0x85b   :  { %v7410_v15 = vpop.eup %7409  ;;  %v2550_v25 = vadd.f32 1.0, %v7408_v14  ;;  %v2828_v14 = vld [vmem:[#allocation8 + $0x68] sm:$0xff] }
 0x85c   :  { %v2556_v46 = vadd.f32 1.0, %v7410_v15  ;;  %v7412_v21 = vpop.eup %7411  ;;  %v2826_v15 = vld [vmem:[#allocation8 + $0x58] sm:$0xff] }
 0x85d   :  { %7415 = vrcp.f32 %v2550_v25  ;;  %v7414_v50 = vpop.eup %7413  ;;  %v2563_v49 = vadd.f32 1.0, %v7412_v21  ;;  %v6513_v25 = vpack.c.bf16 %v2828_v14, %v2824_v60  ;;  %v2823_v21 = vld [vmem:[#allocation8 + $0x40] sm:$0xff] }
 0x85e   :  { %7417 = vrcp.f32 %v2556_v46  ;;  %v2830_v46 = vld [vmem:[#allocation8 + $0x78] sm:$0xff] }
 0x85f   :  { %7419 = vrcp.f32 %v2563_v49  ;;  %v2829_v49 = vld [vmem:[#allocation8 + $0x70] sm:$0xff] }
 0x867   :  { %v7416_v59 = vpop.eup %7415 }
 0x868   :  { %v7418_v10 = vpop.eup %7417  ;;  %v2567_v56 = vmul.f32 %v7416_v59, %v7414_v50  ;;  %v2827_v50 = vld [vmem:[#allocation8 + $0x60] sm:$0xff]  ;;  %v6545_v59 = vpack.c.bf16 %v2830_v46, %v2826_v15 }
 0x869   :  { %v2566_v12 = vmul.f32 %v7418_v10, %v8656_v27  ;;  %v7420_v11 = vpop.eup %7419  ;;  %v2818_v27 = vld [vmem:[#allocation8 + $0x18] sm:$0xff]  ;;  %v6515_v10 = vpack.c.bf16 %v2827_v50, %v2823_v21  ;;  %v3064_v46 = vld [vmem:[#allocation10 + $0x20] sm:$0xff]  ;;  %v3062_v21 = vld [vmem:[#allocation10 + $0x10] sm:$0xff] }
 0x86a   :  { %v6541_v13 = vpack.c.bf16 %v2822_v55, %v2818_v27  ;;  %v2835_v27 = vld [vmem:[#allocation8 + $0xa0] sm:$0xff]  ;;  %v3066_v50 = vld [vmem:[#allocation10 + $0x30] sm:$0xff] }
 0x86b   :  { %v8700_v53 = vadd.f32 %v2567_v56, %v2566_v12  ;;  %v2825_v56 = vld [vmem:[#allocation8 + $0x50] sm:$0xff]  ;;  %v6519_v55 = vpack.c.bf16 %v2835_v27, %v2831_v58  ;;  %v3068_v58 = vld [vmem:[#allocation10 + $0x40] sm:$0xff] }
 0x86c   :  { %6542 = vmatprep.subr.bf16.mxu1 %v6541_v13  ;;  %v6547_v12 = vpack.c.bf16 %v2829_v49, %v2825_v56  ;;  %v3071_v56 = vld [vmem:[#allocation10 + $0x58] sm:$0xff]  ;;  %v3072_v27 = vld [vmem:[#allocation10 + $0x60] sm:$0xff] }
 0x86d   :  { %7421 = vtanh.f32 %v8700_v53  ;;  %v3075_v49 = vld [vmem:[#allocation10 + $0x78] sm:$0xff] }
 0x877   :  { %v7422_v26 = vpop.eup %7421 }
 0x878   :  { %v8703_v29 = vmul.f32 %v7422_v26, %v7420_v11  ;;  %v2832_v11 = vld [vmem:[#allocation8 + $0x88] sm:$0xff] }
 0x879   :  { %v2836_v26 = vld [vmem:[#allocation8 + $0xa8] sm:$0xff] }
 0x87a   :  { %2705 = vmatmul.mubr.f32.vlgmr.msra.gmra.mrb[12].mxu0 %v8703_v29  ;;  %2776 = vmatmul.mubr.f32.vlgmr.msra.gmra.mrb[36].mxu1 %v8703_v29  ;;  %v6517_v42 = vpack.c.bf16 %v2836_v26, %v2832_v11 }
 0x87b   :  { %2943 = vmatprep.mubr.f32.mxu0 %v7802_v1  ;;  %3014 = vmatprep.mubr.f32.mxu1 %v7802_v1 }
 0x87c   :  { %6512 = vmatpush1.bf16.msra.mxu0 %v6511_v22  ;;  %6544 = vmatpush1.bf16.msra.mxu1 %v6543_v17 }
 0x87d   :  { %6514 = vmatprep.subr.bf16.mxu0 %v6513_v25  ;;  %6546 = vmatprep.subr.bf16.mxu1 %v6545_v59  ;;  %v3060_v25 = vld [vmem:[#allocation10] sm:$0xff]  ;;  %v3069_v59 = vld [vmem:[#allocation10 + $0x48] sm:$0xff] }
 0x87e   :  { %v6575_v26 = vpack.c.bf16 %v3064_v46, %v3060_v25 }
 0x880   :  { %6516 = vmatpush1.bf16.msra.mxu0 %v6515_v10  ;;  %6548 = vmatpush1.bf16.msra.mxu1 %v6547_v12  ;;  %v3073_v10 = vld [vmem:[#allocation10 + $0x68] sm:$0xff] }
 0x881   :  { %6550 = vmatprep.subr.bf16.mxu1 %v8539_v16  ;;  %6518 = vmatprep.subr.bf16.mxu0 %v6517_v42  ;;  %v3061_v16 = vld [vmem:[#allocation10 + $0x8] sm:$0xff]  ;;  %v6607_v42 = vpack.c.bf16 %v3066_v50, %v3062_v21  ;;  %v6577_v2 = vpack.c.bf16 %v3073_v10, %v3069_v59  ;;  %v3092_v21 = vld [vmem:[#allocation10 + $0x100] sm:$0xff] }
 0x882   :  { %v3096_v50 = vld [vmem:[#allocation10 + $0x120] sm:$0xff] }
 0x884   :  { %6520 = vmatpush1.bf16.msra.mxu0 %v6519_v55  ;;  %6552 = vmatpush1.bf16.msra.mxu1 %v6551_v7  ;;  %v6609_v55 = vpack.c.bf16 %v3075_v49, %v3071_v56  ;;  %v3074_v7 = vld [vmem:[#allocation10 + $0x70] sm:$0xff] }
 0x885   :  { %6522 = vmatprep.subr.bf16.mxu0 %v8543_v62  ;;  %6554 = vmatprep.subr.bf16.mxu1 %v8545_v20  ;;  %v3065_v62 = vld [vmem:[#allocation10 + $0x28] sm:$0xff]  ;;  %v3063_v20 = vld [vmem:[#allocation10 + $0x18] sm:$0xff]  ;;  %v3094_v56 = vld [vmem:[#allocation10 + $0x110] sm:$0xff] }
 0x886   :  { %v3098_v49 = vld [vmem:[#allocation10 + $0x130] sm:$0xff] }
 0x888   :  { %6524 = vmatpush1.bf16.msra.mxu0 %v8547_v23  ;;  %6556 = vmatpush1.bf16.msra.mxu1 %v8550_v40  ;;  %v3067_v23 = vld [vmem:[#allocation10 + $0x38] sm:$0xff]  ;;  %v6573_v40 = vpack.c.bf16 %v3065_v62, %v3061_v16  ;;  %v3077_v16 = vld [vmem:[#allocation10 + $0x88] sm:$0xff] }
 0x889   :  { %6526 = vmatprep.subr.bf16.mxu0 %v8555_v32  ;;  %6558 = vmatprep.subr.bf16.mxu1 %v8557_v47  ;;  %v6605_v32 = vpack.c.bf16 %v3067_v23, %v3063_v20  ;;  %v3081_v62 = vld [vmem:[#allocation10 + $0xa8] sm:$0xff]  ;;  %v3079_v20 = vld [vmem:[#allocation10 + $0x98] sm:$0xff] }
 0x88a   :  { %v3083_v23 = vld [vmem:[#allocation10 + $0xb8] sm:$0xff] }
 0x88c   :  { %6528 = vmatpush1.bf16.msra.mxu0 %v8559_v48  ;;  %6560 = vmatpush1.bf16.msra.mxu1 %v8562_v4 }
 0x88d   :  { %6530 = vmatprep.subr.bf16.mxu0 %v8566_v24  ;;  %6562 = vmatprep.subr.bf16.mxu1 %v8569_v37 }
 0x890   :  { %6532 = vmatpush1.bf16.msra.mxu0 %v8571_v38  ;;  %6564 = vmatpush1.bf16.msra.mxu1 %v8574_v28 }
 0x891   :  { %6534 = vmatprep.subr.bf16.mxu0 %v8577_v61  ;;  %6566 = vmatprep.subr.bf16.mxu1 %v8579_v9 }
 0x894   :  { %6536 = vmatpush1.bf16.msra.mxu0 %v8582_v30  ;;  %6568 = vmatpush1.bf16.msra.mxu1 %v8586_v33 }
 0x895   :  { %6538 = vmatprep.subr.bf16.mxu0 %v8588_v41  ;;  %6570 = vmatprep.subr.bf16.mxu1 %v8591_v5 }
 0x898   :  { %6540 = vmatpush1.bf16.msra.mxu0 %v8594_v35  ;;  %6572 = vmatpush1.bf16.msra.mxu1 %v8598_v36 }
 0x899   :  { %6574 = vmatprep.subr.bf16.mxu0 %v6573_v40  ;;  %6606 = vmatprep.subr.bf16.mxu1 %v6605_v32  ;;  %v6579_v40 = vpack.c.bf16 %v3072_v27, %v3068_v58  ;;  %v6611_v32 = vpack.c.bf16 %v3074_v7, %v3070_v63  ;;  %v6591_v58 = vpack.c.bf16 %v3096_v50, %v3092_v21  ;;  %v3414_v50 = vld [vmem:[#allocation11 + $0x10] sm:$0xff] }
 0x89a   :  { %v6623_v27 = vpack.c.bf16 %v3098_v49, %v3094_v56  ;;  %v3425_v56 = vld [vmem:[#allocation11 + $0x68] sm:$0xff]  ;;  %v3423_v49 = vld [vmem:[#allocation11 + $0x58] sm:$0xff] }
 0x94d   :  { %v2706_v47 = vpop.f32.mrb[12].mxu0  ;;  %v2777_v48 = vpop.f32.mrb[36].mxu1 }
 0x94e   :  { %v7193_v4 = vadd.f32 %v2706_v47, %v8385_v52  ;;  %v2708_v24 = vpop.f32.mrb[13].mxu0  ;;  %v2779_v37 = vpop.f32.mrb[37].mxu1  ;;  %v7209_v33 = vadd.f32 %v2777_v48, %v8402_v8  ;;  %v3076_v47 = vld [vmem:[#allocation10 + $0x80] sm:$0xff] }
 0x94f   :  { %v7194_v38 = vadd.f32 %v2708_v24, %v8389_v18  ;;  %v7210_v9 = vadd.f32 %v2779_v37, %v8396_v3  ;;  %v3080_v48 = vld [vmem:[#allocation10 + $0xa0] sm:$0xff]  ;;  %v6613_v24 = vpack.c.bf16 %v3083_v23, %v3079_v20  ;;  %v3078_v37 = vld [vmem:[#allocation10 + $0x90] sm:$0xff]  ;;  %v3109_v20 = vld [vmem:[#allocation10 + $0x188] sm:$0xff] }
 0x950   :  { %v5782_v28 = vmul.f32 -1.442695, %v7193_v4  ;;  %v6581_v4 = vpack.c.bf16 %v3081_v62, %v3077_v16  ;;  %v3102_v16 = vld [vmem:[#allocation10 + $0x150] sm:$0xff]  ;;  %v3113_v23 = vld [vmem:[#allocation10 + $0x1a8] sm:$0xff] }
 0x951   :  { %v5783_v61 = vmul.f32 -1.442695, %v7194_v38  ;;  %v5784_v30 = vmul.f32 -1.442695, %v7210_v9  ;;  %v3082_v38 = vld [vmem:[#allocation10 + $0xb0] sm:$0xff]  ;;  %v3087_v9 = vld [vmem:[#allocation10 + $0xd8] sm:$0xff] }
 0x952   :  { %7423 = vpow2.f32 %v5782_v28  ;;  %v3085_v28 = vld [vmem:[#allocation10 + $0xc8] sm:$0xff]  ;;  %v3106_v62 = vld [vmem:[#allocation10 + $0x170] sm:$0xff] }
 0x953   :  { %7425 = vpow2.f32 %v5783_v61  ;;  %v3089_v61 = vld [vmem:[#allocation10 + $0xe8] sm:$0xff] }
 0x954   :  { %7427 = vpow2.f32 %v5784_v30  ;;  %v3091_v30 = vld [vmem:[#allocation10 + $0xf8] sm:$0xff] }
 0x955   :  { %7429 = vtanh.f32 %v7209_v33  ;;  %v6583_v33 = vpack.c.bf16 %v3080_v48, %v3076_v47  ;;  %v6627_v48 = vpack.c.bf16 %v3106_v62, %v3102_v16  ;;  %v3433_v16 = vld [vmem:[#allocation11 + $0xa8] sm:$0xff]  ;;  %v3431_v62 = vld [vmem:[#allocation11 + $0x98] sm:$0xff] }
 0x95c   :  { %v7424_v41 = vpop.eup %7423 }
 0x95d   :  { %v7426_v5 = vpop.eup %7425  ;;  %v2789_v35 = vadd.f32 1.0, %v7424_v41  ;;  %v6615_v41 = vpack.c.bf16 %v3082_v38, %v3078_v37  ;;  %v6597_v37 = vpack.c.bf16 %v3113_v23, %v3109_v20  ;;  %v3428_v23 = vld [vmem:[#allocation11 + $0x80] sm:$0xff] }
 0x95e   :  { %v2795_v36 = vadd.f32 1.0, %v7426_v5  ;;  %v7428_v13 = vpop.eup %7427  ;;  %v3084_v5 = vld [vmem:[#allocation10 + $0xc0] sm:$0xff] }
 0x95f   :  { %7431 = vrcp.f32 %v2789_v35  ;;  %v7430_v22 = vpop.eup %7429  ;;  %v2802_v60 = vadd.f32 1.0, %v7428_v13  ;;  %v3088_v35 = vld [vmem:[#allocation10 + $0xe0] sm:$0xff]  ;;  %v6617_v13 = vpack.c.bf16 %v3091_v30, %v3087_v9  ;;  %v3117_v9 = vld [vmem:[#allocation10 + $0x1c8] sm:$0xff] }
 0x960   :  { %7433 = vrcp.f32 %v2795_v36  ;;  %v6585_v36 = vpack.c.bf16 %v3089_v61, %v3085_v28  ;;  %v6587_v25 = vpack.c.bf16 %v3088_v35, %v3084_v5  ;;  %v3110_v28 = vld [vmem:[#allocation10 + $0x190] sm:$0xff]  ;;  %v3121_v30 = vld [vmem:[#allocation10 + $0x1e8] sm:$0xff] }
 0x961   :  { %7435 = vrcp.f32 %v2802_v60  ;;  %v3095_v60 = vld [vmem:[#allocation10 + $0x118] sm:$0xff]  ;;  %v3114_v61 = vld [vmem:[#allocation10 + $0x1b0] sm:$0xff] }
 0x962   :  { %v6631_v35 = vpack.c.bf16 %v3114_v61, %v3110_v28  ;;  %v3441_v28 = vld [vmem:[#allocation11 + $0xe8] sm:$0xff]  ;;  %v3439_v61 = vld [vmem:[#allocation11 + $0xd8] sm:$0xff] }
 0x969   :  { %v7432_v34 = vpop.eup %7431 }
 0x96a   :  { %v7434_v43 = vpop.eup %7433  ;;  %v2806_v17 = vmul.f32 %v7432_v34, %v7430_v22  ;;  %v3086_v22 = vld [vmem:[#allocation10 + $0xd0] sm:$0xff] }
 0x96b   :  { %v2805_v14 = vmul.f32 %v7434_v43, %v8700_v53  ;;  %v7436_v12 = vpop.eup %7435  ;;  %v3090_v34 = vld [vmem:[#allocation10 + $0xf0] sm:$0xff]  ;;  %v3093_v43 = vld [vmem:[#allocation10 + $0x108] sm:$0xff] }
 0x96c   :  { %v6619_v46 = vpack.c.bf16 %v3090_v34, %v3086_v22  ;;  %v3120_v34 = vld [vmem:[#allocation10 + $0x1e0] sm:$0xff] }
 0x96d   :  { %v8735_v15 = vadd.f32 %v2806_v17, %v2805_v14  ;;  %v3097_v17 = vld [vmem:[#allocation10 + $0x128] sm:$0xff]  ;;  %v3099_v14 = vld [vmem:[#allocation10 + $0x138] sm:$0xff] }
 0x96e   :  { %v6589_v59 = vpack.c.bf16 %v3097_v17, %v3093_v43  ;;  %v6621_v10 = vpack.c.bf16 %v3099_v14, %v3095_v60  ;;  %v3118_v43 = vld [vmem:[#allocation10 + $0x1d0] sm:$0xff] }
 0x96f   :  { %7437 = vtanh.f32 %v8735_v15  ;;  %v3122_v17 = vld [vmem:[#allocation10 + $0x1f0] sm:$0xff] }
 0x970   :  { %v6635_v14 = vpack.c.bf16 %v3122_v17, %v3118_v43  ;;  %v3449_v43 = vld [vmem:[#allocation11 + $0x128] sm:$0xff]  ;;  %v3444_v17 = vld [vmem:[#allocation11 + $0x100] sm:$0xff] }
 0x979   :  { %v7438_v11 = vpop.eup %7437 }
 0x97a   :  { %v8738_v53 = vmul.f32 %v7438_v11, %v7436_v12  ;;  %v3101_v12 = vld [vmem:[#allocation10 + $0x148] sm:$0xff] }
 0x97b   :  { %v3105_v11 = vld [vmem:[#allocation10 + $0x168] sm:$0xff] }
 0x97c   :  { %2944 = vmatmul.mubr.f32.vlgmr.msra.gmra.mrb[14].mxu0 %v8738_v53  ;;  %3015 = vmatmul.mubr.f32.vlgmr.msra.gmra.mrb[38].mxu1 %v8738_v53  ;;  %v6593_v63 = vpack.c.bf16 %v3105_v11, %v3101_v12  ;;  %v3420_v11 = vld [vmem:[#allocation11 + $0x40] sm:$0xff] }
 0x97d   :  { %6576 = vmatpush1.bf16.msra.mxu0 %v6575_v26  ;;  %6608 = vmatpush1.bf16.msra.mxu1 %v6607_v42  ;;  %v3103_v26 = vld [vmem:[#allocation10 + $0x158] sm:$0xff] }
 0x97e   :  { %6578 = vmatprep.subr.bf16.mxu0 %v6577_v2  ;;  %6610 = vmatprep.subr.bf16.mxu1 %v6609_v55  ;;  %v3107_v42 = vld [vmem:[#allocation10 + $0x178] sm:$0xff]  ;;  %v3100_v2 = vld [vmem:[#allocation10 + $0x140] sm:$0xff] }
 0x97f   :  { %3210 = vmatprep.mubr.f32.mxu0 %v7802_v1  ;;  %3323 = vmatprep.mubr.f32.mxu1 %v7802_v1  ;;  %v3104_v55 = vld [vmem:[#allocation10 + $0x160] sm:$0xff]  ;;  %v6625_v7 = vpack.c.bf16 %v3107_v42, %v3103_v26  ;;  %v3427_v42 = vld [vmem:[#allocation11 + $0x78] sm:$0xff] }
 0x980   :  { %v6595_v47 = vpack.c.bf16 %v3104_v55, %v3100_v2  ;;  %v3424_v26 = vld [vmem:[#allocation11 + $0x60] sm:$0xff]  ;;  %v3422_v2 = vld [vmem:[#allocation11 + $0x50] sm:$0xff] }
 0x981   :  { %6580 = vmatpush1.bf16.msra.mxu0 %v6579_v40  ;;  %6612 = vmatpush1.bf16.msra.mxu1 %v6611_v32  ;;  %v3111_v40 = vld [vmem:[#allocation10 + $0x198] sm:$0xff]  ;;  %v3426_v55 = vld [vmem:[#allocation11 + $0x70] sm:$0xff] }
 0x982   :  { %6582 = vmatprep.subr.bf16.mxu0 %v6581_v4  ;;  %6614 = vmatprep.subr.bf16.mxu1 %v6613_v24  ;;  %v3115_v32 = vld [vmem:[#allocation10 + $0x1b8] sm:$0xff]  ;;  %v3108_v4 = vld [vmem:[#allocation10 + $0x180] sm:$0xff] }
 0x983   :  { %v3112_v24 = vld [vmem:[#allocation10 + $0x1a0] sm:$0xff]  ;;  %v6629_v38 = vpack.c.bf16 %v3115_v32, %v3111_v40  ;;  %v3435_v32 = vld [vmem:[#allocation11 + $0xb8] sm:$0xff] }
 0x984   :  { %v6599_v5 = vpack.c.bf16 %v3112_v24, %v3108_v4  ;;  %v3432_v40 = vld [vmem:[#allocation11 + $0xa0] sm:$0xff]  ;;  %v3430_v4 = vld [vmem:[#allocation11 + $0x90] sm:$0xff] }
 0x985   :  { %6584 = vmatpush1.bf16.msra.mxu0 %v6583_v33  ;;  %6616 = vmatpush1.bf16.msra.mxu1 %v6615_v41  ;;  %v3119_v33 = vld [vmem:[#allocation10 + $0x1d8] sm:$0xff]  ;;  %v3434_v24 = vld [vmem:[#allocation11 + $0xb0] sm:$0xff] }
 0x986   :  { %6586 = vmatprep.subr.bf16.mxu0 %v6585_v36  ;;  %6618 = vmatprep.subr.bf16.mxu1 %v6617_v13  ;;  %v3123_v41 = vld [vmem:[#allocation10 + $0x1f8] sm:$0xff]  ;;  %v3116_v36 = vld [vmem:[#allocation10 + $0x1c0] sm:$0xff]  ;;  %v6601_v13 = vpack.c.bf16 %v3121_v30, %v3117_v9 }
 0x987   :  { %v6633_v22 = vpack.c.bf16 %v3123_v41, %v3119_v33  ;;  %v6603_v60 = vpack.c.bf16 %v3120_v34, %v3116_v36  ;;  %v3436_v30 = vld [vmem:[#allocation11 + $0xc0] sm:$0xff]  ;;  %v3443_v41 = vld [vmem:[#allocation11 + $0xf8] sm:$0xff]  ;;  %v3438_v36 = vld [vmem:[#allocation11 + $0xd0] sm:$0xff] }
 0x988   :  { %v3440_v33 = vld [vmem:[#allocation11 + $0xe0] sm:$0xff] }
 0x989   :  { %6588 = vmatpush1.bf16.msra.mxu0 %v6587_v25  ;;  %6620 = vmatpush1.bf16.msra.mxu1 %v6619_v46  ;;  %v3416_v25 = vld [vmem:[#allocation11 + $0x20] sm:$0xff] }
 0x98a   :  { %6590 = vmatprep.subr.bf16.mxu0 %v6589_v59  ;;  %6622 = vmatprep.subr.bf16.mxu1 %v6621_v10  ;;  %v3418_v59 = vld [vmem:[#allocation11 + $0x30] sm:$0xff]  ;;  %v3421_v10 = vld [vmem:[#allocation11 + $0x48] sm:$0xff] }
 0x98b   :  { %v8784_v12 = vpack.c.bf16 %v3425_v56, %v3421_v10 }
 0x98d   :  { %6592 = vmatpush1.bf16.msra.mxu0 %v6591_v58  ;;  %6624 = vmatpush1.bf16.msra.mxu1 %v6623_v27  ;;  %v8786_v58 = vpack.c.bf16 %v3424_v26, %v3420_v11  ;;  %v8788_v27 = vpack.c.bf16 %v3427_v42, %v3423_v49  ;;  %v3452_v49 = vld [vmem:[#allocation11 + $0x140] sm:$0xff]  ;;  %v3455_v26 = vld [vmem:[#allocation11 + $0x158] sm:$0xff] }
 0x98e   :  { %6594 = vmatprep.subr.bf16.mxu0 %v6593_v63  ;;  %6626 = vmatprep.subr.bf16.mxu1 %v6625_v7  ;;  %v8791_v63 = vpack.c.bf16 %v3426_v55, %v3422_v2  ;;  %v3429_v7 = vld [vmem:[#allocation11 + $0x88] sm:$0xff]  ;;  %v3456_v11 = vld [vmem:[#allocation11 + $0x160] sm:$0xff]  ;;  %v3459_v42 = vld [vmem:[#allocation11 + $0x178] sm:$0xff] }
 0x98f   :  { %v8796_v20 = vpack.c.bf16 %v3433_v16, %v3429_v7  ;;  %v3454_v2 = vld [vmem:[#allocation11 + $0x150] sm:$0xff]  ;;  %v8833_v7 = vpack.c.bf16 %v3456_v11, %v3452_v49  ;;  %v8835_v16 = vpack.c.bf16 %v3459_v42, %v3455_v26 }
 0x990   :  { %v3458_v55 = vld [vmem:[#allocation11 + $0x170] sm:$0xff] }
 0x991   :  { %6596 = vmatpush1.bf16.msra.mxu0 %v6595_v47  ;;  %6628 = vmatpush1.bf16.msra.mxu1 %v6627_v48  ;;  %v8798_v47 = vpack.c.bf16 %v3432_v40, %v3428_v23  ;;  %v8800_v48 = vpack.c.bf16 %v3435_v32, %v3431_v62  ;;  %v3461_v62 = vld [vmem:[#allocation11 + $0x188] sm:$0xff]  ;;  %v3460_v40 = vld [vmem:[#allocation11 + $0x180] sm:$0xff]  ;;  %v8839_v32 = vpack.c.bf16 %v3458_v55, %v3454_v2 }
 0x992   :  { %6598 = vmatprep.subr.bf16.mxu0 %v6597_v37  ;;  %6630 = vmatprep.subr.bf16.mxu1 %v6629_v38  ;;  %v8803_v37 = vpack.c.bf16 %v3434_v24, %v3430_v4  ;;  %v3437_v38 = vld [vmem:[#allocation11 + $0xc8] sm:$0xff]  ;;  %v3464_v24 = vld [vmem:[#allocation11 + $0x1a0] sm:$0xff] }
 0x993   :  { %v8808_v9 = vpack.c.bf16 %v3441_v28, %v3437_v38  ;;  %v3465_v23 = vld [vmem:[#allocation11 + $0x1a8] sm:$0xff]  ;;  %v3463_v38 = vld [vmem:[#allocation11 + $0x198] sm:$0xff] }
 0x994   :  { %v8841_v4 = vpack.c.bf16 %v3465_v23, %v3461_v62  ;;  %v3467_v28 = vld [vmem:[#allocation11 + $0x1b8] sm:$0xff] }
 0x995   :  { %6600 = vmatpush1.bf16.msra.mxu0 %v6599_v5  ;;  %6632 = vmatpush1.bf16.msra.mxu1 %v6631_v35  ;;  %v8810_v5 = vpack.c.bf16 %v3440_v33, %v3436_v30  ;;  %v8812_v35 = vpack.c.bf16 %v3443_v41, %v3439_v61  ;;  %v8844_v61 = vpack.c.bf16 %v3467_v28, %v3463_v38  ;;  %v3462_v30 = vld [vmem:[#allocation11 + $0x190] sm:$0xff]  ;;  %v3469_v41 = vld [vmem:[#allocation11 + $0x1c8] sm:$0xff] }
 0x996   :  { %6602 = vmatprep.subr.bf16.mxu0 %v6601_v13  ;;  %6634 = vmatprep.subr.bf16.mxu1 %v6633_v22  ;;  %v3442_v13 = vld [vmem:[#allocation11 + $0xf0] sm:$0xff]  ;;  %v3445_v22 = vld [vmem:[#allocation11 + $0x108] sm:$0xff] }
 0x997   :  { %v8815_v34 = vpack.c.bf16 %v3442_v13, %v3438_v36  ;;  %v3466_v33 = vld [vmem:[#allocation11 + $0x1b0] sm:$0xff]  ;;  %v3473_v36 = vld [vmem:[#allocation11 + $0x1e8] sm:$0xff]  ;;  %v8847_v13 = vpack.c.bf16 %v3464_v24, %v3460_v40 }
 0x999   :  { %6604 = vmatpush1.bf16.msra.mxu0 %v6603_v60  ;;  %6636 = vmatpush1.bf16.msra.mxu1 %v6635_v14  ;;  %v3448_v60 = vld [vmem:[#allocation11 + $0x120] sm:$0xff]  ;;  %v8819_v14 = vpack.c.bf16 %v3449_v43, %v3445_v22  ;;  %v8851_v22 = vpack.c.bf16 %v3466_v33, %v3462_v30  ;;  %v8853_v43 = vpack.c.bf16 %v3473_v36, %v3469_v41 }
 0x99c   :  { %3211 = vmatmul.mubr.f32.vlgmr.msra.gmra.mrb[16].mxu0 %v8411_v54  ;;  %3324 = vmatmul.mubr.f32.vlgmr.msra.gmra.mrb[40].mxu1 %v8411_v54  ;;  %v3413_v54 = vld [vmem:[#allocation11 + $0x8] sm:$0xff] }
 0x99d   :  { %3216 = vmatprep.mubr.f32.mxu0 %v7802_v1  ;;  %3329 = vmatprep.mubr.f32.mxu1 %v7802_v1 }
 0x9a0   :  { %3217 = vmatmul.mubr.f32.gmra.mrb[18].mxu0 %v8455_v31  ;;  %3330 = vmatmul.mubr.f32.gmra.mrb[42].mxu1 %v8455_v31  ;;  %v3417_v31 = vld [vmem:[#allocation11 + $0x28] sm:$0xff] }
 0x9a1   :  { %3222 = vmatprep.mubr.f32.mxu0 %v7802_v1  ;;  %3335 = vmatprep.mubr.f32.mxu1 %v7802_v1 }
 0x9a4   :  { %3223 = vmatmul.mubr.f32.gmra.mrb[20].mxu0 %v8525_v0  ;;  %3336 = vmatmul.mubr.f32.gmra.mrb[44].mxu1 %v8525_v0  ;;  %v3415_v0 = vld [vmem:[#allocation11 + $0x18] sm:$0xff] }
 0x9a5   :  { %3228 = vmatprep.mubr.f32.mxu0 %v7802_v1  ;;  %3341 = vmatprep.mubr.f32.mxu1 %v7802_v1 }
 0x9a8   :  { %3229 = vmatmul.mubr.f32.gmra.mrb[22].mxu0 %v8613_v19  ;;  %3342 = vmatmul.mubr.f32.gmra.mrb[46].mxu1 %v8613_v19  ;;  %v8772_v19 = vpack.c.bf16 %v3417_v31, %v3413_v54  ;;  %v8821_v54 = vpack.c.bf16 %v3448_v60, %v3444_v17  ;;  %v3447_v31 = vld [vmem:[#allocation11 + $0x118] sm:$0xff] }
 0x9a9   :  { %3234 = vmatprep.mubr.f32.mxu0 %v7802_v1  ;;  %3347 = vmatprep.mubr.f32.mxu1 %v7802_v1  ;;  %v3471_v17 = vld [vmem:[#allocation11 + $0x1d8] sm:$0xff] }
 0x9aa   :  { %6638 = vmatprep.subr.bf16.mxu0 %v8772_v19  ;;  %v3475_v60 = vld [vmem:[#allocation11 + $0x1f8] sm:$0xff] }
 0x9ac   :  { %3235 = vmatmul.mubr.f32.gmra.mrb[24].mxu0 %v8659_v57  ;;  %3348 = vmatmul.mubr.f32.gmra.mrb[48].mxu1 %v8659_v57  ;;  %v3412_v57 = vld [vmem:[#allocation11] sm:$0xff] }
 0x9ad   :  { %3240 = vmatprep.mubr.f32.mxu0 %v7802_v1  ;;  %3353 = vmatprep.mubr.f32.mxu1 %v7802_v1  ;;  %v8774_v46 = vpack.c.bf16 %v3416_v25, %v3412_v57  ;;  %v3446_v57 = vld [vmem:[#allocation11 + $0x110] sm:$0xff] }
 0x9af   :  { %6640 = vmatpush1.bf16.msra.mxu0 %v8774_v46 }
 0x9b0   :  { %3241 = vmatmul.mubr.f32.gmra.mrb[26].mxu0 %v8703_v29  ;;  %3354 = vmatmul.mubr.f32.gmra.mrb[50].mxu1 %v8703_v29  ;;  %v3419_v29 = vld [vmem:[#allocation11 + $0x38] sm:$0xff] }
 0x9b1   :  { %3246 = vmatprep.mubr.f32.mxu0 %v7802_v1  ;;  %3359 = vmatprep.mubr.f32.mxu1 %v7802_v1  ;;  %v8776_v21 = vpack.c.bf16 %v3419_v29, %v3415_v0  ;;  %v3451_v0 = vld [vmem:[#allocation11 + $0x138] sm:$0xff]  ;;  %v3450_v29 = vld [vmem:[#allocation11 + $0x130] sm:$0xff] }
 0x9b2   :  { %6642 = vmatprep.subr.bf16.mxu0 %v8784_v12  ;;  %v8824_v25 = vpack.c.bf16 %v3451_v0, %v3447_v31  ;;  %v8827_v10 = vpack.c.bf16 %v3450_v29, %v3446_v57  ;;  %v3468_v31 = vld [vmem:[#allocation11 + $0x1c0] sm:$0xff]  ;;  %v8859_v57 = vpack.c.bf16 %v3475_v60, %v3471_v17  ;;  %v3470_v29 = vld [vmem:[#allocation11 + $0x1d0] sm:$0xff] }
 0x9b3   :  { %6670 = vmatprep.subr.bf16.mxu1 %v8776_v21  ;;  %6644 = vmatpush1.bf16.msra.mxu0 %v8786_v58  ;;  %v3472_v0 = vld [vmem:[#allocation11 + $0x1e0] sm:$0xff] }
 0x9b4   :  { %3247 = vmatmul.mubr.f32.gmra.mrb[28].mxu0 %v8738_v53  ;;  %3360 = vmatmul.mubr.f32.gmra.mrb[52].mxu1 %v8738_v53  ;;  %v8779_v53 = vpack.c.bf16 %v3418_v59, %v3414_v50  ;;  %v3453_v50 = vld [vmem:[#allocation11 + $0x148] sm:$0xff] }
 0x9b5   :  { %3252 = vmatprep.mubr.f32.mxu0 %v7802_v1  ;;  %3365 = vmatprep.mubr.f32.mxu1 %v7802_v1  ;;  %v3457_v59 = vld [vmem:[#allocation11 + $0x168] sm:$0xff] }
 0x9b6   :  { %6672 = vmatpush1.bf16.msra.mxu1 %v8779_v53  ;;  %6646 = vmatprep.subr.bf16.mxu0 %v8796_v20  ;;  %v8829_v56 = vpack.c.bf16 %v3457_v59, %v3453_v50  ;;  %v8861_v50 = vpack.c.bf16 %v3472_v0, %v3468_v31  ;;  %v3474_v59 = vld [vmem:[#allocation11 + $0x1f0] sm:$0xff] }
 0x9b7   :  { %6674 = vmatprep.subr.bf16.mxu1 %v8788_v27  ;;  %6648 = vmatpush1.bf16.msra.mxu0 %v8798_v47  ;;  %v8864_v49 = vpack.c.bf16 %v3474_v59, %v3470_v29 }
 0x9b8   :  { %6650 = vmatprep.subr.bf16.mxu0 %v8808_v9 }
 0x9ba   :  { %6676 = vmatpush1.bf16.msra.mxu1 %v8791_v63 }
 0x9bb   :  { %6678 = vmatprep.subr.bf16.mxu1 %v8800_v48  ;;  %6652 = vmatpush1.bf16.msra.mxu0 %v8810_v5 }
 0x9bc   :  { %6654 = vmatprep.subr.bf16.mxu0 %v8819_v14 }
 0x9be   :  { %6680 = vmatpush1.bf16.msra.mxu1 %v8803_v37 }
 0x9bf   :  { %6682 = vmatprep.subr.bf16.mxu1 %v8812_v35  ;;  %6656 = vmatpush1.bf16.msra.mxu0 %v8821_v54 }
 0x9c0   :  { %6658 = vmatprep.subr.bf16.mxu0 %v8829_v56 }
 0x9c2   :  { %6684 = vmatpush1.bf16.msra.mxu1 %v8815_v34 }
 0x9c3   :  { %6686 = vmatprep.subr.bf16.mxu1 %v8824_v25  ;;  %6660 = vmatpush1.bf16.msra.mxu0 %v8833_v7 }
 0x9c4   :  { %6662 = vmatprep.subr.bf16.mxu0 %v8841_v4 }
 0x9c6   :  { %6688 = vmatpush1.bf16.msra.mxu1 %v8827_v10 }
 0x9c7   :  { %6690 = vmatprep.subr.bf16.mxu1 %v8835_v16  ;;  %6664 = vmatpush1.bf16.msra.mxu0 %v8847_v13 }
 0x9c8   :  { %6666 = vmatprep.subr.bf16.mxu0 %v8853_v43 }
 0x9ca   :  { %6692 = vmatpush1.bf16.msra.mxu1 %v8839_v32 }
 0x9cb   :  { %6694 = vmatprep.subr.bf16.mxu1 %v8844_v61  ;;  %6668 = vmatpush1.bf16.msra.mxu0 %v8861_v50 }
 0x9cc   :  { %6702 = vmatprep.subr.bf16.mxu0 %v8772_v19 }
 0x9ce   :  { %6696 = vmatpush1.bf16.msra.mxu1 %v8851_v22 }
 0x9cf   :  { %6698 = vmatprep.subr.bf16.mxu1 %v8859_v57 }
 0x9d2   :  { %6700 = vmatpush1.bf16.msra.mxu1 %v8864_v49 }
 0x9d3   :  { %6734 = vmatprep.subr.bf16.mxu1 %v8776_v21 }
 0xa4f   :  { %v2945_v11 = vpop.f32.mrb[14].mxu0  ;;  %v3016_v26 = vpop.f32.mrb[38].mxu1 }
 0xa50   :  { %v7195_v42 = vadd.f32 %v2945_v11, %v8385_v52  ;;  %v2947_v2 = vpop.f32.mrb[15].mxu0  ;;  %v3018_v55 = vpop.f32.mrb[39].mxu1  ;;  %v7211_v28 = vadd.f32 %v3016_v26, %v8402_v8  ;;  %v5788_v26 = vld [vmem:[%s9527_s14 + $0x8] sm:$0xff] }
 0xa51   :  { %v7196_v62 = vadd.f32 %v2947_v2, %v8389_v18  ;;  %v7212_v24 = vadd.f32 %v3018_v55, %v8396_v3 }
 0xa52   :  { %v5785_v23 = vmul.f32 -1.442695, %v7195_v42 }
 0xa53   :  { %v5786_v40 = vmul.f32 -1.442695, %v7196_v62  ;;  %v5787_v38 = vmul.f32 -1.442695, %v7212_v24 }
 0xa54   :  { %7439 = vpow2.f32 %v5785_v23 }
 0xa55   :  { %7441 = vpow2.f32 %v5786_v40 }
 0xa56   :  { %7443 = vpow2.f32 %v5787_v38 }
 0xa57   :  { %7445 = vtanh.f32 %v7211_v28 }
 0xa5e   :  { %v7440_v30 = vpop.eup %7439 }
 0xa5f   :  { %v7442_v33 = vpop.eup %7441  ;;  %v3028_v41 = vadd.f32 1.0, %v7440_v30 }
 0xa60   :  { %v3034_v36 = vadd.f32 1.0, %v7442_v33  ;;  %v7444_v52 = vpop.eup %7443 }
 0xa61   :  { %7447 = vrcp.f32 %v3028_v41  ;;  %v7446_v17 = vpop.eup %7445  ;;  %v3041_v0 = vadd.f32 1.0, %v7444_v52 }
 0xa62   :  { %7449 = vrcp.f32 %v3034_v36 }
 0xa63   :  { %7451 = vrcp.f32 %v3041_v0 }
 0xa6b   :  { %v7448_v18 = vpop.eup %7447 }
 0xa6c   :  { %v7450_v60 = vpop.eup %7449  ;;  %v3045_v31 = vmul.f32 %v7448_v18, %v7446_v17 }
 0xa6d   :  { %v3044_v29 = vmul.f32 %v7450_v60, %v8735_v15  ;;  %v7452_v8 = vpop.eup %7451  ;;  %v3124_v15 = vld [vmem:[%s9524_s11] sm:$0xf] }
 0xa6e   :  { %v8919_v42 = vrot.slane %v3124_v15, %v860_v45  ;;  %v8923_v2 = vrot.slane %v3124_v15, %v864_v51  ;;  %v8929_v30 = vrot.slane %v3124_v15, %v872_v39  ;;  %v8934_v51 = vrot.slane %v3124_v15, %v868_v6 }
 0xa6f   :  { %v3046_v3 = vadd.f32 %v3045_v31, %v3044_v29  ;;  %v5789_v31 = vld [vmem:[%s9528_s15 + $0x8] sm:$0xff] }
 0xa71   :  { %7453 = vtanh.f32 %v3046_v3  ;;  %3051 = vst [vmem:[#allocation16] sm:$0xff] %v3046_v3 }
 0xa7b   :  { %v7454_v59 = vpop.eup %7453 }
 0xa7c   :  { %v3048_v11 = vmul.f32 %v7454_v59, %v7452_v8 }
 0xa7e   :  { %3253 = vmatmul.mubr.f32.gmra.mrb[30].mxu0 %v3048_v11  ;;  %3050 = vst [vmem:[#allocation14] sm:$0xff] %v3048_v11  ;;  %3366 = vmatmul.mubr.f32.gmra.mrb[54].mxu1 %v3048_v11 }
 0xa7f   :  { %3540 = vmatprep.mubr.f32.mxu0 %v7802_v1  ;;  %3611 = vmatprep.mubr.f32.mxu1 %v7802_v1 }
 0xa82   :  { %3541 = vmatmul.mubr.f32.vlgmr.msra.gmra.mrb[16].mxu0 %v5788_v26  ;;  %3612 = vmatmul.mubr.f32.vlgmr.msra.gmra.mrb[40].mxu1 %v5788_v26 }
 0xa83   :  { %6704 = vmatpush1.bf16.msra.mxu0 %v8774_v46  ;;  %6736 = vmatpush1.bf16.msra.mxu1 %v8779_v53 }
 0xa84   :  { %6706 = vmatprep.subr.bf16.mxu0 %v8784_v12  ;;  %6738 = vmatprep.subr.bf16.mxu1 %v8788_v27 }
 0xa85   :  { %3786 = vmatprep.mubr.f32.mxu0 %v7802_v1  ;;  %3857 = vmatprep.mubr.f32.mxu1 %v7802_v1 }
 0xa87   :  { %6708 = vmatpush1.bf16.msra.mxu0 %v8786_v58  ;;  %6740 = vmatpush1.bf16.msra.mxu1 %v8791_v63 }
 0xa88   :  { %6710 = vmatprep.subr.bf16.mxu0 %v8796_v20  ;;  %6742 = vmatprep.subr.bf16.mxu1 %v8800_v48 }
 0xa8b   :  { %6712 = vmatpush1.bf16.msra.mxu0 %v8798_v47  ;;  %6744 = vmatpush1.bf16.msra.mxu1 %v8803_v37 }
 0xa8c   :  { %6714 = vmatprep.subr.bf16.mxu0 %v8808_v9  ;;  %6746 = vmatprep.subr.bf16.mxu1 %v8812_v35 }
 0xa8f   :  { %6716 = vmatpush1.bf16.msra.mxu0 %v8810_v5  ;;  %6748 = vmatpush1.bf16.msra.mxu1 %v8815_v34 }
 0xa90   :  { %6718 = vmatprep.subr.bf16.mxu0 %v8819_v14  ;;  %6750 = vmatprep.subr.bf16.mxu1 %v8824_v25 }
 0xa93   :  { %6720 = vmatpush1.bf16.msra.mxu0 %v8821_v54  ;;  %6752 = vmatpush1.bf16.msra.mxu1 %v8827_v10 }
 0xa94   :  { %6722 = vmatprep.subr.bf16.mxu0 %v8829_v56  ;;  %6754 = vmatprep.subr.bf16.mxu1 %v8835_v16 }
 0xa97   :  { %6724 = vmatpush1.bf16.msra.mxu0 %v8833_v7  ;;  %6756 = vmatpush1.bf16.msra.mxu1 %v8839_v32 }
 0xa98   :  { %6726 = vmatprep.subr.bf16.mxu0 %v8841_v4  ;;  %6758 = vmatprep.subr.bf16.mxu1 %v8844_v61 }
 0xa9b   :  { %6728 = vmatpush1.bf16.msra.mxu0 %v8847_v13  ;;  %6760 = vmatpush1.bf16.msra.mxu1 %v8851_v22 }
 0xa9c   :  { %6730 = vmatprep.subr.bf16.mxu0 %v8853_v43  ;;  %6762 = vmatprep.subr.bf16.mxu1 %v8859_v57 }
 0xa9f   :  { %6732 = vmatpush1.bf16.msra.mxu0 %v8861_v50  ;;  %6764 = vmatpush1.bf16.msra.mxu1 %v8864_v49 }
 0xaa0   :  { %6766 = vmatprep.subr.bf16.mxu0 %v8772_v19  ;;  %6798 = vmatprep.subr.bf16.mxu1 %v8776_v21 }
 0xb55   :  { %v3542_v55 = vpop.f32.mrb[16].mxu0  ;;  %v3613_v62 = vpop.f32.mrb[40].mxu1 }
 0xb56   :  { %v7213_v23 = vadd.f32 %v3542_v55, %v8919_v42  ;;  %v3544_v40 = vpop.f32.mrb[17].mxu0  ;;  %v3615_v19 = vpop.f32.mrb[41].mxu1  ;;  %v7229_v41 = vadd.f32 %v3613_v62, %v8934_v51 }
 0xb57   :  { %v7214_v24 = vadd.f32 %v3544_v40, %v8923_v2  ;;  %v7230_v45 = vadd.f32 %v3615_v19, %v8929_v30  ;;  %v4151_v19 = vld [vmem:[#allocation11 + $0x8] sm:$0xff] }
 0xb58   :  { %v5790_v38 = vmul.f32 -1.442695, %v7213_v23 }
 0xb59   :  { %v5791_v28 = vmul.f32 -1.442695, %v7214_v24  ;;  %v5792_v33 = vmul.f32 -1.442695, %v7230_v45  ;;  %v4155_v24 = vld [vmem:[#allocation11 + $0x28] sm:$0xff]  ;;  %v4154_v45 = vld [vmem:[#allocation11 + $0x20] sm:$0xff] }
 0xb5a   :  { %7455 = vpow2.f32 %v5790_v38  ;;  %v8986_v38 = vpack.c.bf16 %v4155_v24, %v4151_v19  ;;  %v4196_v19 = vld [vmem:[#allocation11 + $0x170] sm:$0xff] }
 0xb5b   :  { %7457 = vpow2.f32 %v5791_v28  ;;  %v4150_v28 = vld [vmem:[#allocation11] sm:$0xff] }
 0xb5c   :  { %7459 = vpow2.f32 %v5792_v33  ;;  %v4152_v33 = vld [vmem:[#allocation11 + $0x10] sm:$0xff] }
 0xb5d   :  { %7461 = vtanh.f32 %v7229_v41  ;;  %v8988_v41 = vpack.c.bf16 %v4154_v45, %v4150_v28  ;;  %v4199_v28 = vld [vmem:[#allocation11 + $0x188] sm:$0xff] }
 0xb5e   :  { %v4203_v45 = vld [vmem:[#allocation11 + $0x1a8] sm:$0xff] }
 0xb64   :  { %v7456_v36 = vpop.eup %7455 }
 0xb65   :  { %v7458_v52 = vpop.eup %7457  ;;  %v3625_v17 = vadd.f32 1.0, %v7456_v36  ;;  %v4156_v36 = vld [vmem:[#allocation11 + $0x30] sm:$0xff] }
 0xb66   :  { %v3631_v18 = vadd.f32 1.0, %v7458_v52  ;;  %v7460_v39 = vpop.eup %7459  ;;  %v8991_v52 = vpack.c.bf16 %v4156_v36, %v4152_v33  ;;  %v9045_v33 = vpack.c.bf16 %v4203_v45, %v4199_v28  ;;  %v4198_v36 = vld [vmem:[#allocation11 + $0x180] sm:$0xff]  ;;  %v4415_v28 = vld [vmem:[#allocation11 + $0x98] sm:$0xff] }
 0xb67   :  { %7463 = vrcp.f32 %v3625_v17  ;;  %v7462_v60 = vpop.eup %7461  ;;  %v3638_v29 = vadd.f32 1.0, %v7460_v39  ;;  %v4159_v17 = vld [vmem:[#allocation11 + $0x48] sm:$0xff]  ;;  %v4419_v45 = vld [vmem:[#allocation11 + $0xb8] sm:$0xff] }
 0xb68   :  { %7465 = vrcp.f32 %v3631_v18  ;;  %v4163_v18 = vld [vmem:[#allocation11 + $0x68] sm:$0xff] }
 0xb69   :  { %7467 = vrcp.f32 %v3638_v29  ;;  %v8995_v39 = vpack.c.bf16 %v4163_v18, %v4159_v17  ;;  %v4202_v17 = vld [vmem:[#allocation11 + $0x1a0] sm:$0xff]  ;;  %v4200_v18 = vld [vmem:[#allocation11 + $0x190] sm:$0xff] }
 0xb71   :  { %v7464_v44 = vpop.eup %7463 }
 0xb72   :  { %v7466_v6 = vpop.eup %7465  ;;  %v3642_v0 = vmul.f32 %v7464_v44, %v7462_v60  ;;  %v4158_v60 = vld [vmem:[#allocation11 + $0x40] sm:$0xff]  ;;  %v4160_v44 = vld [vmem:[#allocation11 + $0x50] sm:$0xff] }
 0xb73   :  { %v3641_v3 = vmul.f32 %v7466_v6, %v5789_v31  ;;  %v7468_v59 = vpop.eup %7467  ;;  %v4162_v31 = vld [vmem:[#allocation11 + $0x60] sm:$0xff] }
 0xb74   :  { %v8998_v6 = vpack.c.bf16 %v4162_v31, %v4158_v60  ;;  %v4204_v60 = vld [vmem:[#allocation11 + $0x1b0] sm:$0xff] }
 0xb75   :  { %v8940_v8 = vadd.f32 %v3642_v0, %v3641_v3  ;;  %v4164_v0 = vld [vmem:[#allocation11 + $0x70] sm:$0xff]  ;;  %v4167_v3 = vld [vmem:[#allocation11 + $0x88] sm:$0xff]  ;;  %v9051_v31 = vpack.c.bf16 %v4204_v60, %v4200_v18  ;;  %v4427_v18 = vld [vmem:[#allocation11 + $0xf8] sm:$0xff] }
 0xb76   :  { %v9001_v29 = vpack.c.bf16 %v4164_v0, %v4160_v44 }
 0xb77   :  { %7469 = vtanh.f32 %v8940_v8 }
 0xb81   :  { %v7470_v11 = vpop.eup %7469 }
 0xb82   :  { %v3645_v26 = vmul.f32 %v7470_v11, %v7468_v59  ;;  %v4166_v11 = vld [vmem:[#allocation11 + $0x80] sm:$0xff] }
 0xb84   :  { %3646 = vst [vmem:[#allocation13] ss:$39 sps:$4 sm:$0x21] %v3645_v26   ;;  %3647 = vst [vmem:[#allocation13 + $0x7] ss:$25 sps:$4 sm:$0x12] %v3645_v26   ;;  %3787 = vmatmul.mubr.f32.vlgmr.msra.gmra.mrb[18].mxu0 %v3645_v26  ;;  %3858 = vmatmul.mubr.f32.vlgmr.msra.gmra.mrb[42].mxu1 %v3645_v26 }
 0xb85   :  { %3648 = vst [vmem:[#allocation13 + $0xe] ss:$39 sps:$4 sm:$0x84] %v3645_v26   ;;  %3649 = vst [vmem:[#allocation13 + $0x15] ss:$25 sps:$4 sm:$0x48] %v3645_v26   ;;  %6768 = vmatpush1.bf16.msra.mxu0 %v8774_v46  ;;  %6800 = vmatpush1.bf16.msra.mxu1 %v8779_v53 }
 0xb86   :  { %6770 = vmatprep.subr.bf16.mxu0 %v8784_v12  ;;  %6802 = vmatprep.subr.bf16.mxu1 %v8788_v27  ;;  %v4170_v26 = vld [vmem:[#allocation11 + $0xa0] sm:$0xff] }
 0xb87   :  { %4032 = vmatprep.mubr.f32.mxu0 %v7802_v1  ;;  %4103 = vmatprep.mubr.f32.mxu1 %v7802_v1 }
 0xb89   :  { %6772 = vmatpush1.bf16.msra.mxu0 %v8786_v58  ;;  %6804 = vmatpush1.bf16.msra.mxu1 %v8791_v63 }
 0xb8a   :  { %6774 = vmatprep.subr.bf16.mxu0 %v8796_v20  ;;  %6806 = vmatprep.subr.bf16.mxu1 %v8800_v48 }
 0xb8d   :  { %6776 = vmatpush1.bf16.msra.mxu0 %v8798_v47  ;;  %6808 = vmatpush1.bf16.msra.mxu1 %v8803_v37 }
 0xb8e   :  { %6778 = vmatprep.subr.bf16.mxu0 %v8808_v9  ;;  %6810 = vmatprep.subr.bf16.mxu1 %v8812_v35 }
 0xb91   :  { %6780 = vmatpush1.bf16.msra.mxu0 %v8810_v5  ;;  %6812 = vmatpush1.bf16.msra.mxu1 %v8815_v34 }
 0xb92   :  { %6782 = vmatprep.subr.bf16.mxu0 %v8819_v14  ;;  %6814 = vmatprep.subr.bf16.mxu1 %v8824_v25 }
 0xb95   :  { %6784 = vmatpush1.bf16.msra.mxu0 %v8821_v54  ;;  %6816 = vmatpush1.bf16.msra.mxu1 %v8827_v10 }
 0xb96   :  { %6786 = vmatprep.subr.bf16.mxu0 %v8829_v56  ;;  %6818 = vmatprep.subr.bf16.mxu1 %v8835_v16 }
 0xb99   :  { %6788 = vmatpush1.bf16.msra.mxu0 %v8833_v7  ;;  %6820 = vmatpush1.bf16.msra.mxu1 %v8839_v32 }
 0xb9a   :  { %6790 = vmatprep.subr.bf16.mxu0 %v8841_v4  ;;  %6822 = vmatprep.subr.bf16.mxu1 %v8844_v61 }
 0xb9d   :  { %6792 = vmatpush1.bf16.msra.mxu0 %v8847_v13  ;;  %6824 = vmatpush1.bf16.msra.mxu1 %v8851_v22 }
 0xb9e   :  { %6794 = vmatprep.subr.bf16.mxu0 %v8853_v43  ;;  %6826 = vmatprep.subr.bf16.mxu1 %v8859_v57 }
 0xba1   :  { %6796 = vmatpush1.bf16.msra.mxu0 %v8861_v50  ;;  %6828 = vmatpush1.bf16.msra.mxu1 %v8864_v49 }
 0xba2   :  { %6862 = vmatprep.subr.bf16.mxu1 %v8776_v21  ;;  %6830 = vmatprep.subr.bf16.mxu0 %v8986_v38 }
 0xc57   :  { %v3788_v46 = vpop.f32.mrb[18].mxu0  ;;  %v3859_v53 = vpop.f32.mrb[42].mxu1 }
 0xc58   :  { %v7215_v12 = vadd.f32 %v3788_v46, %v8919_v42  ;;  %v3790_v58 = vpop.f32.mrb[19].mxu0  ;;  %v3861_v63 = vpop.f32.mrb[43].mxu1  ;;  %v7231_v34 = vadd.f32 %v3859_v53, %v8934_v51  ;;  %v4168_v46 = vld [vmem:[#allocation11 + $0x90] sm:$0xff] }
 0xc59   :  { %v7216_v20 = vadd.f32 %v3790_v58, %v8923_v2  ;;  %v7232_v9 = vadd.f32 %v3861_v63, %v8929_v30  ;;  %v4172_v53 = vld [vmem:[#allocation11 + $0xb0] sm:$0xff]  ;;  %v4175_v58 = vld [vmem:[#allocation11 + $0xc8] sm:$0xff] }
 0xc5a   :  { %v5793_v47 = vmul.f32 -1.442695, %v7215_v12  ;;  %v9011_v12 = vpack.c.bf16 %v4172_v53, %v4168_v46  ;;  %v4179_v63 = vld [vmem:[#allocation11 + $0xe8] sm:$0xff] }
 0xc5b   :  { %v5794_v37 = vmul.f32 -1.442695, %v7216_v20  ;;  %v5795_v5 = vmul.f32 -1.442695, %v7232_v9  ;;  %v9015_v20 = vpack.c.bf16 %v4179_v63, %v4175_v58  ;;  %v4176_v9 = vld [vmem:[#allocation11 + $0xd0] sm:$0xff] }
 0xc5c   :  { %7471 = vpow2.f32 %v5793_v47  ;;  %v4174_v47 = vld [vmem:[#allocation11 + $0xc0] sm:$0xff] }
 0xc5d   :  { %7473 = vpow2.f32 %v5794_v37  ;;  %v4178_v37 = vld [vmem:[#allocation11 + $0xe0] sm:$0xff] }
 0xc5e   :  { %7475 = vpow2.f32 %v5795_v5  ;;  %v4180_v5 = vld [vmem:[#allocation11 + $0xf0] sm:$0xff] }
 0xc5f   :  { %7477 = vtanh.f32 %v7231_v34  ;;  %v9021_v34 = vpack.c.bf16 %v4180_v5, %v4176_v9 }
 0xc66   :  { %v7472_v14 = vpop.eup %7471 }
 0xc67   :  { %v7474_v54 = vpop.eup %7473  ;;  %v3871_v21 = vadd.f32 1.0, %v7472_v14  ;;  %v4183_v14 = vld [vmem:[#allocation11 + $0x108] sm:$0xff] }
 0xc68   :  { %v3877_v10 = vadd.f32 1.0, %v7474_v54  ;;  %v7476_v56 = vpop.eup %7475  ;;  %v4187_v54 = vld [vmem:[#allocation11 + $0x128] sm:$0xff] }
 0xc69   :  { %7479 = vrcp.f32 %v3871_v21  ;;  %v7478_v7 = vpop.eup %7477  ;;  %v3884_v22 = vadd.f32 1.0, %v7476_v56  ;;  %v9025_v21 = vpack.c.bf16 %v4187_v54, %v4183_v14  ;;  %v4186_v56 = vld [vmem:[#allocation11 + $0x120] sm:$0xff] }
 0xc6a   :  { %7481 = vrcp.f32 %v3877_v10  ;;  %v4182_v10 = vld [vmem:[#allocation11 + $0x100] sm:$0xff] }
 0xc6b   :  { %7483 = vrcp.f32 %v3884_v22  ;;  %v4195_v22 = vld [vmem:[#allocation11 + $0x168] sm:$0xff] }
 0xc73   :  { %v7480_v32 = vpop.eup %7479 }
 0xc74   :  { %v7482_v4 = vpop.eup %7481  ;;  %v3888_v13 = vmul.f32 %v7480_v32, %v7478_v7  ;;  %v4184_v7 = vld [vmem:[#allocation11 + $0x110] sm:$0xff] }
 0xc75   :  { %v3887_v15 = vmul.f32 %v7482_v4, %v8940_v8  ;;  %v7484_v62 = vpop.eup %7483  ;;  %v4171_v8 = vld [vmem:[#allocation11 + $0xa8] sm:$0xff]  ;;  %v4188_v32 = vld [vmem:[#allocation11 + $0x130] sm:$0xff] }
 0xc76   :  { %v9005_v59 = vpack.c.bf16 %v4171_v8, %v4167_v3  ;;  %v9031_v4 = vpack.c.bf16 %v4188_v32, %v4184_v7 }
 0xc77   :  { %v8981_v55 = vadd.f32 %v3888_v13, %v3887_v15  ;;  %v4191_v13 = vld [vmem:[#allocation11 + $0x148] sm:$0xff] }
 0xc78   :  { %v9035_v15 = vpack.c.bf16 %v4195_v22, %v4191_v13  ;;  %v4403_v22 = vld [vmem:[#allocation11 + $0x38] sm:$0xff] }
 0xc79   :  { %7485 = vtanh.f32 %v8981_v55 }
 0xc83   :  { %v7486_v23 = vpop.eup %7485 }
 0xc84   :  { %v3891_v40 = vmul.f32 %v7486_v23, %v7484_v62  ;;  %v4190_v62 = vld [vmem:[#allocation11 + $0x140] sm:$0xff] }
 0xc85   :  { %v4194_v23 = vld [vmem:[#allocation11 + $0x160] sm:$0xff] }
 0xc86   :  { %3892 = vst [vmem:[#allocation13 + $0x1] ss:$39 sps:$4 sm:$0x21] %v3891_v40   ;;  %3893 = vst [vmem:[#allocation13 + $0x8] ss:$25 sps:$4 sm:$0x12] %v3891_v40   ;;  %4033 = vmatmul.mubr.f32.vlgmr.msra.gmra.mrb[20].mxu0 %v3891_v40  ;;  %4104 = vmatmul.mubr.f32.vlgmr.msra.gmra.mrb[44].mxu1 %v3891_v40 }
 0xc87   :  { %3894 = vst [vmem:[#allocation13 + $0xf] ss:$39 sps:$4 sm:$0x84] %v3891_v40   ;;  %3895 = vst [vmem:[#allocation13 + $0x16] ss:$25 sps:$4 sm:$0x48] %v3891_v40   ;;  %4278 = vmatprep.mubr.f32.mxu0 %v7802_v1  ;;  %4349 = vmatprep.mubr.f32.mxu1 %v7802_v1 }
 0xc88   :  { %6832 = vmatpush1.bf16.msra.mxu0 %v8988_v41  ;;  %6864 = vmatpush1.bf16.msra.mxu1 %v8991_v52  ;;  %v4192_v40 = vld [vmem:[#allocation11 + $0x150] sm:$0xff] }
 0xc89   :  { %6866 = vmatprep.subr.bf16.mxu1 %v8788_v27  ;;  %6834 = vmatprep.subr.bf16.mxu0 %v8995_v39  ;;  %v9008_v27 = vpack.c.bf16 %v4170_v26, %v4166_v11  ;;  %v9041_v24 = vpack.c.bf16 %v4196_v19, %v4192_v40  ;;  %v4411_v40 = vld [vmem:[#allocation11 + $0x78] sm:$0xff] }
 0xc8c   :  { %6836 = vmatpush1.bf16.msra.mxu0 %v8998_v6  ;;  %6868 = vmatpush1.bf16.msra.mxu1 %v9001_v29 }
 0xc8d   :  { %6870 = vmatprep.subr.bf16.mxu1 %v8800_v48  ;;  %6838 = vmatprep.subr.bf16.mxu0 %v9005_v59  ;;  %v9018_v48 = vpack.c.bf16 %v4178_v37, %v4174_v47 }
 0xc90   :  { %6840 = vmatpush1.bf16.msra.mxu0 %v9008_v27  ;;  %6872 = vmatpush1.bf16.msra.mxu1 %v9011_v12 }
 0xc91   :  { %6874 = vmatprep.subr.bf16.mxu1 %v8812_v35  ;;  %6842 = vmatprep.subr.bf16.mxu0 %v9015_v20  ;;  %v9028_v35 = vpack.c.bf16 %v4186_v56, %v4182_v10 }
 0xc94   :  { %6844 = vmatpush1.bf16.msra.mxu0 %v9018_v48  ;;  %6876 = vmatpush1.bf16.msra.mxu1 %v9021_v34 }
 0xc95   :  { %6878 = vmatprep.subr.bf16.mxu1 %v8824_v25  ;;  %6846 = vmatprep.subr.bf16.mxu0 %v9025_v21  ;;  %v9038_v25 = vpack.c.bf16 %v4194_v23, %v4190_v62  ;;  %v4407_v23 = vld [vmem:[#allocation11 + $0x58] sm:$0xff] }
 0xc96   :  { %v9087_v19 = vpack.c.bf16 %v4411_v40, %v4407_v23 }
 0xc98   :  { %6848 = vmatpush1.bf16.msra.mxu0 %v9028_v35  ;;  %6880 = vmatpush1.bf16.msra.mxu1 %v9031_v4 }
 0xc99   :  { %6882 = vmatprep.subr.bf16.mxu1 %v8835_v16  ;;  %6850 = vmatprep.subr.bf16.mxu0 %v9035_v15  ;;  %v9048_v16 = vpack.c.bf16 %v4202_v17, %v4198_v36  ;;  %v9091_v36 = vpack.c.bf16 %v4419_v45, %v4415_v28  ;;  %v4423_v17 = vld [vmem:[#allocation11 + $0xd8] sm:$0xff] }
 0xc9a   :  { %v9095_v60 = vpack.c.bf16 %v4427_v18, %v4423_v17 }
 0xc9c   :  { %6852 = vmatpush1.bf16.msra.mxu0 %v9038_v25  ;;  %6884 = vmatpush1.bf16.msra.mxu1 %v9041_v24 }
 0xc9d   :  { %6886 = vmatprep.subr.bf16.mxu1 %v8844_v61  ;;  %6854 = vmatprep.subr.bf16.mxu0 %v9045_v33 }
 0xca0   :  { %6856 = vmatpush1.bf16.msra.mxu0 %v9048_v16  ;;  %6888 = vmatpush1.bf16.msra.mxu1 %v9051_v31 }
 0xca1   :  { %6858 = vmatprep.subr.bf16.mxu0 %v8853_v43  ;;  %6890 = vmatprep.subr.bf16.mxu1 %v8859_v57 }
 0xca4   :  { %6860 = vmatpush1.bf16.msra.mxu0 %v8861_v50  ;;  %6892 = vmatpush1.bf16.msra.mxu1 %v8864_v49 }
 0xca5   :  { %6894 = vmatprep.subr.bf16.mxu0 %v8986_v38 }
 0xd59   :  { %v4034_v61 = vpop.f32.mrb[20].mxu0  ;;  %v4105_v44 = vpop.f32.mrb[44].mxu1 }
 0xd5a   :  { %v7217_v0 = vadd.f32 %v4034_v61, %v8919_v42  ;;  %v4036_v3 = vpop.f32.mrb[21].mxu0  ;;  %v4107_v8 = vpop.f32.mrb[45].mxu1  ;;  %v7233_v50 = vadd.f32 %v4105_v44, %v8934_v51  ;;  %v4431_v61 = vld [vmem:[#allocation11 + $0x118] sm:$0xff] }
 0xd5b   :  { %v7218_v11 = vadd.f32 %v4036_v3, %v8923_v2  ;;  %v7234_v43 = vadd.f32 %v4107_v8, %v8929_v30  ;;  %v4435_v44 = vld [vmem:[#allocation11 + $0x138] sm:$0xff] }
 0xd5c   :  { %v5796_v26 = vmul.f32 -1.442695, %v7217_v0  ;;  %v9099_v0 = vpack.c.bf16 %v4435_v44, %v4431_v61  ;;  %v4439_v3 = vld [vmem:[#allocation11 + $0x158] sm:$0xff] }
 0xd5d   :  { %v5797_v46 = vmul.f32 -1.442695, %v7218_v11  ;;  %v5798_v57 = vmul.f32 -1.442695, %v7234_v43  ;;  %v4443_v8 = vld [vmem:[#allocation11 + $0x178] sm:$0xff] }
 0xd5e   :  { %7487 = vpow2.f32 %v5796_v26  ;;  %v9103_v11 = vpack.c.bf16 %v4443_v8, %v4439_v3  ;;  %v4447_v26 = vld [vmem:[#allocation11 + $0x198] sm:$0xff] }
 0xd5f   :  { %7489 = vpow2.f32 %v5797_v46  ;;  %v4451_v46 = vld [vmem:[#allocation11 + $0x1b8] sm:$0xff] }
 0xd60   :  { %7491 = vpow2.f32 %v5798_v57  ;;  %v9107_v43 = vpack.c.bf16 %v4451_v46, %v4447_v26  ;;  %v4453_v57 = vld [vmem:[#allocation11 + $0x1c8] sm:$0xff] }
 0xd61   :  { %7493 = vtanh.f32 %v7233_v50  ;;  %v4457_v50 = vld [vmem:[#allocation11 + $0x1e8] sm:$0xff] }
 0xd68   :  { %v7488_v49 = vpop.eup %7487 }
 0xd69   :  { %v7490_v53 = vpop.eup %7489  ;;  %v4117_v58 = vadd.f32 1.0, %v7488_v49  ;;  %v4455_v49 = vld [vmem:[#allocation11 + $0x1d8] sm:$0xff] }
 0xd6a   :  { %v4123_v63 = vadd.f32 1.0, %v7490_v53  ;;  %v7492_v47 = vpop.eup %7491  ;;  %v9111_v53 = vpack.c.bf16 %v4457_v50, %v4453_v57 }
 0xd6b   :  { %7495 = vrcp.f32 %v4117_v58  ;;  %v7494_v37 = vpop.eup %7493  ;;  %v4130_v54 = vadd.f32 1.0, %v7492_v47  ;;  %v4459_v58 = vld [vmem:[#allocation11 + $0x1f8] sm:$0xff]  ;;  %v4456_v47 = vld [vmem:[#allocation11 + $0x1e0] sm:$0xff] }
 0xd6c   :  { %7497 = vrcp.f32 %v4123_v63  ;;  %v4452_v63 = vld [vmem:[#allocation11 + $0x1c0] sm:$0xff] }
 0xd6d   :  { %7499 = vrcp.f32 %v4130_v54 }
 0xd75   :  { %v7496_v9 = vpop.eup %7495 }
 0xd76   :  { %v7498_v5 = vpop.eup %7497  ;;  %v4134_v14 = vmul.f32 %v7496_v9, %v7494_v37  ;;  %v9113_v37 = vpack.c.bf16 %v4459_v58, %v4455_v49  ;;  %v9115_v9 = vpack.c.bf16 %v4456_v47, %v4452_v63 }
 0xd77   :  { %v4133_v10 = vmul.f32 %v7498_v5, %v8981_v55  ;;  %v7500_v7 = vpop.eup %7499  ;;  %v4399_v55 = vld [vmem:[#allocation11 + $0x18] sm:$0xff]  ;;  %v4454_v5 = vld [vmem:[#allocation11 + $0x1d0] sm:$0xff] }
 0xd78   :  { %v9083_v62 = vpack.c.bf16 %v4403_v22, %v4399_v55 }
 0xd79   :  { %v9065_v56 = vadd.f32 %v4134_v14, %v4133_v10  ;;  %v4458_v14 = vld [vmem:[#allocation11 + $0x1f0] sm:$0xff] }
 0xd7a   :  { %6926 = vmatprep.subr.bf16.mxu1 %v9083_v62  ;;  %v9118_v54 = vpack.c.bf16 %v4458_v14, %v4454_v5 }
 0xd7b   :  { %7501 = vtanh.f32 %v9065_v56 }
 0xd85   :  { %v7502_v32 = vpop.eup %7501 }
 0xd86   :  { %v4137_v13 = vmul.f32 %v7502_v32, %v7500_v7 }
 0xd88   :  { %4138 = vst [vmem:[#allocation13 + $0x2] ss:$39 sps:$4 sm:$0x21] %v4137_v13   ;;  %4139 = vst [vmem:[#allocation13 + $0x9] ss:$25 sps:$4 sm:$0x12] %v4137_v13   ;;  %4279 = vmatmul.mubr.f32.vlgmr.msra.gmra.mrb[22].mxu0 %v4137_v13  ;;  %4350 = vmatmul.mubr.f32.vlgmr.msra.gmra.mrb[46].mxu1 %v4137_v13 }
 0xd89   :  { %4140 = vst [vmem:[#allocation13 + $0x10] ss:$39 sps:$4 sm:$0x84] %v4137_v13   ;;  %4141 = vst [vmem:[#allocation13 + $0x17] ss:$25 sps:$4 sm:$0x48] %v4137_v13   ;;  %6896 = vmatpush1.bf16.msra.mxu0 %v8988_v41  ;;  %4524 = vmatprep.mubr.f32.mxu0 %v7802_v1 }
 0xd8a   :  { %6898 = vmatprep.subr.bf16.mxu0 %v8995_v39  ;;  %4595 = vmatprep.mubr.f32.mxu1 %v7802_v1 }
 0xd8b   :  { %6928 = vmatpush1.bf16.msra.mxu1 %v8991_v52 }
 0xd8c   :  { %6930 = vmatprep.subr.bf16.mxu1 %v9087_v19 }
 0xd8d   :  { %6900 = vmatpush1.bf16.msra.mxu0 %v8998_v6 }
 0xd8e   :  { %6902 = vmatprep.subr.bf16.mxu0 %v9005_v59 }
 0xd8f   :  { %6932 = vmatpush1.bf16.msra.mxu1 %v9001_v29 }
 0xd90   :  { %6934 = vmatprep.subr.bf16.mxu1 %v9091_v36 }
 0xd91   :  { %6904 = vmatpush1.bf16.msra.mxu0 %v9008_v27 }
 0xd92   :  { %6906 = vmatprep.subr.bf16.mxu0 %v9015_v20 }
 0xd93   :  { %6936 = vmatpush1.bf16.msra.mxu1 %v9011_v12 }
 0xd94   :  { %6938 = vmatprep.subr.bf16.mxu1 %v9095_v60 }
 0xd95   :  { %6908 = vmatpush1.bf16.msra.mxu0 %v9018_v48 }
 0xd96   :  { %6910 = vmatprep.subr.bf16.mxu0 %v9025_v21 }
 0xd97   :  { %6940 = vmatpush1.bf16.msra.mxu1 %v9021_v34 }
 0xd98   :  { %6942 = vmatprep.subr.bf16.mxu1 %v9099_v0 }
 0xd99   :  { %6912 = vmatpush1.bf16.msra.mxu0 %v9028_v35 }
 0xd9a   :  { %6914 = vmatprep.subr.bf16.mxu0 %v9035_v15 }
 0xd9b   :  { %6944 = vmatpush1.bf16.msra.mxu1 %v9031_v4 }
 0xd9c   :  { %6946 = vmatprep.subr.bf16.mxu1 %v9103_v11 }
 0xd9d   :  { %6916 = vmatpush1.bf16.msra.mxu0 %v9038_v25 }
 0xd9e   :  { %6918 = vmatprep.subr.bf16.mxu0 %v9045_v33 }
 0xd9f   :  { %6948 = vmatpush1.bf16.msra.mxu1 %v9041_v24 }
 0xda0   :  { %6950 = vmatprep.subr.bf16.mxu1 %v9107_v43 }
 0xda1   :  { %6920 = vmatpush1.bf16.msra.mxu0 %v9048_v16 }
 0xda2   :  { %6922 = vmatprep.subr.bf16.mxu0 %v9111_v53 }
 0xda3   :  { %6952 = vmatpush1.bf16.msra.mxu1 %v9051_v31 }
 0xda4   :  { %6954 = vmatprep.subr.bf16.mxu1 %v9113_v37 }
 0xda5   :  { %6924 = vmatpush1.bf16.msra.mxu0 %v9115_v9 }
 0xda6   :  { %6958 = vmatprep.subr.bf16.mxu0 %v8986_v38 }
 0xda7   :  { %6956 = vmatpush1.bf16.msra.mxu1 %v9118_v54 }
 0xda8   :  { %6990 = vmatprep.subr.bf16.mxu1 %v9083_v62 }
 0xe5b   :  { %v4280_v10 = vpop.f32.mrb[22].mxu0  ;;  %v4351_v7 = vpop.f32.mrb[46].mxu1 }
 0xe5c   :  { %v7219_v32 = vadd.f32 %v4280_v10, %v8919_v42  ;;  %v4282_v13 = vpop.f32.mrb[23].mxu0  ;;  %v4353_v55 = vpop.f32.mrb[47].mxu1  ;;  %v7235_v17 = vadd.f32 %v4351_v7, %v8934_v51 }
 0xe5d   :  { %v7220_v22 = vadd.f32 %v4282_v13, %v8923_v2  ;;  %v7236_v28 = vadd.f32 %v4353_v55, %v8929_v30 }
 0xe5e   :  { %v5799_v23 = vmul.f32 -1.442695, %v7219_v32 }
 0xe5f   :  { %v5800_v40 = vmul.f32 -1.442695, %v7220_v22  ;;  %v5801_v45 = vmul.f32 -1.442695, %v7236_v28 }
 0xe60   :  { %7503 = vpow2.f32 %v5799_v23 }
 0xe61   :  { %7505 = vpow2.f32 %v5800_v40 }
 0xe62   :  { %7507 = vpow2.f32 %v5801_v45 }
 0xe63   :  { %7509 = vtanh.f32 %v7235_v17 }
 0xe6a   :  { %v7504_v18 = vpop.eup %7503 }
 0xe6b   :  { %v7506_v61 = vpop.eup %7505  ;;  %v4363_v44 = vadd.f32 1.0, %v7504_v18 }
 0xe6c   :  { %v4369_v3 = vadd.f32 1.0, %v7506_v61  ;;  %v7508_v8 = vpop.eup %7507 }
 0xe6d   :  { %7511 = vrcp.f32 %v4363_v44  ;;  %v7510_v26 = vpop.eup %7509  ;;  %v4376_v49 = vadd.f32 1.0, %v7508_v8 }
 0xe6e   :  { %7513 = vrcp.f32 %v4369_v3 }
 0xe6f   :  { %7515 = vrcp.f32 %v4376_v49 }
 0xe77   :  { %v7512_v46 = vpop.eup %7511 }
 0xe78   :  { %v7514_v57 = vpop.eup %7513  ;;  %v4380_v50 = vmul.f32 %v7512_v46, %v7510_v26 }
 0xe79   :  { %v4379_v58 = vmul.f32 %v7514_v57, %v9065_v56  ;;  %v7516_v47 = vpop.eup %7515 }
 0xe7b   :  { %v9130_v63 = vadd.f32 %v4380_v50, %v4379_v58 }
 0xe7d   :  { %7517 = vtanh.f32 %v9130_v63 }
 0xe87   :  { %v7518_v5 = vpop.eup %7517 }
 0xe88   :  { %v4383_v14 = vmul.f32 %v7518_v5, %v7516_v47 }
 0xe8a   :  { %4384 = vst [vmem:[#allocation13 + $0x3] ss:$39 sps:$4 sm:$0x21] %v4383_v14   ;;  %4385 = vst [vmem:[#allocation13 + $0xa] ss:$25 sps:$4 sm:$0x12] %v4383_v14   ;;  %4525 = vmatmul.mubr.f32.vlgmr.msra.gmra.mrb[24].mxu0 %v4383_v14  ;;  %4596 = vmatmul.mubr.f32.vlgmr.msra.gmra.mrb[48].mxu1 %v4383_v14 }
 0xe8b   :  { %4386 = vst [vmem:[#allocation13 + $0x11] ss:$39 sps:$4 sm:$0x84] %v4383_v14   ;;  %4387 = vst [vmem:[#allocation13 + $0x18] ss:$25 sps:$4 sm:$0x48] %v4383_v14   ;;  %6960 = vmatpush1.bf16.msra.mxu0 %v8988_v41  ;;  %6992 = vmatpush1.bf16.msra.mxu1 %v8991_v52 }
 0xe8c   :  { %6962 = vmatprep.subr.bf16.mxu0 %v8995_v39  ;;  %6994 = vmatprep.subr.bf16.mxu1 %v9087_v19 }
 0xe8d   :  { %4770 = vmatprep.mubr.f32.mxu0 %v7802_v1  ;;  %4841 = vmatprep.mubr.f32.mxu1 %v7802_v1 }
 0xe8f   :  { %6964 = vmatpush1.bf16.msra.mxu0 %v8998_v6  ;;  %6996 = vmatpush1.bf16.msra.mxu1 %v9001_v29 }
 0xe90   :  { %6966 = vmatprep.subr.bf16.mxu0 %v9005_v59  ;;  %6998 = vmatprep.subr.bf16.mxu1 %v9091_v36 }
 0xe93   :  { %6968 = vmatpush1.bf16.msra.mxu0 %v9008_v27  ;;  %7000 = vmatpush1.bf16.msra.mxu1 %v9011_v12 }
 0xe94   :  { %6970 = vmatprep.subr.bf16.mxu0 %v9015_v20  ;;  %7002 = vmatprep.subr.bf16.mxu1 %v9095_v60 }
 0xe97   :  { %6972 = vmatpush1.bf16.msra.mxu0 %v9018_v48  ;;  %7004 = vmatpush1.bf16.msra.mxu1 %v9021_v34 }
 0xe98   :  { %6974 = vmatprep.subr.bf16.mxu0 %v9025_v21  ;;  %7006 = vmatprep.subr.bf16.mxu1 %v9099_v0 }
 0xe9b   :  { %6976 = vmatpush1.bf16.msra.mxu0 %v9028_v35  ;;  %7008 = vmatpush1.bf16.msra.mxu1 %v9031_v4 }
 0xe9c   :  { %6978 = vmatprep.subr.bf16.mxu0 %v9035_v15  ;;  %7010 = vmatprep.subr.bf16.mxu1 %v9103_v11 }
 0xe9f   :  { %6980 = vmatpush1.bf16.msra.mxu0 %v9038_v25  ;;  %7012 = vmatpush1.bf16.msra.mxu1 %v9041_v24 }
 0xea0   :  { %6982 = vmatprep.subr.bf16.mxu0 %v9045_v33  ;;  %7014 = vmatprep.subr.bf16.mxu1 %v9107_v43 }
 0xea3   :  { %6984 = vmatpush1.bf16.msra.mxu0 %v9048_v16  ;;  %7016 = vmatpush1.bf16.msra.mxu1 %v9051_v31 }
 0xea4   :  { %6986 = vmatprep.subr.bf16.mxu0 %v9111_v53  ;;  %7018 = vmatprep.subr.bf16.mxu1 %v9113_v37 }
 0xea7   :  { %6988 = vmatpush1.bf16.msra.mxu0 %v9115_v9  ;;  %7020 = vmatpush1.bf16.msra.mxu1 %v9118_v54 }
 0xea8   :  { %7022 = vmatprep.subr.bf16.mxu0 %v8986_v38  ;;  %7054 = vmatprep.subr.bf16.mxu1 %v9083_v62 }
 0xf5d   :  { %v4526_v56 = vpop.f32.mrb[24].mxu0  ;;  %v4597_v10 = vpop.f32.mrb[48].mxu1 }
 0xf5e   :  { %v7221_v7 = vadd.f32 %v4526_v56, %v8919_v42  ;;  %v4528_v32 = vpop.f32.mrb[25].mxu0  ;;  %v4599_v13 = vpop.f32.mrb[49].mxu1  ;;  %v7237_v45 = vadd.f32 %v4597_v10, %v8934_v51 }
 0xf5f   :  { %v7222_v55 = vadd.f32 %v4528_v32, %v8923_v2  ;;  %v7238_v40 = vadd.f32 %v4599_v13, %v8929_v30  ;;  %v5135_v32 = vld [vmem:[#allocation11 + $0x8] sm:$0xff] }
 0xf60   :  { %v5802_v22 = vmul.f32 -1.442695, %v7221_v7  ;;  %v5139_v13 = vld [vmem:[#allocation11 + $0x28] sm:$0xff] }
 0xf61   :  { %v5803_v23 = vmul.f32 -1.442695, %v7222_v55  ;;  %v5804_v28 = vmul.f32 -1.442695, %v7238_v40  ;;  %v7085_v55 = vpack.c.bf16 %v5139_v13, %v5135_v32  ;;  %v5136_v40 = vld [vmem:[#allocation11 + $0x10] sm:$0xff] }
 0xf62   :  { %7519 = vpow2.f32 %v5802_v22  ;;  %v5134_v22 = vld [vmem:[#allocation11] sm:$0xff]  ;;  %v5180_v32 = vld [vmem:[#allocation11 + $0x170] sm:$0xff] }
 0xf63   :  { %7521 = vpow2.f32 %v5803_v23  ;;  %v5138_v23 = vld [vmem:[#allocation11 + $0x20] sm:$0xff] }
 0xf64   :  { %7523 = vpow2.f32 %v5804_v28  ;;  %v7087_v28 = vpack.c.bf16 %v5138_v23, %v5134_v22  ;;  %v5182_v23 = vld [vmem:[#allocation11 + $0x180] sm:$0xff] }
 0xf65   :  { %7525 = vtanh.f32 %v7237_v45  ;;  %v5140_v45 = vld [vmem:[#allocation11 + $0x30] sm:$0xff] }
 0xf6c   :  { %v7520_v38 = vpop.eup %7519 }
 0xf6d   :  { %v7522_v17 = vpop.eup %7521  ;;  %v4609_v18 = vadd.f32 1.0, %v7520_v38  ;;  %v7119_v38 = vpack.c.bf16 %v5140_v45, %v5136_v40  ;;  %v5186_v40 = vld [vmem:[#allocation11 + $0x1a0] sm:$0xff] }
 0xf6e   :  { %v4615_v61 = vadd.f32 1.0, %v7522_v17  ;;  %v7524_v44 = vpop.eup %7523  ;;  %v5143_v17 = vld [vmem:[#allocation11 + $0x48] sm:$0xff]  ;;  %v7111_v45 = vpack.c.bf16 %v5186_v40, %v5182_v23 }
 0xf6f   :  { %7527 = vrcp.f32 %v4609_v18  ;;  %v7526_v3 = vpop.eup %7525  ;;  %v4622_v57 = vadd.f32 1.0, %v7524_v44  ;;  %v5147_v18 = vld [vmem:[#allocation11 + $0x68] sm:$0xff]  ;;  %v5142_v44 = vld [vmem:[#allocation11 + $0x40] sm:$0xff] }
 0xf70   :  { %7529 = vrcp.f32 %v4615_v61  ;;  %v7089_v61 = vpack.c.bf16 %v5147_v18, %v5143_v17 }
 0xf71   :  { %7531 = vrcp.f32 %v4622_v57  ;;  %v5151_v57 = vld [vmem:[#allocation11 + $0x88] sm:$0xff] }
 0xf79   :  { %v7528_v8 = vpop.eup %7527 }
 0xf7a   :  { %v7530_v26 = vpop.eup %7529  ;;  %v4626_v46 = vmul.f32 %v7528_v8, %v7526_v3  ;;  %v5146_v3 = vld [vmem:[#allocation11 + $0x60] sm:$0xff]  ;;  %v5144_v8 = vld [vmem:[#allocation11 + $0x50] sm:$0xff] }
 0xf7b   :  { %v4625_v50 = vmul.f32 %v7530_v26, %v9130_v63  ;;  %v7532_v58 = vpop.eup %7531  ;;  %v5148_v26 = vld [vmem:[#allocation11 + $0x70] sm:$0xff] }
 0xf7d   :  { %v9172_v49 = vadd.f32 %v4626_v46, %v4625_v50  ;;  %v7123_v46 = vpack.c.bf16 %v5148_v26, %v5144_v8  ;;  %v5155_v50 = vld [vmem:[#allocation11 + $0xa8] sm:$0xff] }
 0xf7f   :  { %7533 = vtanh.f32 %v9172_v49 }
 0xf89   :  { %v7534_v47 = vpop.eup %7533 }
 0xf8a   :  { %v4629_v5 = vmul.f32 %v7534_v47, %v7532_v58  ;;  %v5150_v58 = vld [vmem:[#allocation11 + $0x80] sm:$0xff] }
 0xf8b   :  { %v5154_v47 = vld [vmem:[#allocation11 + $0xa0] sm:$0xff] }
 0xf8c   :  { %4630 = vst [vmem:[#allocation13 + $0x4] ss:$39 sps:$4 sm:$0x21] %v4629_v5   ;;  %4631 = vst [vmem:[#allocation13 + $0xb] ss:$25 sps:$4 sm:$0x12] %v4629_v5   ;;  %4771 = vmatmul.mubr.f32.vlgmr.msra.gmra.mrb[26].mxu0 %v4629_v5  ;;  %4842 = vmatmul.mubr.f32.vlgmr.msra.gmra.mrb[50].mxu1 %v4629_v5 }
 0xf8d   :  { %4632 = vst [vmem:[#allocation13 + $0x12] ss:$39 sps:$4 sm:$0x84] %v4629_v5   ;;  %4633 = vst [vmem:[#allocation13 + $0x19] ss:$25 sps:$4 sm:$0x48] %v4629_v5   ;;  %7024 = vmatpush1.bf16.msra.mxu0 %v8988_v41  ;;  %7056 = vmatpush1.bf16.msra.mxu1 %v8991_v52 }
 0xf8e   :  { %7026 = vmatprep.subr.bf16.mxu0 %v8995_v39  ;;  %7058 = vmatprep.subr.bf16.mxu1 %v9087_v19  ;;  %v5152_v5 = vld [vmem:[#allocation11 + $0x90] sm:$0xff] }
 0xf8f   :  { %5016 = vmatprep.mubr.f32.mxu0 %v7802_v1  ;;  %5087 = vmatprep.mubr.f32.mxu1 %v7802_v1 }
 0xf91   :  { %7028 = vmatpush1.bf16.msra.mxu0 %v8998_v6  ;;  %7060 = vmatpush1.bf16.msra.mxu1 %v9001_v29 }
 0xf92   :  { %7030 = vmatprep.subr.bf16.mxu0 %v9005_v59  ;;  %7062 = vmatprep.subr.bf16.mxu1 %v9091_v36 }
 0xf95   :  { %7032 = vmatpush1.bf16.msra.mxu0 %v9008_v27  ;;  %7064 = vmatpush1.bf16.msra.mxu1 %v9011_v12 }
 0xf96   :  { %7034 = vmatprep.subr.bf16.mxu0 %v9015_v20  ;;  %7066 = vmatprep.subr.bf16.mxu1 %v9095_v60 }
 0xf99   :  { %7036 = vmatpush1.bf16.msra.mxu0 %v9018_v48  ;;  %7068 = vmatpush1.bf16.msra.mxu1 %v9021_v34 }
 0xf9a   :  { %7038 = vmatprep.subr.bf16.mxu0 %v9025_v21  ;;  %7070 = vmatprep.subr.bf16.mxu1 %v9099_v0 }
 0xf9d   :  { %7040 = vmatpush1.bf16.msra.mxu0 %v9028_v35  ;;  %7072 = vmatpush1.bf16.msra.mxu1 %v9031_v4 }
 0xf9e   :  { %7042 = vmatprep.subr.bf16.mxu0 %v9035_v15  ;;  %7074 = vmatprep.subr.bf16.mxu1 %v9103_v11 }
 0xfa1   :  { %7044 = vmatpush1.bf16.msra.mxu0 %v9038_v25  ;;  %7076 = vmatpush1.bf16.msra.mxu1 %v9041_v24 }
 0xfa2   :  { %7046 = vmatprep.subr.bf16.mxu0 %v9045_v33  ;;  %7078 = vmatprep.subr.bf16.mxu1 %v9107_v43 }
 0xfa5   :  { %7048 = vmatpush1.bf16.msra.mxu0 %v9048_v16  ;;  %7080 = vmatpush1.bf16.msra.mxu1 %v9051_v31 }
 0xfa6   :  { %7050 = vmatprep.subr.bf16.mxu0 %v9111_v53  ;;  %7082 = vmatprep.subr.bf16.mxu1 %v9113_v37 }
 0xfa9   :  { %7052 = vmatpush1.bf16.msra.mxu0 %v9115_v9  ;;  %7084 = vmatpush1.bf16.msra.mxu1 %v9118_v54 }
 0xfaa   :  { %7118 = vmatprep.subr.bf16.mxu1 %v9083_v62  ;;  %7086 = vmatprep.subr.bf16.mxu0 %v7085_v55  ;;  %v5187_v55 = vld [vmem:[#allocation11 + $0x1a8] sm:$0xff] }
0x105f   :  { %v4772_v41 = vpop.f32.mrb[26].mxu0  ;;  %v4843_v52 = vpop.f32.mrb[50].mxu1 }
0x1060   :  { %v7223_v39 = vadd.f32 %v4772_v41, %v8919_v42  ;;  %v4774_v6 = vpop.f32.mrb[27].mxu0  ;;  %v4845_v29 = vpop.f32.mrb[51].mxu1  ;;  %v7239_v34 = vadd.f32 %v4843_v52, %v8934_v51  ;;  %v7095_v41 = vpack.c.bf16 %v5154_v47, %v5150_v58  ;;  %v5156_v52 = vld [vmem:[#allocation11 + $0xb0] sm:$0xff] }
0x1061   :  { %v7224_v59 = vadd.f32 %v4774_v6, %v8923_v2  ;;  %v7240_v20 = vadd.f32 %v4845_v29, %v8929_v30  ;;  %v5163_v6 = vld [vmem:[#allocation11 + $0xe8] sm:$0xff] }
0x1062   :  { %v5805_v27 = vmul.f32 -1.442695, %v7223_v39  ;;  %v7127_v39 = vpack.c.bf16 %v5156_v52, %v5152_v5 }
0x1063   :  { %v5806_v12 = vmul.f32 -1.442695, %v7224_v59  ;;  %v5807_v48 = vmul.f32 -1.442695, %v7240_v20  ;;  %v5158_v59 = vld [vmem:[#allocation11 + $0xc0] sm:$0xff] }
0x1064   :  { %7535 = vpow2.f32 %v5805_v27  ;;  %v5162_v27 = vld [vmem:[#allocation11 + $0xe0] sm:$0xff] }
0x1065   :  { %7537 = vpow2.f32 %v5806_v12  ;;  %v5160_v12 = vld [vmem:[#allocation11 + $0xd0] sm:$0xff]  ;;  %v7099_v20 = vpack.c.bf16 %v5162_v27, %v5158_v59  ;;  %v5388_v59 = vld [vmem:[%s9525_s12] sm:$0xff] }
0x1066   :  { %7539 = vpow2.f32 %v5807_v48  ;;  %v5164_v48 = vld [vmem:[#allocation11 + $0xf0] sm:$0xff] }
0x1067   :  { %7541 = vtanh.f32 %v7239_v34  ;;  %v7131_v34 = vpack.c.bf16 %v5164_v48, %v5160_v12  ;;  %v5390_v12 = vld [vmem:[%s9525_s12 + $0x10] sm:$0xff] }
0x106e   :  { %v7536_v21 = vpop.eup %7535 }
0x106f   :  { %v7538_v35 = vpop.eup %7537  ;;  %v4855_v4 = vadd.f32 1.0, %v7536_v21  ;;  %v5171_v21 = vld [vmem:[#allocation11 + $0x128] sm:$0xff] }
0x1070   :  { %v4861_v15 = vadd.f32 1.0, %v7538_v35  ;;  %v7540_v25 = vpop.eup %7539 }
0x1071   :  { %7543 = vrcp.f32 %v4855_v4  ;;  %v7542_v24 = vpop.eup %7541  ;;  %v4868_v62 = vadd.f32 1.0, %v7540_v25  ;;  %v5166_v4 = vld [vmem:[#allocation11 + $0x100] sm:$0xff]  ;;  %v5168_v25 = vld [vmem:[#allocation11 + $0x110] sm:$0xff] }
0x1072   :  { %7545 = vrcp.f32 %v4861_v15  ;;  %v5170_v15 = vld [vmem:[#allocation11 + $0x120] sm:$0xff] }
0x1073   :  { %7547 = vrcp.f32 %v4868_v62 }
0x107b   :  { %v7544_v33 = vpop.eup %7543 }
0x107c   :  { %v7546_v16 = vpop.eup %7545  ;;  %v4872_v31 = vmul.f32 %v7544_v33, %v7542_v24  ;;  %v7103_v24 = vpack.c.bf16 %v5170_v15, %v5166_v4  ;;  %v5172_v33 = vld [vmem:[#allocation11 + $0x130] sm:$0xff]  ;;  %v5395_v4 = vld [vmem:[%s9525_s12 + $0x38] sm:$0xff] }
0x107d   :  { %v4871_v63 = vmul.f32 %v7546_v16, %v9172_v49  ;;  %v7548_v56 = vpop.eup %7547  ;;  %v7093_v49 = vpack.c.bf16 %v5155_v50, %v5151_v57  ;;  %v7135_v16 = vpack.c.bf16 %v5172_v33, %v5168_v25  ;;  %v5396_v25 = vld [vmem:[%s9525_s12 + $0x40] sm:$0xff] }
0x107f   :  { %v9213_v14 = vadd.f32 %v4872_v31, %v4871_v63  ;;  %v5179_v31 = vld [vmem:[#allocation11 + $0x168] sm:$0xff]  ;;  %v5174_v63 = vld [vmem:[#allocation11 + $0x140] sm:$0xff] }
0x1081   :  { %7549 = vtanh.f32 %v9213_v14 }
0x108b   :  { %v7550_v10 = vpop.eup %7549 }
0x108c   :  { %v4875_v7 = vmul.f32 %v7550_v10, %v7548_v56  ;;  %v5178_v56 = vld [vmem:[#allocation11 + $0x160] sm:$0xff]  ;;  %v5176_v10 = vld [vmem:[#allocation11 + $0x150] sm:$0xff] }
0x108d   :  { %v7139_v13 = vpack.c.bf16 %v5180_v32, %v5176_v10  ;;  %v5402_v10 = vld [vmem:[%s9525_s12 + $0x70] sm:$0xff] }
0x108e   :  { %4876 = vst [vmem:[#allocation13 + $0x5] ss:$39 sps:$4 sm:$0x21] %v4875_v7   ;;  %4877 = vst [vmem:[#allocation13 + $0xc] ss:$25 sps:$4 sm:$0x12] %v4875_v7   ;;  %5017 = vmatmul.mubr.f32.vlgmr.msra.gmra.mrb[28].mxu0 %v4875_v7  ;;  %5088 = vmatmul.mubr.f32.vlgmr.msra.gmra.mrb[52].mxu1 %v4875_v7 }
0x108f   :  { %4878 = vst [vmem:[#allocation13 + $0x13] ss:$39 sps:$4 sm:$0x84] %v4875_v7   ;;  %4879 = vst [vmem:[#allocation13 + $0x1a] ss:$25 sps:$4 sm:$0x48] %v4875_v7   ;;  %5262 = vmatprep.mubr.f32.mxu0 %v7802_v1  ;;  %5333 = vmatprep.mubr.f32.mxu1 %v7802_v1  ;;  %v7091_v1 = vpack.c.bf16 %v5146_v3, %v5142_v44  ;;  %v7107_v7 = vpack.c.bf16 %v5178_v56, %v5174_v63 }
0x1090   :  { %7088 = vmatpush1.bf16.msra.mxu0 %v7087_v28  ;;  %7120 = vmatpush1.bf16.msra.mxu1 %v7119_v38  ;;  %v5184_v28 = vld [vmem:[#allocation11 + $0x190] sm:$0xff]  ;;  %v5401_v63 = vld [vmem:[%s9525_s12 + $0x68] sm:$0xff] }
0x1091   :  { %7122 = vmatprep.subr.bf16.mxu1 %v9087_v19  ;;  %7090 = vmatprep.subr.bf16.mxu0 %v7089_v61  ;;  %v5159_v19 = vld [vmem:[#allocation11 + $0xc8] sm:$0xff]  ;;  %v5188_v38 = vld [vmem:[#allocation11 + $0x1b0] sm:$0xff] }
0x1092   :  { %v7097_v29 = vpack.c.bf16 %v5163_v6, %v5159_v19  ;;  %v7143_v17 = vpack.c.bf16 %v5188_v38, %v5184_v28 }
0x1094   :  { %7092 = vmatpush1.bf16.msra.mxu0 %v7091_v1  ;;  %7124 = vmatpush1.bf16.msra.mxu1 %v7123_v46 }
0x1095   :  { %7126 = vmatprep.subr.bf16.mxu1 %v9091_v36  ;;  %7094 = vmatprep.subr.bf16.mxu0 %v7093_v49  ;;  %v5167_v36 = vld [vmem:[#allocation11 + $0x108] sm:$0xff] }
0x1096   :  { %v7101_v35 = vpack.c.bf16 %v5171_v21, %v5167_v36  ;;  %v5393_v36 = vld [vmem:[%s9525_s12 + $0x28] sm:$0xff] }
0x1098   :  { %7096 = vmatpush1.bf16.msra.mxu0 %v7095_v41  ;;  %7128 = vmatpush1.bf16.msra.mxu1 %v7127_v39 }
0x1099   :  { %7130 = vmatprep.subr.bf16.mxu1 %v9095_v60  ;;  %7098 = vmatprep.subr.bf16.mxu0 %v7097_v29  ;;  %v5175_v60 = vld [vmem:[#allocation11 + $0x148] sm:$0xff] }
0x109a   :  { %v7105_v62 = vpack.c.bf16 %v5179_v31, %v5175_v60  ;;  %v5399_v60 = vld [vmem:[%s9525_s12 + $0x58] sm:$0xff] }
0x109c   :  { %7100 = vmatpush1.bf16.msra.mxu0 %v7099_v20  ;;  %7132 = vmatpush1.bf16.msra.mxu1 %v7131_v34  ;;  %v5391_v20 = vld [vmem:[%s9525_s12 + $0x18] sm:$0xff]  ;;  %v5392_v34 = vld [vmem:[%s9525_s12 + $0x20] sm:$0xff] }
0x109d   :  { %7134 = vmatprep.subr.bf16.mxu1 %v9099_v0  ;;  %7102 = vmatprep.subr.bf16.mxu0 %v7101_v35  ;;  %v5183_v0 = vld [vmem:[#allocation11 + $0x188] sm:$0xff]  ;;  %v7153_v48 = vpack.c.bf16 %v5391_v20, %v5390_v12  ;;  %v7157_v21 = vpack.c.bf16 %v5393_v36, %v5392_v34  ;;  %v5394_v35 = vld [vmem:[%s9525_s12 + $0x30] sm:$0xff] }
0x109e   :  { %v7109_v22 = vpack.c.bf16 %v5187_v55, %v5183_v0  ;;  %v7161_v15 = vpack.c.bf16 %v5395_v4, %v5394_v35 }
0x10a0   :  { %7104 = vmatpush1.bf16.msra.mxu0 %v7103_v24  ;;  %7136 = vmatpush1.bf16.msra.mxu1 %v7135_v16  ;;  %v5397_v24 = vld [vmem:[%s9525_s12 + $0x48] sm:$0xff]  ;;  %v5398_v16 = vld [vmem:[%s9525_s12 + $0x50] sm:$0xff] }
0x10a1   :  { %7138 = vmatprep.subr.bf16.mxu1 %v9103_v11  ;;  %7106 = vmatprep.subr.bf16.mxu0 %v7105_v62  ;;  %v7165_v33 = vpack.c.bf16 %v5397_v24, %v5396_v25  ;;  %v7169_v31 = vpack.c.bf16 %v5399_v60, %v5398_v16  ;;  %v5400_v62 = vld [vmem:[%s9525_s12 + $0x60] sm:$0xff] }
0x10a2   :  { %v7173_v56 = vpack.c.bf16 %v5401_v63, %v5400_v62 }
0x10a4   :  { %7108 = vmatpush1.bf16.msra.mxu0 %v7107_v7  ;;  %7140 = vmatpush1.bf16.msra.mxu1 %v7139_v13  ;;  %v5403_v7 = vld [vmem:[%s9525_s12 + $0x78] sm:$0xff] }
0x10a5   :  { %7142 = vmatprep.subr.bf16.mxu1 %v9107_v43  ;;  %7110 = vmatprep.subr.bf16.mxu0 %v7109_v22  ;;  %v7177_v32 = vpack.c.bf16 %v5403_v7, %v5402_v10 }
0x10a8   :  { %7112 = vmatpush1.bf16.msra.mxu0 %v7111_v45  ;;  %7144 = vmatpush1.bf16.msra.mxu1 %v7143_v17 }
0x10a9   :  { %7114 = vmatprep.subr.bf16.mxu0 %v9111_v53  ;;  %7146 = vmatprep.subr.bf16.mxu1 %v9113_v37 }
0x10ac   :  { %7116 = vmatpush1.bf16.msra.mxu0 %v9115_v9  ;;  %7148 = vmatpush1.bf16.msra.mxu1 %v9118_v54 }
0x1161   :  { %v5018_v11 = vpop.f32.mrb[28].mxu0  ;;  %v5089_v18 = vpop.f32.mrb[52].mxu1 }
0x1162   :  { %v7225_v61 = vadd.f32 %v5018_v11, %v8919_v42  ;;  %v5020_v44 = vpop.f32.mrb[29].mxu0  ;;  %v5091_v43 = vpop.f32.mrb[53].mxu1  ;;  %v7241_v37 = vadd.f32 %v5089_v18, %v8934_v51 }
0x1163   :  { %v7226_v3 = vadd.f32 %v5020_v44, %v8923_v2  ;;  %v7242_v53 = vadd.f32 %v5091_v43, %v8929_v30 }
0x1164   :  { %v5808_v8 = vmul.f32 -1.442695, %v7225_v61 }
0x1165   :  { %v5809_v1 = vmul.f32 -1.442695, %v7226_v3  ;;  %v5810_v26 = vmul.f32 -1.442695, %v7242_v53 }
0x1166   :  { %7551 = vpow2.f32 %v5808_v8 }
0x1167   :  { %7553 = vpow2.f32 %v5809_v1 }
0x1168   :  { %7555 = vpow2.f32 %v5810_v26 }
0x1169   :  { %7557 = vtanh.f32 %v7241_v37 }
0x1170   :  { %v7552_v9 = vpop.eup %7551 }
0x1171   :  { %v7554_v46 = vpop.eup %7553  ;;  %v5101_v54 = vadd.f32 1.0, %v7552_v9 }
0x1172   :  { %v5107_v57 = vadd.f32 1.0, %v7554_v46  ;;  %v7556_v50 = vpop.eup %7555 }
0x1173   :  { %7559 = vrcp.f32 %v5101_v54  ;;  %v7558_v49 = vpop.eup %7557  ;;  %v5114_v41 = vadd.f32 1.0, %v7556_v50 }
0x1174   :  { %7561 = vrcp.f32 %v5107_v57 }
0x1175   :  { %7563 = vrcp.f32 %v5114_v41  ;;  %v5814_v41 = vld [vmem:[%s9526_s13] ss:$0 sm:$0xff] }
0x117d   :  { %v7560_v58 = vpop.eup %7559 }
0x117e   :  { %v7562_v47 = vpop.eup %7561  ;;  %v5118_v5 = vmul.f32 %v7560_v58, %v7558_v49 }
0x117f   :  { %v5117_v52 = vmul.f32 %v7562_v47, %v9213_v14  ;;  %v7564_v19 = vpop.eup %7563  ;;  %v5389_v14 = vld [vmem:[%s9525_s12 + $0x8] sm:$0xff] }
0x1180   :  { %v7149_v27 = vpack.c.bf16 %v5389_v14, %v5388_v59 }
0x1181   :  { %v9233_v39 = vadd.f32 %v5118_v5, %v5117_v52 }
0x1182   :  { %7150 = vmatprep.subr.bf16.mxu0 %v7149_v27 }
0x1183   :  { %7565 = vtanh.f32 %v9233_v39 }
0x118d   :  { %v7566_v6 = vpop.eup %7565 }
0x118e   :  { %v5121_v29 = vmul.f32 %v7566_v6, %v7564_v19 }
0x1190   :  { %5122 = vst [vmem:[#allocation13 + $0x6] ss:$39 sps:$4 sm:$0x21] %v5121_v29   ;;  %5123 = vst [vmem:[#allocation13 + $0xd] ss:$25 sps:$4 sm:$0x12] %v5121_v29   ;;  %5263 = vmatmul.mubr.f32.vlgmr.msra.gmra.mrb[30].mxu0 %v5121_v29  ;;  %5334 = vmatmul.mubr.f32.vlgmr.msra.gmra.mrb[54].mxu1 %v5121_v29 }
0x1191   :  { %5124 = vst [vmem:[#allocation13 + $0x14] ss:$39 sps:$4 sm:$0x84] %v5121_v29   ;;  %5125 = vst [vmem:[#allocation13 + $0x1b] ss:$25 sps:$4 sm:$0x48] %v5121_v29   ;;  %7152 = vmatpush3.bf16.msra.mxu0 %v7149_v27 }
0x1192   :  { %7154 = vmatprep.subr.bf16.mxu0 %v7153_v48 }
0x1195   :  { %7156 = vmatpush3.bf16.msra.mxu0 %v7153_v48 }
0x1196   :  { %7158 = vmatprep.subr.bf16.mxu0 %v7157_v21 }
0x1199   :  { %7160 = vmatpush3.bf16.msra.mxu0 %v7157_v21 }
0x119a   :  { %7162 = vmatprep.subr.bf16.mxu0 %v7161_v15 }
0x119d   :  { %7164 = vmatpush3.bf16.msra.mxu0 %v7161_v15 }
0x119e   :  { %7166 = vmatprep.subr.bf16.mxu0 %v7165_v33 }
0x11a1   :  { %7168 = vmatpush3.bf16.msra.mxu0 %v7165_v33 }
0x11a2   :  { %7170 = vmatprep.subr.bf16.mxu0 %v7169_v31 }
0x11a5   :  { %7172 = vmatpush3.bf16.msra.mxu0 %v7169_v31 }
0x11a6   :  { %7174 = vmatprep.subr.bf16.mxu0 %v7173_v56 }
0x11a9   :  { %7176 = vmatpush3.bf16.msra.mxu0 %v7173_v56 }
0x11aa   :  { %7178 = vmatprep.subr.bf16.mxu0 %v7177_v32 }
0x11ad   :  { %7180 = vmatpush3.bf16.msra.mxu0 %v7177_v32 }
0x1263   :  { %v5264_v13 = vpop.f32.mrb[30].mxu0  ;;  %v5335_v0 = vpop.f32.mrb[54].mxu1 }
0x1264   :  { %v7227_v55 = vadd.f32 %v5264_v13, %v8919_v42  ;;  %v5266_v22 = vpop.f32.mrb[31].mxu0  ;;  %v5337_v23 = vpop.f32.mrb[55].mxu1  ;;  %v7243_v11 = vadd.f32 %v5335_v0, %v8934_v51 }
0x1265   :  { %v7228_v40 = vadd.f32 %v5266_v22, %v8923_v2  ;;  %v7244_v38 = vadd.f32 %v5337_v23, %v8929_v30 }
0x1266   :  { %v5811_v28 = vmul.f32 -1.442695, %v7227_v55 }
0x1267   :  { %v5812_v45 = vmul.f32 -1.442695, %v7228_v40  ;;  %v5813_v17 = vmul.f32 -1.442695, %v7244_v38 }
0x1268   :  { %7567 = vpow2.f32 %v5811_v28 }
0x1269   :  { %7569 = vpow2.f32 %v5812_v45 }
0x126a   :  { %7571 = vpow2.f32 %v5813_v17 }
0x126b   :  { %7573 = vtanh.f32 %v7243_v11 }
0x1272   :  { %v7568_v18 = vpop.eup %7567 }
0x1273   :  { %v7570_v61 = vpop.eup %7569  ;;  %v5347_v44 = vadd.f32 1.0, %v7568_v18 }
0x1274   :  { %v5353_v43 = vadd.f32 1.0, %v7570_v61  ;;  %v7572_v42 = vpop.eup %7571 }
0x1275   :  { %7575 = vrcp.f32 %v5347_v44  ;;  %v7574_v3 = vpop.eup %7573  ;;  %v5360_v53 = vadd.f32 1.0, %v7572_v42 }
0x1276   :  { %7577 = vrcp.f32 %v5353_v43 }
0x1277   :  { %7579 = vrcp.f32 %v5360_v53 }
0x127f   :  { %v7576_v2 = vpop.eup %7575 }
0x1280   :  { %v7578_v8 = vpop.eup %7577  ;;  %v5364_v1 = vmul.f32 %v7576_v2, %v7574_v3 }
0x1281   :  { %v5363_v26 = vmul.f32 %v7578_v8, %v9233_v39  ;;  %v7580_v51 = vpop.eup %7579 }
0x1283   :  { %v5365_v30 = vadd.f32 %v5364_v1, %v5363_v26 }
0x1285   :  { %7581 = vtanh.f32 %v5365_v30  ;;  %5379 = vst [vmem:[#allocation16 + $0x8] sm:$0xff] %v5365_v30 }
0x128f   :  { %v7582_v37 = vpop.eup %7581 }
0x1290   :  { %v5367_v9 = vmul.f32 %v7582_v37, %v7580_v51 }
0x1292   :  { %5368 = vst [vmem:[#allocation13 + $0x7] ss:$39 sps:$4 sm:$0x21] %v5367_v9   ;;  %5369 = vst [vmem:[#allocation13 + $0xe] ss:$25 sps:$4 sm:$0x12] %v5367_v9  }
0x1293   :  { %5370 = vst [vmem:[#allocation13 + $0x15] ss:$39 sps:$4 sm:$0x84] %v5367_v9   ;;  %5371 = vst [vmem:[#allocation13 + $0x1c] ss:$25 sps:$4 sm:$0x48] %v5367_v9  }
0x1294   :  { %5377 = vst [vmem:[#allocation14 + $0x8] sm:$0xff] %v5367_v9 }
0x1299   :  { %v5380_v46 = vld [vmem:[#allocation13] sm:$0xff]  ;;  %v5381_v54 = vld [vmem:[#allocation13 + $0x8] sm:$0xff] }
0x129a   :  { %5961 = vmatprep.mubr.f32.mxu0 %v5380_v46  ;;  %v5382_v57 = vld [vmem:[#allocation13 + $0x10] sm:$0xff]  ;;  %v5383_v50 = vld [vmem:[#allocation13 + $0x18] sm:$0xff]  ;;  %v5384_v49 = vld [vmem:[#allocation13 + $0x20] sm:$0xff] }
0x129b   :  { %5962 = vmatmul.mubr.f32.vlgmr.msra.gmra.mrb[32].mxu0 %v5381_v54  ;;  %v5385_v58 = vld [vmem:[#allocation13 + $0x28] sm:$0xff]  ;;  %v5386_v47 = vld [vmem:[#allocation13 + $0x30] sm:$0xff]  ;;  %v5387_v5 = vld [vmem:[#allocation13 + $0x38] sm:$0xff] }
0x129c   :  { %5964 = vmatprep.mubr.f32.mxu0 %v5382_v57 }
0x129f   :  { %5965 = vmatmul.mubr.f32.gmra.mrb[34].mxu0 %v5383_v50 }
0x12a0   :  { %5967 = vmatprep.mubr.f32.mxu0 %v5384_v49 }
0x12a3   :  { %5968 = vmatmul.mubr.f32.gmra.mrb[36].mxu0 %v5385_v58 }
0x12a4   :  { %5970 = vmatprep.mubr.f32.mxu0 %v5386_v47 }
0x12a7   :  { %5971 = vmatmul.mubr.f32.gmra.mrb[38].mxu0 %v5387_v5 }
0x136e   :  { %v5963_v52 = vpop.f32.mrb[32].mxu0 }
0x136f   :  { %v5483_v39 = vadd.f32 %v5963_v52, %v5814_v41  ;;  %v5477_v19 = vpop.f32.mrb[33].mxu0 }
0x1370   :  { %v5478_v6 = vadd.f32 %v5814_v41, %v5477_v19 }
0x1371   :  { %5589 = vst.msk [vmem:[%s9530_s17 + $0x8] sm:$0xff] %vm180_vm3, %v5483_v39  ;;  %v5519_v29 = vsel %vm180_vm3, %v5483_v39, -inf }
0x1372   :  { %5588 = vst.msk [vmem:[%s9530_s17] sm:$0xff] %vm180_vm3, %v5478_v6  ;;  %5520 = vmax.xlane.f32.xlu1 %v5519_v29  ;;  %v5966_v59 = vpop.f32.mrb[34].mxu0  ;;  %v5516_v14 = vsel %vm180_vm3, %v5478_v6, -inf }
0x1373   :  { %v5493_v27 = vadd.f32 %v5966_v59, %v5814_v41  ;;  %v5487_v12 = vpop.f32.mrb[35].mxu0  ;;  %5517 = vmax.xlane.f32.xlu0 %v5516_v14 }
0x1374   :  { %v5488_v20 = vadd.f32 %v5814_v41, %v5487_v12 }
0x1375   :  { %5591 = vst.msk [vmem:[%s9530_s17 + $0x18] sm:$0xff] %vm180_vm3, %v5493_v27  ;;  %v5525_v48 = vsel %vm180_vm3, %v5493_v27, -inf }
0x1376   :  { %5590 = vst.msk [vmem:[%s9530_s17 + $0x10] sm:$0xff] %vm180_vm3, %v5488_v20  ;;  %v5969_v34 = vpop.f32.mrb[36].mxu0  ;;  %v5522_v25 = vsel %vm180_vm3, %v5488_v20, -inf }
0x1377   :  { %v5503_v36 = vadd.f32 %v5969_v34, %v5814_v41  ;;  %v5497_v21 = vpop.f32.mrb[37].mxu0  ;;  %5526 = vmax.xlane.f32.xlu0 %v5525_v48 }
0x1378   :  { %v5498_v35 = vadd.f32 %v5814_v41, %v5497_v21 }
0x1379   :  { %5593 = vst.msk [vmem:[%s9530_s17 + $0x28] sm:$0xff] %vm180_vm3, %v5503_v36  ;;  %v5531_v31 = vsel %vm180_vm3, %v5503_v36, -inf }
0x137a   :  { %5592 = vst.msk [vmem:[%s9530_s17 + $0x20] sm:$0xff] %vm180_vm3, %v5498_v35  ;;  %v5972_v4 = vpop.f32.mrb[38].mxu0  ;;  %v5528_v15 = vsel %vm180_vm3, %v5498_v35, -inf }
0x137b   :  { %v5513_v24 = vadd.f32 %v5972_v4, %v5814_v41  ;;  %v5507_v33 = vpop.f32.mrb[39].mxu0  ;;  %5529 = vmax.xlane.f32.xlu1 %v5528_v15  ;;  %5523 = vmax.xlane.f32.xlu0 %v5522_v25 }
0x137c   :  { %v5508_v16 = vadd.f32 %v5814_v41, %v5507_v33 }
0x137d   :  { %5595 = vst.msk [vmem:[%s9530_s17 + $0x38] sm:$0xff] %vm180_vm3, %v5513_v24  ;;  %v5537_v62 = vsel %vm180_vm3, %v5513_v24, -inf }
0x137e   :  { %5594 = vst.msk [vmem:[%s9530_s17 + $0x30] sm:$0xff] %vm180_vm3, %v5508_v16  ;;  %v5534_v60 = vsel %vm180_vm3, %v5508_v16, -inf  ;;  %s7806_s17 = smov [#allocation14]  }
0x137f   :  { %5535 = vmax.xlane.f32.xlu1 %v5534_v60  ;;  %5532 = vmax.xlane.f32.xlu0 %v5531_v31  ;;  %s5675_s2 = sshll.u32 %s7806_s17, 4  ;;  %s5676_s2 = int_to_ptr.vmem [resolvable:$true] %s5675_s2 }
0x1380   :  { %s7719_s4 = scalar_lea.vmem %s5676_s2, 256  ;;  %p7724_p5 = scmp.lt.s32.totalorder %s5676_s2, %s5676_s2 }
0x1381   :  { %p7720_p4 = scmp.ne.s32.totalorder %s5676_s2, %s7719_s4  ;;  %p7725_p6 = scmp.lt.s32.totalorder %s7719_s4, %s7719_s4 }
0x1383   :  { %5538 = vmax.xlane.f32.xlu0 %v5537_v62  ;;  %p7726_p7 = por %p7725_p6, %p7724_p5 }
0x1385   :  { %p7727_p8 = pnand %p7726_p7, %p7720_p4 }
0x13ff   :  { %v5521_v63 = vpop.xlane.xlu1 %5520 }
0x1400   :  { %v9332_v56 = vsub.f32 %v5483_v39, %v5521_v63  ;;  %v5518_v10 = vpop.xlane.xlu0 %5517 }
0x1401   :  { %v9334_v7 = vsub.f32 %v5478_v6, %v5518_v10 }
0x1402   :  { %v5550_v32 = vmul.f32 1.442695, %v9332_v56 }
0x1403   :  { %v5548_v13 = vmul.f32 1.442695, %v9334_v7 }
0x1404   :  { %7583 = vpow2.f32 %v5550_v32  ;;  %v5527_v0 = vpop.xlane.xlu0 %5526 }
0x1405   :  { %7585 = vpow2.f32 %v5548_v13  ;;  %v9338_v55 = vsub.f32 %v5493_v27, %v5527_v0 }
0x1407   :  { %v5554_v22 = vmul.f32 1.442695, %v9338_v55 }
0x1408   :  { %v5530_v23 = vpop.xlane.xlu1 %5529  ;;  %v5524_v40 = vpop.xlane.xlu0 %5523 }
0x1409   :  { %7587 = vpow2.f32 %v5554_v22  ;;  %v9341_v28 = vsub.f32 %v5498_v35, %v5530_v23  ;;  %v9343_v45 = vsub.f32 %v5488_v20, %v5524_v40 }
0x140b   :  { %v5552_v38 = vmul.f32 1.442695, %v9343_v45  ;;  %v5556_v17 = vmul.f32 1.442695, %v9341_v28 }
0x140c   :  { %v5536_v11 = vpop.xlane.xlu1 %5535  ;;  %v5533_v18 = vpop.xlane.xlu0 %5532 }
0x140d   :  { %v9347_v61 = vsub.f32 %v5508_v16, %v5536_v11  ;;  %v9349_v44 = vsub.f32 %v5503_v36, %v5533_v18  ;;  %7589 = vpow2.f32 %v5552_v38 }
0x140e   :  { %v9351_v43 = vpop.eup %7583  ;;  %7591 = vpow2.f32 %v5556_v17 }
0x140f   :  { %v9353_v42 = vpop.eup %7585  ;;  %v5558_v3 = vmul.f32 1.442695, %v9349_v44  ;;  %v5567_v2 = vsel %vm180_vm3, %v9351_v43, 0.0  ;;  %v5560_v8 = vmul.f32 1.442695, %v9347_v61 }
0x1410   :  { %5568 = vadd.xlane.f32.xlu0 %v5567_v2  ;;  %v5539_v1 = vpop.xlane.xlu0 %5538  ;;  %v5564_v53 = vsel %vm180_vm3, %v9353_v42, 0.0 }
0x1411   :  { %v9361_v26 = vsub.f32 %v5513_v24, %v5539_v1  ;;  %5565 = vadd.xlane.f32.xlu1 %v5564_v53  ;;  %7593 = vpow2.f32 %v5558_v3 }
0x1412   :  { %7595 = vpow2.f32 %v5560_v8 }
0x1413   :  { %v9363_v30 = vpop.eup %7587  ;;  %v5562_v51 = vmul.f32 1.442695, %v9361_v26 }
0x1414   :  { %v5573_v37 = vsel %vm180_vm3, %v9363_v30, 0.0 }
0x1415   :  { %7597 = vpow2.f32 %v5562_v51  ;;  %5574 = vadd.xlane.f32.xlu0 %v5573_v37 }
0x1417   :  { %v9368_v9 = vpop.eup %7589 }
0x1418   :  { %v5570_v46 = vsel %vm180_vm3, %v9368_v9, 0.0  ;;  %v9372_v54 = vpop.eup %7591 }
0x1419   :  { %5571 = vadd.xlane.f32.xlu1 %v5570_v46  ;;  %v5576_v50 = vsel %vm180_vm3, %v9372_v54, 0.0 }
0x141b   :  { %v9374_v57 = vpop.eup %7593 }
0x141c   :  { %v5579_v49 = vsel %vm180_vm3, %v9374_v57, 0.0  ;;  %v9380_v58 = vpop.eup %7595 }
0x141d   :  { %5577 = vadd.xlane.f32.xlu1 %v5576_v50  ;;  %5580 = vadd.xlane.f32.xlu0 %v5579_v49  ;;  %v5582_v41 = vsel %vm180_vm3, %v9380_v58, 0.0 }
0x141f   :  { %v9382_v47 = vpop.eup %7597 }
0x1420   :  { %v5585_v5 = vsel %vm180_vm3, %v9382_v47, 0.0 }
0x1421   :  { %5583 = vadd.xlane.f32.xlu1 %v5582_v41  ;;  %5586 = vadd.xlane.f32.xlu0 %v5585_v5 }
0x1422   :  { %7730 = shalt.err (!%p7727_p8)
}
0x1423   :  { %s7731_s24 = scalar_lea.hbm %s9533_s20, 256 }
0x1424   :  { %p7732_p9 = scmp.ne.s32.totalorder %s9533_s20, %s7731_s24  ;;  %p7735_p10 = scmp.lt.u32.totalorder %s7731_s24, %s9533_s20 }
0x1426   :  { %p7737_p11 = pnand %p7735_p10, %p7732_p9 }
0x1428   :  { %7740 = shalt.err (!%p7737_p11)
}
0x1429   :  { %s7808_s0 = smov 128   ;;  %s7809_s7 = smov 8  }
0x142a   :  { %5681 = dma.vmem_to_hbm [thread:$0]  %s5676_s2, 256, %s9533_s20, [#allocation15], %s7808_s0, %s7808_s0, %s7809_s7  }
0x142b   :  { %s7741_s8 = scalar_lea.vmem %s5658_s28, 1024  ;;  %p7746_p13 = scmp.lt.s32.totalorder %s5658_s28, %s5658_s28 }
0x142c   :  { %p7742_p12 = scmp.ne.s32.totalorder %s5658_s28, %s7741_s8  ;;  %p7747_p0 = scmp.lt.s32.totalorder %s7741_s8, %s7741_s8 }
0x142e   :  { %p7748_p1 = por %p7747_p0, %p7746_p13 }
0x1430   :  { %p7749_p2 = pnand %p7748_p1, %p7742_p12 }
0x1432   :  { %7752 = shalt.err (!%p7749_p2)
}
0x1433   :  { %s7753_s1 = scalar_lea.hbm %s9529_s16, 1024 }
0x1434   :  { %p7754_p3 = scmp.ne.s32.totalorder %s9529_s16, %s7753_s1  ;;  %p7757_p4 = scmp.lt.u32.totalorder %s7753_s1, %s9529_s16 }
0x1436   :  { %p7759_p5 = pnand %p7757_p4, %p7754_p3 }
0x1438   :  { %7762 = shalt.err (!%p7759_p5)
}
0x1439   :  { %5663 = dma.vmem_to_hbm [thread:$0]  %s5658_s28, 1024, %s9529_s16, [#allocation7], %s7808_s0, %s7808_s0, %s7809_s7  }
0x143a   :  { %s7810_s22 = smov [#allocation16]  }
0x143b   :  { %s5687_s17 = sshll.u32 %s7810_s22, 4  ;;  %s5688_s17 = int_to_ptr.vmem [resolvable:$true] %s5687_s17 }
0x143c   :  { %s7763_s2 = scalar_lea.vmem %s5688_s17, 256  ;;  %p7768_p7 = scmp.lt.s32.totalorder %s5688_s17, %s5688_s17 }
0x143d   :  { %p7764_p6 = scmp.ne.s32.totalorder %s5688_s17, %s7763_s2  ;;  %p7769_p8 = scmp.lt.s32.totalorder %s7763_s2, %s7763_s2 }
0x143f   :  { %p7770_p9 = por %p7769_p8, %p7768_p7 }
0x1441   :  { %p7771_p10 = pnand %p7770_p9, %p7764_p6 }
0x1443   :  { %7774 = shalt.err (!%p7771_p10)
}
0x1444   :  { %s7775_s9 = scalar_lea.hbm %s9534_s21, 256 }
0x1445   :  { %p7776_p11 = scmp.ne.s32.totalorder %s9534_s21, %s7775_s9  ;;  %p7779_p12 = scmp.lt.u32.totalorder %s7775_s9, %s9534_s21 }
0x1447   :  { %p7781_p13 = pnand %p7779_p12, %p7776_p11 }
0x1449   :  { %7784 = shalt.err (!%p7781_p13)
}
0x144a   :  { %5693 = dma.vmem_to_hbm [thread:$0]  %s5688_s17, 256, %s9534_s21, [#allocation15], %s7808_s0, %s7808_s0, %s7809_s7  }
0x149d   :  { %v5569_v52 = vpop.xlane.xlu0 %5568 }
0x149e   :  { %7599 = vrcp.f32 %v5569_v52  ;;  %v5566_v39 = vpop.xlane.xlu1 %5565 }
0x149f   :  { %7601 = vlog2.f32 %v5569_v52 }
0x14a0   :  { %7603 = vrcp.f32 %v5566_v39 }
0x14a1   :  { %7605 = vlog2.f32 %v5566_v39 }
0x14a2   :  { %v5575_v19 = vpop.xlane.xlu0 %5574 }
0x14a3   :  { %7607 = vrcp.f32 %v5575_v19 }
0x14a4   :  { %7609 = vlog2.f32 %v5575_v19 }
0x14a6   :  { %v5572_v6 = vpop.xlane.xlu1 %5571 }
0x14a7   :  { %7611 = vrcp.f32 %v5572_v6 }
0x14a8   :  { %v7600_v29 = vpop.eup %7599  ;;  %7613 = vlog2.f32 %v5572_v6 }
0x14a9   :  { %v7602_v59 = vpop.eup %7601  ;;  %v5605_v14 = vmul.f32 %v7600_v29, %v9351_v43 }
0x14aa   :  { %v7604_v27 = vpop.eup %7603  ;;  %v5623_v12 = vmul.f32 0.6931472, %v7602_v59  ;;  %v5578_v34 = vpop.xlane.xlu1 %5577 }
0x14ab   :  { %v7606_v20 = vpop.eup %7605  ;;  %5613 = vst.msk [vmem:[%s9531_s18 + $0x8] sm:$0xff] %vm180_vm3, %v5605_v14  ;;  %v5604_v48 = vmul.f32 %v7604_v27, %v9353_v42  ;;  %v5581_v36 = vpop.xlane.xlu0 %5580  ;;  %7615 = vrcp.f32 %v5578_v34 }
0x14ac   :  { %v5637_v21 = vsub.f32 %v9332_v56, %v5623_v12  ;;  %v5621_v35 = vmul.f32 0.6931472, %v7606_v20  ;;  %7617 = vlog2.f32 %v5578_v34 }
0x14ad   :  { %v7608_v4 = vpop.eup %7607  ;;  %5612 = vst.msk [vmem:[%s9531_s18] sm:$0xff] %vm180_vm3, %v5604_v48  ;;  %7619 = vrcp.f32 %v5581_v36 }
0x14ae   :  { %v7610_v15 = vpop.eup %7609  ;;  %5645 = vst.msk [vmem:[%s9532_s19 + $0x8] sm:$0xff] %vm180_vm3, %v5637_v21  ;;  %v5636_v25 = vsub.f32 %v9334_v7, %v5621_v35  ;;  %v5607_v24 = vmul.f32 %v7608_v4, %v9363_v30  ;;  %7621 = vlog2.f32 %v5581_v36  ;;  %v5584_v16 = vpop.xlane.xlu1 %5583 }
0x14af   :  { %v5627_v33 = vmul.f32 0.6931472, %v7610_v15  ;;  %v5587_v60 = vpop.xlane.xlu0 %5586  ;;  %7623 = vrcp.f32 %v5584_v16 }
0x14b0   :  { %5644 = vst.msk [vmem:[%s9532_s19] sm:$0xff] %vm180_vm3, %v5636_v25  ;;  %5615 = vst.msk [vmem:[%s9531_s18 + $0x18] sm:$0xff] %vm180_vm3, %v5607_v24  ;;  %7625 = vlog2.f32 %v5584_v16 }
0x14b1   :  { %v5639_v31 = vsub.f32 %v9338_v55, %v5627_v33  ;;  %v7612_v62 = vpop.eup %7611  ;;  %7627 = vrcp.f32 %v5587_v60 }
0x14b2   :  { %v7614_v63 = vpop.eup %7613  ;;  %v5606_v56 = vmul.f32 %v7612_v62, %v9368_v9  ;;  %7629 = vlog2.f32 %v5587_v60 }
0x14b3   :  { %5647 = vst.msk [vmem:[%s9532_s19 + $0x18] sm:$0xff] %vm180_vm3, %v5639_v31  ;;  %v5625_v10 = vmul.f32 0.6931472, %v7614_v63 }
0x14b4   :  { %5614 = vst.msk [vmem:[%s9531_s18 + $0x10] sm:$0xff] %vm180_vm3, %v5606_v56 }
0x14b5   :  { %v7616_v7 = vpop.eup %7615  ;;  %v5638_v32 = vsub.f32 %v9343_v45, %v5625_v10 }
0x14b6   :  { %v7618_v13 = vpop.eup %7617  ;;  %v5608_v0 = vmul.f32 %v7616_v7, %v9372_v54 }
0x14b7   :  { %v7620_v55 = vpop.eup %7619  ;;  %5646 = vst.msk [vmem:[%s9532_s19 + $0x10] sm:$0xff] %vm180_vm3, %v5638_v32  ;;  %v5629_v22 = vmul.f32 0.6931472, %v7618_v13 }
0x14b8   :  { %v7622_v23 = vpop.eup %7621  ;;  %5616 = vst.msk [vmem:[%s9531_s18 + $0x20] sm:$0xff] %vm180_vm3, %v5608_v0  ;;  %v5609_v40 = vmul.f32 %v7620_v55, %v9374_v57 }
0x14b9   :  { %v7624_v38 = vpop.eup %7623  ;;  %v5640_v45 = vsub.f32 %v9341_v28, %v5629_v22  ;;  %v5631_v17 = vmul.f32 0.6931472, %v7622_v23 }
0x14ba   :  { %v7626_v11 = vpop.eup %7625  ;;  %5617 = vst.msk [vmem:[%s9531_s18 + $0x28] sm:$0xff] %vm180_vm3, %v5609_v40  ;;  %v5610_v18 = vmul.f32 %v7624_v38, %v9380_v58 }
0x14bb   :  { %v7628_v43 = vpop.eup %7627  ;;  %5648 = vst.msk [vmem:[%s9532_s19 + $0x20] sm:$0xff] %vm180_vm3, %v5640_v45  ;;  %v5641_v42 = vsub.f32 %v9349_v44, %v5631_v17  ;;  %v5633_v3 = vmul.f32 0.6931472, %v7626_v11 }
0x14bc   :  { %v7630_v2 = vpop.eup %7629  ;;  %5618 = vst.msk [vmem:[%s9531_s18 + $0x30] sm:$0xff] %vm180_vm3, %v5610_v18  ;;  %v5611_v28 = vmul.f32 %v7628_v43, %v9382_v47 }
0x14bd   :  { %5649 = vst.msk [vmem:[%s9532_s19 + $0x28] sm:$0xff] %vm180_vm3, %v5641_v42  ;;  %v5642_v8 = vsub.f32 %v9347_v61, %v5633_v3  ;;  %v5635_v1 = vmul.f32 0.6931472, %v7630_v2 }
0x14be   :  { %5619 = vst.msk [vmem:[%s9531_s18 + $0x38] sm:$0xff] %vm180_vm3, %v5611_v28 }
0x14bf   :  { %5650 = vst.msk [vmem:[%s9532_s19 + $0x30] sm:$0xff] %vm180_vm3, %v5642_v8  ;;  %v5643_v44 = vsub.f32 %v9361_v26, %v5635_v1 }
0x14c1   :  { %5651 = vst.msk [vmem:[%s9532_s19 + $0x38] sm:$0xff] %vm180_vm3, %v5643_v44 }
0x14c2   :  { %7791 = dma.done.wait [#allocation7], 1024  }
0x14c3   :  { %7792 = vsyncadd [#allocation7], 4294966272 }
0x14c4   :  { %7793 = dma.done.wait [#allocation15], 512  }
0x14c5   :  { %7794 = vsyncadd [#allocation15], 4294966784 }
0x14c6   :  { %5709 = vsyncpa [#allocation6], 1 }
0x14c7   :  { %5710 = vsyncpa [#allocation9], 1 }
0x14c8   :  { %5711 = vsyncpa [#allocation12], 1 }
0x14c9   :  { %5712 = vsyncpa [#allocation7], 1 }
0x14ca   :  { %5713 = vsyncpa [#allocation15], 1 }

</bundles_post_ra>
